<compile_context>
chip_gen: v5e
topology: v5e:2x2
jax: 0.10.0
libtpu: 0.0.40
codegen_flags: <defaults>
</compile_context>

<pallas_src>
import functools
import math

import jax
import jax.numpy as jnp
import numpy as np
from jax.experimental import pallas as pl
from jax.experimental.pallas import tpu as pltpu

_TM_MAX = 8192                      # max rows per grid step (sweepable)
_TM_QUANT = 16                      # multiple of 16 rows: bf16/f16 sublane packing
_VMEM_TILE_BUDGET = 24 * 1024 * 1024  # budget for the 4 double-buffered I/O tiles
_MIN_PALLAS_BYTES = 256 * 1024      # below this, XLA gather beats kernel launch cost


def _permute_kernel(x_ref, p_ref, o_ref, *, precision):
    # One-hot (block-diagonal) permutation on the MXU.  Weights are exactly
    # 0/1 and accumulation is f32, so the result is bit-exact:
    #   * bf16 inputs: single native bf16 MXU pass (DEFAULT precision).
    #   * f32 inputs:  precision=HIGHEST -> full-mantissa passes, no bf16
    #                  truncation of x sneaks in.
    #   * f16 inputs:  upcast to f32 here (MXU has no native fp16), exact.
    x = x_ref[...]
    if x.dtype != p_ref.dtype:
        x = x.astype(p_ref.dtype)
    o_ref[...] = jnp.dot(
        x, p_ref[...], precision=precision, preferred_element_type=jnp.float32
    ).astype(o_ref.dtype)


def _choose_tm(rows: int, lanes: int, itemsize: int) -> int:
    """Rows per grid step (all arguments are trace-time Python ints)."""
    # VMEM footprint of the pipelined I/O tiles: 2 buffers x (in + out).
    cap = max(_VMEM_TILE_BUDGET // (4 * lanes * itemsize), _TM_QUANT)
    tm = min(_TM_MAX, cap, rows)
    # Keep >= 2 grid steps so the "parallel" axis can shard across v7x's two
    # TensorCores (harmless on v5e/v6e: just one more pipelined step).
    if rows > 2 * _TM_QUANT:
        tm = min(tm, (rows + 1) // 2)
    # Quantize to a multiple of 16 sublanes (avoids bf16/f16 relayout).
    tm = max((tm // _TM_QUANT) * _TM_QUANT, _TM_QUANT)
    return tm


def _pallas_apply(x2d, p_mat):
    """x2d: (rows, lanes), p_mat: (lanes, lanes) block-diagonal one-hot."""
    rows, lanes = x2d.shape
    itemsize = jnp.dtype(x2d.dtype).itemsize
    p_itemsize = jnp.dtype(p_mat.dtype).itemsize
    tm = _choose_tm(rows, lanes, itemsize)
    grid = (pl.cdiv(rows, tm),)

    precision = (
        jax.lax.Precision.HIGHEST
        if p_mat.dtype == jnp.float32
        else jax.lax.Precision.DEFAULT
    )
    flop_scale = 3 if precision == jax.lax.Precision.HIGHEST else 1
    cost = pl.CostEstimate(
        flops=2 * rows * lanes * lanes * flop_scale,
        transcendentals=0,
        bytes_accessed=2 * rows * lanes * itemsize + lanes * lanes * p_itemsize,
    )
    # Double-buffered in + out tiles, P (x2 buffers), plus slack; clamp so the
    # request stays under v7x's 64 MiB physical VMEM.
    vmem_limit = 4 * tm * lanes * itemsize + 2 * lanes * lanes * p_itemsize + (4 << 20)
    vmem_limit = int(min(max(vmem_limit, 32 << 20), 48 << 20))

    return pl.pallas_call(
        functools.partial(_permute_kernel, precision=precision),
        out_shape=jax.ShapeDtypeStruct((rows, lanes), x2d.dtype),
        grid=grid,
        in_specs=[
            pl.BlockSpec((tm, lanes), lambda i: (i, 0)),
            # Constant index_map -> P is DMA'd once and stays resident; the
            # default double buffer only costs an extra lanes^2 VMEM tile
            # (64 KiB f32 at lanes=128), immaterial next to the I/O tiles.
            pl.BlockSpec((lanes, lanes), lambda i: (0, 0)),
        ],
        out_specs=pl.BlockSpec((tm, lanes), lambda i: (i, 0)),
        compiler_params=pltpu.CompilerParams(
            dimension_semantics=("parallel",),
            vmem_limit_bytes=vmem_limit,
        ),
        cost_estimate=cost,
    )(x2d, p_mat)


@jax.jit
def _packed_permute(param, p_block, idx):
    """Lane-packed permutation of `param`'s last axis via the Pallas kernel."""
    shape = param.shape
    lanes = p_block.shape[0]
    feat = idx.shape[0]
    total = param.size
    rows = total // lanes
    rem = total - rows * lanes  # whole feature groups, < lanes elements

    flat = param.reshape(-1)  # contiguous: free, no extra HBM pass
    main = flat[: rows * lanes].reshape(rows, lanes)
    out_main = _pallas_apply(main, p_block)
    if rem == 0:
        return out_main.reshape(shape)
    # Ragged tail (< lanes elements): tiny gather instead of pad+slice, which
    # would have cost two extra full-tensor HBM passes.
    tail = flat[rows * lanes:].reshape(-1, feat)
    out_tail = jnp.take(tail, idx, axis=-1)
    out = jnp.concatenate([out_main.reshape(-1), out_tail.reshape(-1)])
    return out.reshape(shape)


class PermutationLayer:
    """JAX/Pallas port of the PyTorch PermutationLayer."""

    def __init__(self, in_sz=3, key=None, max_packed_lanes=1024,
                 min_pallas_bytes=_MIN_PALLAS_BYTES):
        if key is None:
            key = jax.random.PRNGKey(0)
        # Deterministic "randperm" buffer (synthetic init, no checkpoint).
        perm = jax.random.permutation(key, in_sz).astype(jnp.int32)
        inv_perm = jnp.argsort(perm).astype(jnp.int32)
        self.permutation = perm
        self.inv_permutation = inv_perm
        self.in_sz = in_sz
        self._min_pallas_bytes = min_pallas_bytes

        perm_np = np.asarray(perm)
        inv_np = np.asarray(inv_perm)
        eye = np.arange(in_sz)
        # P[i, j] = 1 iff i == perm[j]  ->  (x @ P)[:, j] = x[:, perm[j]]
        p_fwd = (eye[:, None] == perm_np[None, :]).astype(np.float32)
        p_inv = (eye[:, None] == inv_np[None, :]).astype(np.float32)

        # Lane-dense packing: L = lcm(in_sz, 128) lanes per packed row with a
        # block-diagonal permutation so each in_sz-wide group is permuted
        # independently.  Keep L small (do NOT widen to fill a 256x256 MXU).
        lanes = (in_sz * 128) // math.gcd(in_sz, 128)
        if lanes <= max_packed_lanes:
            reps = lanes // in_sz
            ident = np.eye(reps, dtype=np.float32)
            fwd_block = np.kron(ident, p_fwd)
            inv_block = np.kron(ident, p_inv)
            self._lanes = lanes
            self._blocks = {}
            for dt in (jnp.float32, jnp.bfloat16):
                self._blocks[(False, jnp.dtype(dt))] = jnp.asarray(fwd_block, dt)
                self._blocks[(True, jnp.dtype(dt))] = jnp.asarray(inv_block, dt)
        else:
            # TODO(synk): feature sizes whose lcm with 128 is too wide fall
            # back to XLA gather instead of a feat-wide Pallas kernel.
            self._lanes = None
            self._blocks = None

    def __call__(self, param, inverse=False):
        param = jnp.asarray(param)
        if param.shape[-1] != self.in_sz:
            raise ValueError(
                f"last-axis size {param.shape[-1]} does not match in_sz {self.in_sz}"
            )
        idx = self.inv_permutation if inverse else self.permutation
        dt = param.dtype

        pallas_ok = (
            self._lanes is not None
            and dt in (jnp.float32, jnp.bfloat16, jnp.float16)
            and param.size >= self._lanes * 8
            and param.size * dt.itemsize >= self._min_pallas_bytes
        )
        if not pallas_ok:
            # Fast / exact path: tiny tensors (pallas_call launch overhead
            # dominates), integer & exotic dtypes (full-range exact, no f32
            # round-trip) and unpackable feature sizes use XLA gather.
            return jnp.take(param, idx, axis=-1)

        # P dtype: bf16 inputs run one native bf16 MXU pass; f32 / f16 inputs
        # use an f32 P with precision=HIGHEST inside the kernel (f16 is upcast
        # in-kernel so HBM traffic stays at the native width).
        p_dtype = jnp.dtype(jnp.bfloat16) if dt == jnp.bfloat16 else jnp.dtype(jnp.float32)
        p_block = self._blocks[(bool(inverse), p_dtype)]
        return _packed_permute(param, p_block, idx)


if __name__ == "__main__":
    key = jax.random.PRNGKey(0)
    k_perm, k_small, k_big = jax.random.split(key, 3)

    in_sz = 16
    layer = PermutationLayer(in_sz=in_sz, key=k_perm)
    perm = np.asarray(layer.permutation)
    inv_perm = np.asarray(layer.inv_permutation)

    # Small input (batch=2, channels=4, spatial=16, feat=16): 32 KiB -> goes
    # through the exact XLA-gather fast path (kernel launch would dominate).
    x_small = jax.random.normal(k_small, (2, 4, 16, in_sz), dtype=jnp.float32)
    y_small = jax.block_until_ready(layer(x_small, inverse=False))
    np.testing.assert_array_equal(np.asarray(y_small), np.asarray(x_small)[..., perm])
    np.testing.assert_array_equal(
        np.asarray(jax.block_until_ready(layer(y_small, inverse=True))),
        np.asarray(x_small),
    )

    # Larger input (1 MiB f32): exercises the lane-packed Pallas kernel with a
    # >= 2-step "parallel" grid.
    x_big = jax.random.normal(k_big, (256, 64, in_sz), dtype=jnp.float32)
    y_big = jax.block_until_ready(layer(x_big, inverse=False))
    y_rt = jax.block_until_ready(layer(y_big, inverse=True))
    y_inv = jax.block_until_ready(layer(x_big, inverse=True))
    xb = np.asarray(x_big)
    np.testing.assert_array_equal(np.asarray(y_big), xb[..., perm])   # bit-exact
    np.testing.assert_array_equal(np.asarray(y_rt), xb)
    np.testing.assert_array_equal(np.asarray(y_inv), xb[..., inv_perm])

    # Native bf16 path (no f32 laundering): single bf16 MXU pass, bit-exact.
    x_bf = x_big.astype(jnp.bfloat16)
    y_bf = jax.block_until_ready(layer(x_bf, inverse=False))
    assert y_bf.dtype == jnp.bfloat16
    np.testing.assert_array_equal(
        np.asarray(y_bf.astype(jnp.float32)),
        np.asarray(x_bf.astype(jnp.float32))[..., perm],
    )

    # Integer inputs use the exact gather path (no f32 round-trip, full range).
    x_int = jax.random.randint(k_small, (64, in_sz), -(2 ** 30), 2 ** 30, dtype=jnp.int32)
    y_int = jax.block_until_ready(layer(x_int, inverse=False))
    np.testing.assert_array_equal(np.asarray(y_int), np.asarray(x_int)[..., perm])

    print("KERNEL_OK")
</pallas_src>

<mosaic_0001>
module attributes {stable_mosaic.version = 11 : i64} {
  func.func @_permute_kernel(%arg0: i32, %arg1: memref<1024x128xf32, #tpu.memory_space<vmem>>, %arg2: memref<128x128xf32, #tpu.memory_space<vmem>>, %arg3: memref<1024x128xf32, #tpu.memory_space<vmem>>) attributes {dimension_semantics = [#tpu.dimension_semantics<parallel>], iteration_bounds = array<i64: 2>, scalar_prefetch = 0 : i64, scratch_operands = 0 : i64, tpu.core_type = #tpu.core_type<tc>, window_params = [{transform_indices = @transform_0, window_bounds = array<i64: 1024, 128>}, {pipeline_mode = #tpu.pipeline_mode<synchronous>, transform_indices = @transform_1, window_bounds = array<i64: 128, 128>}, {transform_indices = @transform_2, window_bounds = array<i64: 1024, 128>}]} {
    %c0 = arith.constant 0 : index
    %c0_0 = arith.constant 0 : index
    %0 = vector.load %arg1[%c0, %c0_0] : memref<1024x128xf32, #tpu.memory_space<vmem>>, vector<1024x128xf32>
    %c0_1 = arith.constant 0 : index
    %c0_2 = arith.constant 0 : index
    %1 = vector.load %arg2[%c0_1, %c0_2] : memref<128x128xf32, #tpu.memory_space<vmem>>, vector<128x128xf32>
    %cst = arith.constant dense<0.000000e+00> : vector<1024x128xf32>
    %2 = tpu.matmul %0, %1, %cst {dimension_numbers = #tpu.dot_dimension_numbers<[1], [0], [0], [1], [0, 0, 1, 1], [], []>, precision = #tpu.contract_precision<fp32>} : vector<1024x128xf32>, vector<128x128xf32>, vector<1024x128xf32> -> vector<1024x128xf32>
    %c0_3 = arith.constant 0 : index
    %c0_4 = arith.constant 0 : index
    %3 = vector.load %arg3[%c0_3, %c0_4] : memref<1024x128xf32, #tpu.memory_space<vmem>>, vector<1024x128xf32>
    tpu.vector_store %arg3[%c0_3, %c0_4], %2 {strides = array<i32>} : memref<1024x128xf32, #tpu.memory_space<vmem>>, vector<1024x128xf32>,
    return
  }
  func.func @transform_0(%arg0: i32) -> (i32, i32) {
    %c0_i32 = arith.constant 0 : i32
    %c0_i32_0 = arith.constant 0 : i32
    return %arg0, %c0_i32 : i32, i32
  }
  func.func @transform_1(%arg0: i32) -> (i32, i32) {
    %c0_i32 = arith.constant 0 : i32
    %c0_i32_0 = arith.constant 0 : i32
    %c0_i32_1 = arith.constant 0 : i32
    return %c0_i32, %c0_i32_0 : i32, i32
  }
  func.func @transform_2(%arg0: i32) -> (i32, i32) {
    %c0_i32 = arith.constant 0 : i32
    %c0_i32_0 = arith.constant 0 : i32
    return %arg0, %c0_i32 : i32, i32
  }
}

</mosaic_0001>

<bundles_post_ra>
// kernel: _packed_permute.1
= control target key start
LH: loop header
LB: loop body
LE: loop exit
PB: predicated region body
PF: predicated region fallthrough
CT: control target
= control target key end

     0   :  { %s4827_s9 = smov 0   ;;  %s7911_s0 = inlined_call_operand.vmem [shape: f32[2048,128], index: 0, kind: input, shape index: {}]   ;;  %s7912_s1 = inlined_call_operand.vmem [shape: f32[128,128], index: 1, kind: input, shape index: {}]   ;;  %s7913_s2 = inlined_call_operand.vmem [shape: f32[2048,128], index: 2, kind: output, shape index: {}]  }
   0x1 LB: > { %s4753_s10 = sadd.s32 4294967295, %s4810_s9   ;;  %p4757_p0 = scmp.ge.s32.totalorder %s4810_s9, 1  ;;  %s4810_s9 = sphi %s4827_s9, %s12_s9  }
   0x2   : > { %p113_p1 = scmp.lt.s32.totalorder %s4810_s9, 3 }
   0x4   : > { %p114_p2 = pnand %p4757_p0, %p113_p1 }
   0x6   : > { %117 = sbr.rel (%p114_p2) target bundleno = 1720 (0x6b8), region = 28 }
   0xb   : > { %v290_v0 = vld [vmem:[%s7912_s1 + $0x78] sm:$0xff]  ;;  %v289_v1 = vld [vmem:[%s7912_s1 + $0x70] sm:$0xff]  ;;  %v288_v2 = vld [vmem:[%s7912_s1 + $0x68] sm:$0xff]  ;;  %s4758_s17 = sshll.u32 %s4753_s10, 7 }
   0xc   : > { %v4844_v3 = vand.u32 4294901760, %v290_v0  ;;  %v4846_v4 = vand.u32 4294901760, %v289_v1  ;;  %v4848_v5 = vand.u32 4294901760, %v288_v2  ;;  %v287_v6 = vld [vmem:[%s7912_s1 + $0x60] sm:$0xff]  ;;  %v286_v7 = vld [vmem:[%s7912_s1 + $0x58] sm:$0xff]  ;;  %v285_v8 = vld [vmem:[%s7912_s1 + $0x50] sm:$0xff] }
   0xd   : > { %v4859_v9 = vand.u32 4294901760, %v287_v6  ;;  %v4861_v10 = vand.u32 4294901760, %v286_v7  ;;  %v4863_v11 = vand.u32 4294901760, %v285_v8  ;;  %v284_v12 = vld [vmem:[%s7912_s1 + $0x48] sm:$0xff]  ;;  %v283_v13 = vld [vmem:[%s7912_s1 + $0x40] sm:$0xff]  ;;  %v282_v17 = vld [vmem:[%s7912_s1 + $0x38] sm:$0xff] }
   0xe   : > { %4764 = vmatpush.msra.mxu2 %v4844_v3  ;;  %v4873_v14 = vsub.f32 %v290_v0, %v4844_v3  ;;  %v4876_v15 = vsub.f32 %v289_v1, %v4846_v4  ;;  %v4879_v16 = vsub.f32 %v288_v2, %v4848_v5  ;;  %292 = vmatpush.msra.mxu0 %v4844_v3  ;;  %p136_p3 = scmp.lt.s32.totalorder %s4758_s17, 255  ;;  %v4885_v18 = vand.u32 4294901760, %v284_v12  ;;  %v281_v25 = vld [vmem:[%s7912_s1 + $0x30] sm:$0xff]  ;;  %v280_v33 = vld [vmem:[%s7912_s1 + $0x28] sm:$0xff]  ;;  %v279_v42 = vld [vmem:[%s7912_s1 + $0x20] sm:$0xff] }
   0xf   : > { %v4888_v19 = vsub.f32 %v287_v6, %v4859_v9  ;;  %v4891_v20 = vsub.f32 %v286_v7, %v4861_v10  ;;  %v4897_v24 = vand.u32 4294901760, %v283_v13  ;;  %v4906_v27 = vand.u32 4294901760, %v282_v17  ;;  %v278_v48 = vld [vmem:[%s7912_s1 + $0x18] sm:$0xff]  ;;  %v277_v54 = vld [vmem:[%s7912_s1 + $0x10] sm:$0xff]  ;;  %v276_v63 = vld [vmem:[%s7912_s1 + $0x8] sm:$0xff] }
  0x10   : > { %4765 = vmatpush.msra.mxu2 %v4846_v4  ;;  %v1350_v21 = vand.u32 4294901760, %v4873_v14  ;;  %v1356_v22 = vand.u32 4294901760, %v4876_v15  ;;  %v1362_v23 = vand.u32 4294901760, %v4879_v16  ;;  %294 = vmatpush.msra.mxu0 %v4846_v4  ;;  %s9353_s17 = smov (!%p136_p3, %s4758_s17), 255  ;;  %v4909_v28 = vsub.f32 %v285_v8, %v4863_v11  ;;  %v275_v7 = vld [vmem:[%s7912_s1] sm:$0xff] }
  0x11   : > { %v1368_v26 = vand.u32 4294901760, %v4888_v19  ;;  %v1374_v32 = vand.u32 4294901760, %v4891_v20  ;;  %s4759_s6 = sshll.u32 %s9353_s17, 3  ;;  %v4930_v35 = vand.u32 4294901760, %v281_v25  ;;  %v4933_v36 = vsub.f32 %v284_v12, %v4885_v18 }
  0x12   : > { %4766 = vmatpush.msra.mxu2 %v4848_v5  ;;  %v1351_v29 = vsub.f32 %v4873_v14, %v1350_v21  ;;  %v1357_v30 = vsub.f32 %v4876_v15, %v1356_v22  ;;  %v1363_v31 = vsub.f32 %v4879_v16, %v1362_v23  ;;  %296 = vmatpush.msra.mxu0 %v4848_v5  ;;  %s4940_s10 = scalar_lea.vmem %s7911_s0, %s4759_s6  ;;  %v1380_v39 = vand.u32 4294901760, %v4909_v28  ;;  %s7035_s24 = scalar_lea.vmem %s7913_s2, %s4759_s6 }
  0x13   : > { %v1369_v34 = vsub.f32 %v4888_v19, %v1368_v26  ;;  %v4946_v40 = vsub.f32 %v283_v13, %v4897_v24  ;;  %v4948_v41 = vand.u32 4294901760, %v280_v33  ;;  %v1375_v44 = vsub.f32 %v4891_v20, %v1374_v32  ;;  %v211_v47 = vld [vmem:[%s4940_s10 + $0x200] sm:$0xff] }
  0x14   : > { %4767 = vmatpush.msra.mxu2 %v4859_v9  ;;  %v1352_v37 = vand.u32 4294901760, %v1351_v29  ;;  %v1358_v38 = vand.u32 4294901760, %v1357_v30  ;;  %298 = vmatpush.msra.mxu0 %v4859_v9  ;;  %v1364_v43 = vand.u32 4294901760, %v1363_v31  ;;  %v7923_v45 = vand.u32 4294901760, %v4933_v36  ;;  %v147_v12 = vld [vmem:[%s4940_s10] sm:$0xff]  ;;  %v212_v30 = vld [vmem:[%s4940_s10 + $0x208] sm:$0xff] }
  0x15   : > { %v4959_v46 = vsub.f32 %v282_v17, %v4906_v27  ;;  %v4967_v49 = vsub.f32 %v281_v25, %v4930_v35  ;;  %v1370_v50 = vand.u32 4294901760, %v1369_v34  ;;  %v1381_v51 = vsub.f32 %v4909_v28, %v1380_v39 }
  0x16   : > { %4768 = vmatpush.msra.mxu2 %v4861_v10  ;;  %4780 = vmatpush.msra.mxu3 %v1352_v37  ;;  %v4973_v52 = vand.u32 4294901760, %v279_v42  ;;  %v7921_v53 = vand.u32 4294901760, %v4946_v40  ;;  %v4981_v56 = vand.u32 4294901760, %v211_v47  ;;  %v1376_v57 = vand.u32 4294901760, %v1375_v44 }
  0x17   : > { %1353 = vmatpush.msra.mxu1 %v1352_v37  ;;  %300 = vmatpush.msra.mxu0 %v4861_v10  ;;  %v7919_v55 = vand.u32 4294901760, %v4959_v46  ;;  %v1387_v58 = vsub.f32 %v4933_v36, %v7923_v45  ;;  %v4987_v59 = vand.u32 4294901760, %v278_v48  ;;  %v4990_v60 = vsub.f32 %v280_v33, %v4948_v41 }
  0x18   : > { %4769 = vmatpush.msra.mxu2 %v4863_v11  ;;  %4781 = vmatpush.msra.mxu3 %v1358_v38  ;;  %8477 = vst [vmem:[#allocation2_spill] sm:$0xff] %v4981_v56  ;;  %v4992_v61 = vand.u32 4294901760, %v277_v54  ;;  %v7918_v62 = vand.u32 4294901760, %v4967_v49  ;;  %v1382_v0 = vand.u32 4294901760, %v1381_v51  ;;  %v1393_v1 = vsub.f32 %v4946_v40, %v7921_v53  ;;  %v149_v53 = vld [vmem:[%s4940_s10 + $0x10] sm:$0xff] }
  0x19   : > { %1359 = vmatpush.msra.mxu1 %v1358_v38  ;;  %302 = vmatpush.msra.mxu0 %v4863_v11  ;;  %v5004_v2 = vsub.f32 %v279_v42, %v4973_v52  ;;  %v1399_v6 = vsub.f32 %v4959_v46, %v7919_v55  ;;  %v5014_v8 = vsub.f32 %v211_v47, %v4981_v56  ;;  %v1388_v13 = vand.u32 4294901760, %v1387_v58 }
  0x1a   : > { %4770 = vmatpush.msra.mxu2 %v4885_v18  ;;  %4782 = vmatpush.msra.mxu3 %v1364_v43  ;;  %v5018_v17 = vand.u32 4294901760, %v276_v63  ;;  %v7915_v25 = vand.u32 4294901760, %v4990_v60  ;;  %v5022_v29 = vsub.f32 %v278_v48, %v4987_v59  ;;  %v1405_v31 = vsub.f32 %v4967_v49, %v7918_v62  ;;  %v148_v48 = vld [vmem:[%s4940_s10 + $0x8] sm:$0xff] }
  0x1b   : > { %1365 = vmatpush.msra.mxu1 %v1364_v43  ;;  %304 = vmatpush.msra.mxu0 %v4885_v18  ;;  %8478 = vst [vmem:[#allocation3_spill] sm:$0xff] %v5014_v8  ;;  %v5030_v33 = vsub.f32 %v277_v54, %v4992_v61  ;;  %v1394_v34 = vand.u32 4294901760, %v1393_v1  ;;  %v5033_v37 = vand.u32 4294901760, %v275_v7  ;;  %v7914_v38 = vand.u32 4294901760, %v5004_v2 }
  0x1c   : > { %4771 = vmatpush.msra.mxu2 %v4897_v24  ;;  %4783 = vmatpush.msra.mxu3 %v1370_v50  ;;  %v5036_v42 = vand.u32 4294901760, %v147_v12  ;;  %v1400_v43 = vand.u32 4294901760, %v1399_v6  ;;  %v7916_v44 = vand.u32 4294901760, %v5014_v8  ;;  %v5040_v47 = vand.u32 4294901760, %v212_v30 }
  0x1d   : > { %1371 = vmatpush.msra.mxu1 %v1370_v50  ;;  %306 = vmatpush.msra.mxu0 %v4897_v24  ;;  %v1411_v50 = vsub.f32 %v4990_v60, %v7915_v25  ;;  %v7917_v51 = vand.u32 4294901760, %v5022_v29  ;;  %v5049_v54 = vsub.f32 %v276_v63, %v5018_v17  ;;  %v1406_v58 = vand.u32 4294901760, %v1405_v31 }
  0x1e   : > { %4772 = vmatpush.msra.mxu2 %v4906_v27  ;;  %4784 = vmatpush.msra.mxu3 %v1376_v57  ;;  %8479 = vst [vmem:[#allocation4_spill] sm:$0xff] %v5040_v47  ;;  %v1417_v1 = vsub.f32 %v5004_v2, %v7914_v38  ;;  %v5061_v63 = vsub.f32 %v275_v7, %v5033_v37 }
  0x1f   : > { %1377 = vmatpush.msra.mxu1 %v1376_v57  ;;  %308 = vmatpush.msra.mxu0 %v4906_v27  ;;  %v5052_v57 = vsub.f32 %v147_v12, %v5036_v42  ;;  %v5064_v12 = vand.u32 4294901760, %v148_v48  ;;  %v5071_v31 = vsub.f32 %v212_v30, %v5040_v47  ;;  %v1412_v38 = vand.u32 4294901760, %v1411_v50 }
  0x20   : > { %4773 = vmatpush.msra.mxu2 %v4930_v35  ;;  %4785 = vmatpush.msra.mxu3 %v1382_v0  ;;  %v1423_v7 = vsub.f32 %v5022_v29, %v7917_v51  ;;  %v7924_v25 = vand.u32 4294901760, %v5049_v54  ;;  %v1418_v30 = vand.u32 4294901760, %v1417_v1  ;;  %v7925_v50 = vand.u32 4294901760, %v5061_v63 }
  0x21   : > { %1383 = vmatpush.msra.mxu1 %v1382_v0  ;;  %310 = vmatpush.msra.mxu0 %v4930_v35  ;;  %v7920_v0 = vand.u32 4294901760, %v5030_v33  ;;  %v7922_v6 = vand.u32 4294901760, %v5052_v57  ;;  %8480 = vst [vmem:[#allocation5_spill] sm:$0xff] %v5071_v31  ;;  %v5089_v62 = vsub.f32 %v148_v48, %v5064_v12  ;;  %v7926_v55 = vand.u32 4294901760, %v5071_v31 }
  0x22   : > { %4774 = vmatpush.msra.mxu2 %v4948_v41  ;;  %4786 = vmatpush.msra.mxu3 %v1388_v13  ;;  %v1424_v1 = vand.u32 4294901760, %v1423_v7  ;;  %v1441_v48 = vsub.f32 %v5061_v63, %v7925_v50  ;;  %v5106_v7 = vand.u32 4294901760, %v149_v53  ;;  %v214_v50 = vld [vmem:[%s4940_s10 + $0x218] sm:$0xff] }
  0x23   : > { %1389 = vmatpush.msra.mxu1 %v1388_v13  ;;  %312 = vmatpush.msra.mxu0 %v4948_v41  ;;  %v838_v13 = vsub.f32 %v5014_v8, %v7916_v44  ;;  %v1429_v44 = vsub.f32 %v5030_v33, %v7920_v0  ;;  %v326_v51 = vsub.f32 %v5052_v57, %v7922_v6 }
  0x24   : > { %4775 = vmatpush.msra.mxu2 %v4973_v52  ;;  %4787 = vmatpush.msra.mxu3 %v1394_v34  ;;  %v1435_v6 = vsub.f32 %v5049_v54, %v7924_v25 }
  0x25   : > { %1395 = vmatpush.msra.mxu1 %v1394_v34  ;;  %314 = vmatpush.msra.mxu0 %v4973_v52  ;;  %v213_v34 = vld [vmem:[%s4940_s10 + $0x210] sm:$0xff]  ;;  %v1430_v45 = vand.u32 4294901760, %v1429_v44 }
  0x26   : > { %4776 = vmatpush.msra.mxu2 %v4987_v59  ;;  %4788 = vmatpush.msra.mxu3 %v1400_v43  ;;  %v5093_v0 = vand.u32 4294901760, %v213_v34  ;;  %v1436_v25 = vand.u32 4294901760, %v1435_v6 }
  0x27   : > { %1401 = vmatpush.msra.mxu1 %v1400_v43  ;;  %316 = vmatpush.msra.mxu0 %v4987_v59  ;;  %v839_v43 = vand.u32 4294901760, %v838_v13  ;;  %v7946_v13 = vand.u32 4294901760, %v5089_v62 }
  0x28   : > { %4777 = vmatpush.msra.mxu2 %v4992_v61  ;;  %4789 = vmatpush.msra.mxu3 %v1406_v58  ;;  %8481 = vst [vmem:[#allocation6_spill] sm:$0xff] %v5093_v0  ;;  %v5112_v44 = vsub.f32 %v213_v34, %v5093_v0 }
  0x29   : > { %1407 = vmatpush.msra.mxu1 %v1406_v58  ;;  %318 = vmatpush.msra.mxu0 %v4992_v61  ;;  %v327_v58 = vand.u32 4294901760, %v326_v51  ;;  %v1442_v51 = vand.u32 4294901760, %v1441_v48 }
  0x2a   : > { %4778 = vmatpush.msra.mxu2 %v5018_v17  ;;  %4790 = vmatpush.msra.mxu3 %v1412_v38  ;;  %8482 = vst [vmem:[#allocation7_spill] sm:$0xff] %v5112_v44  ;;  %v7934_v6 = vand.u32 4294901760, %v5112_v44 }
  0x2b   : > { %1413 = vmatpush.msra.mxu1 %v1412_v38  ;;  %320 = vmatpush.msra.mxu0 %v5018_v17  ;;  %v846_v38 = vsub.f32 %v5071_v31, %v7926_v55  ;;  %v150_v55 = vld [vmem:[%s4940_s10 + $0x18] sm:$0xff] }
  0x2c   : > { %4779 = vmatpush.msra.mxu2 %v5033_v37  ;;  %4791 = vmatpush.msra.mxu3 %v1418_v30  ;;  %v5133_v48 = vand.u32 4294901760, %v150_v55 }
  0x2d   : > { %840 = vmatmul.f32.vlgmr.msra.gmra.mxu2 %v839_v43  ;;  %1419 = vmatpush.msra.mxu1 %v1418_v30  ;;  %v334_v30 = vsub.f32 %v5089_v62, %v7946_v13  ;;  %v5121_v43 = vsub.f32 %v149_v53, %v5106_v7  ;;  %v847_v34 = vand.u32 4294901760, %v846_v38 }
  0x2e   : > { %4792 = vmatpush.msra.mxu3 %v1424_v1  ;;  %1959 = vmatpush.msrb.mxu2 %v4873_v14  ;;  %v854_v14 = vsub.f32 %v5112_v44, %v7934_v6 }
  0x2f   : > { %1425 = vmatpush.msra.mxu1 %v1424_v1  ;;  %322 = vmatpush.msra.mxu0 %v5033_v37  ;;  %v5126_v1 = vand.u32 4294901760, %v214_v50  ;;  %v335_v53 = vand.u32 4294901760, %v334_v30 }
  0x30   : > { %4793 = vmatpush.msra.mxu3 %v1430_v45  ;;  %328 = vmatmul.f32.vlgmr.msra.gmra.mxu0 %v327_v58 }
  0x31   : > { %1431 = vmatpush.msra.mxu1 %v1430_v45  ;;  %3450 = vmatpush.msrb.mxu0 %v1350_v21  ;;  %8483 = vst [vmem:[#allocation8_spill] sm:$0xff] %v5126_v1  ;;  %v7944_v45 = vand.u32 4294901760, %v5121_v43  ;;  %v5141_v21 = vsub.f32 %v214_v50, %v5126_v1  ;;  %v855_v50 = vand.u32 4294901760, %v854_v14 }
  0x32   : > { %4794 = vmatpush.msra.mxu3 %v1436_v25  ;;  %1962 = vmatpush.msrb.mxu2 %v4876_v15  ;;  %v215_v15 = vld [vmem:[%s4940_s10 + $0x220] sm:$0xff] }
  0x33   : > { %1437 = vmatpush.msra.mxu1 %v1436_v25  ;;  %3454 = vmatpush.msrb.mxu0 %v1356_v22  ;;  %8484 = vst [vmem:[#allocation9_spill] sm:$0xff] %v5141_v21  ;;  %v342_v22 = vsub.f32 %v5121_v43, %v7944_v45  ;;  %v5153_v25 = vsub.f32 %v150_v55, %v5133_v48  ;;  %v7932_v58 = vand.u32 4294901760, %v5141_v21  ;;  %v5156_v38 = vand.u32 4294901760, %v215_v15 }
  0x34   : > { %4795 = vmatpush.msra.mxu3 %v1442_v51  ;;  %1965 = vmatpush.msrb.mxu2 %v4879_v16  ;;  %v151_v16 = vld [vmem:[%s4940_s10 + $0x20] sm:$0xff] }
  0x35   : > { %848 = vmatmul.f32.gmra.mxu2 %v847_v34  ;;  %1701 = vmatmul.f32.vlgmr.msra.gmra.mxu3 %v4981_v56  ;;  %8485 = vst [vmem:[#allocation10_spill] sm:$0xff] %v5156_v38  ;;  %v5167_v55 = vand.u32 4294901760, %v151_v16  ;;  %v8488_v34 = vand.u32 4294901760, %v4933_v36 }
  0x36   : > { %2647 = vmatpush.msrb.mxu3 %v4844_v3  ;;  %1443 = vmatpush.msra.mxu1 %v1442_v51 }
  0x37   : > { %1445 = vmatmul.f32.vlgmr.msra.gmra.mxu1 %v5036_v42  ;;  %3458 = vmatpush.msrb.mxu0 %v1362_v23  ;;  %v7943_v23 = vand.u32 4294901760, %v5153_v25 }
  0x38   : > { %4025 = vmatpush.msrb.mxu1 %v4844_v3  ;;  %336 = vmatmul.f32.gmra.mxu0 %v335_v53  ;;  %v343_v3 = vand.u32 4294901760, %v342_v22 }
  0x39   : > { %2649 = vmatpush.msrb.mxu3 %v4846_v4  ;;  %1968 = vmatpush.msrb.mxu2 %v4888_v19  ;;  %v5177_v19 = vsub.f32 %v215_v15, %v5156_v38 }
  0x3a   : > { %4027 = vmatpush.msrb.mxu1 %v4846_v4  ;;  %3462 = vmatpush.msrb.mxu0 %v1368_v26  ;;  %v862_v4 = vsub.f32 %v5141_v21, %v7932_v58  ;;  %v216_v26 = vld [vmem:[%s4940_s10 + $0x228] sm:$0xff]  ;;  %v231_v21 = vld [vmem:[%s4940_s10 + $0x2a0] sm:$0xff] }
  0x3b   : > { %2651 = vmatpush.msrb.mxu3 %v4848_v5  ;;  %1971 = vmatpush.msrb.mxu2 %v4891_v20  ;;  %8486 = vst [vmem:[#allocation11_spill] sm:$0xff] %v5177_v19  ;;  %v5188_v20 = vsub.f32 %v151_v16, %v5167_v55  ;;  %v7931_v51 = vand.u32 4294901760, %v5177_v19  ;;  %v5192_v30 = vand.u32 4294901760, %v216_v26  ;;  %v5585_v44 = vand.u32 4294901760, %v231_v21 }
  0x3c   : > { %4029 = vmatpush.msrb.mxu1 %v4848_v5  ;;  %3466 = vmatpush.msrb.mxu0 %v1374_v32  ;;  %v350_v5 = vsub.f32 %v5153_v25, %v7943_v23  ;;  %v863_v32 = vand.u32 4294901760, %v862_v4 }
  0x3d   : > { %856 = vmatmul.f32.gmra.mxu2 %v855_v50  ;;  %1705 = vmatmul.f32.gmra.mxu3 %v5040_v47  ;;  %8487 = vst [vmem:[#allocation12_spill] sm:$0xff] %v5192_v30  ;;  %v7941_v14 = vand.u32 4294901760, %v5188_v20  ;;  %v167_v47 = vld [vmem:[%s4940_s10 + $0xa0] sm:$0xff] }
  0x3e   : > { %2653 = vmatpush.msrb.mxu3 %v4859_v9  ;;  %4031 = vmatpush.msrb.mxu1 %v4859_v9  ;;  %v152_v9 = vld [vmem:[%s4940_s10 + $0x28] sm:$0xff]  ;;  %v351_v53 = vand.u32 4294901760, %v350_v5  ;;  %v8493_v5 = vand.u32 4294901760, %v4967_v49  ;;  %8534 = vst [vmem:[#allocation48_spill] sm:$0xff] %v5585_v44  ;;  %v5591_v8 = vand.u32 4294901760, %v167_v47 }
  0x3f   : > { %1449 = vmatmul.f32.gmra.mxu1 %v5064_v12  ;;  %1974 = vmatpush.msrb.mxu2 %v4909_v28  ;;  %v5204_v15 = vand.u32 4294901760, %v152_v9  ;;  %v217_v28 = vld [vmem:[%s4940_s10 + $0x230] sm:$0xff] }
  0x40   : > { %344 = vmatmul.f32.gmra.mxu0 %v343_v3  ;;  %2655 = vmatpush.msrb.mxu3 %v4861_v10  ;;  %v5229_v16 = vand.u32 4294901760, %v217_v28  ;;  %v153_v3 = vld [vmem:[%s4940_s10 + $0x30] sm:$0xff]  ;;  %8536 = vst [vmem:[#allocation50_spill] sm:$0xff] %v5591_v8 }
  0x41   : > { %4033 = vmatpush.msrb.mxu1 %v4861_v10  ;;  %3470 = vmatpush.msrb.mxu0 %v1380_v39  ;;  %v870_v10 = vsub.f32 %v5177_v19, %v7931_v51  ;;  %v358_v39 = vsub.f32 %v5188_v20, %v7941_v14  ;;  %v5225_v22 = vsub.f32 %v152_v9, %v5204_v15 }
  0x42   : > { %2657 = vmatpush.msrb.mxu3 %v4863_v11  ;;  %1977 = vmatpush.msrb.mxu2 %v4933_v36  ;;  %v8490_v36 = vand.u32 4294901760, %v4946_v40  ;;  %8491 = vst [vmem:[#allocation14_spill] sm:$0xff] %v5229_v16 }
  0x43   : > { %4035 = vmatpush.msrb.mxu1 %v4863_v11  ;;  %3474 = vmatpush.msrb.mxu0 %v8488_v34  ;;  %v5213_v11 = vsub.f32 %v216_v26, %v5192_v30  ;;  %v871_v50 = vand.u32 4294901760, %v870_v10  ;;  %v7940_v4 = vand.u32 4294901760, %v5225_v22  ;;  %v5240_v26 = vand.u32 4294901760, %v153_v3 }
  0x44   : > { %2659 = vmatpush.msrb.mxu3 %v4885_v18  ;;  %1980 = vmatpush.msrb.mxu2 %v4946_v40  ;;  %v8492_v40 = vand.u32 4294901760, %v4959_v46 }
  0x45   : > { %864 = vmatmul.f32.gmra.mxu2 %v863_v32  ;;  %1709 = vmatmul.f32.gmra.mxu3 %v5093_v0  ;;  %8489 = vst [vmem:[#allocation13_spill] sm:$0xff] %v5213_v11  ;;  %v218_v32 = vld [vmem:[%s4940_s10 + $0x238] sm:$0xff]  ;;  %v5262_v9 = vsub.f32 %v153_v3, %v5240_v26  ;;  %v219_v3 = vld [vmem:[%s4940_s10 + $0x240] sm:$0xff] }
  0x46   : > { %4037 = vmatpush.msrb.mxu1 %v4885_v18  ;;  %2661 = vmatpush.msrb.mxu3 %v4897_v24  ;;  %v7930_v18 = vand.u32 4294901760, %v5213_v11  ;;  %v5266_v10 = vand.u32 4294901760, %v218_v32 }
  0x47   : > { %1453 = vmatmul.f32.gmra.mxu1 %v5106_v7  ;;  %3478 = vmatpush.msrb.mxu0 %v8490_v36  ;;  %v7938_v36 = vand.u32 4294901760, %v5262_v9 }
  0x48   : > { %352 = vmatmul.f32.gmra.mxu0 %v351_v53  ;;  %4039 = vmatpush.msrb.mxu1 %v4897_v24  ;;  %v359_v24 = vand.u32 4294901760, %v358_v39  ;;  %8496 = vst [vmem:[#allocation16_spill] sm:$0xff] %v5266_v10 }
  0x49   : > { %1983 = vmatpush.msrb.mxu2 %v4959_v46  ;;  %2663 = vmatpush.msrb.mxu3 %v4906_v27  ;;  %v5250_v46 = vsub.f32 %v217_v28, %v5229_v16  ;;  %v154_v28 = vld [vmem:[%s4940_s10 + $0x38] sm:$0xff] }
  0x4a   : > { %3482 = vmatpush.msrb.mxu0 %v8492_v40  ;;  %4041 = vmatpush.msrb.mxu1 %v4906_v27  ;;  %v878_v27 = vsub.f32 %v5213_v11, %v7930_v18  ;;  %v5277_v39 = vand.u32 4294901760, %v154_v28 }
  0x4b   : > { %1986 = vmatpush.msrb.mxu2 %v4967_v49  ;;  %2665 = vmatpush.msrb.mxu3 %v4930_v35  ;;  %8494 = vst [vmem:[#allocation15_spill] sm:$0xff] %v5250_v46  ;;  %v366_v49 = vsub.f32 %v5225_v22, %v7940_v4  ;;  %v7929_v53 = vand.u32 4294901760, %v5250_v46 }
  0x4c   : > { %3486 = vmatpush.msrb.mxu0 %v8493_v5  ;;  %4043 = vmatpush.msrb.mxu1 %v4930_v35  ;;  %v8495_v35 = vand.u32 4294901760, %v4990_v60  ;;  %v879_v34 = vand.u32 4294901760, %v878_v27  ;;  %v5299_v40 = vsub.f32 %v154_v28, %v5277_v39  ;;  %v5303_v27 = vand.u32 4294901760, %v219_v3  ;;  %v220_v28 = vld [vmem:[%s4940_s10 + $0x248] sm:$0xff] }
  0x4d   : > { %872 = vmatmul.f32.gmra.mxu2 %v871_v50  ;;  %1713 = vmatmul.f32.gmra.mxu3 %v5126_v1  ;;  %v8498_v50 = vand.u32 4294901760, %v5022_v29 }
  0x4e   : > { %1989 = vmatpush.msrb.mxu2 %v4990_v60  ;;  %2667 = vmatpush.msrb.mxu3 %v4948_v41  ;;  %v8497_v60 = vand.u32 4294901760, %v5004_v2  ;;  %8501 = vst [vmem:[#allocation18_spill] sm:$0xff] %v5303_v27 }
  0x4f   : > { %1457 = vmatmul.f32.gmra.mxu1 %v5133_v48  ;;  %3490 = vmatpush.msrb.mxu0 %v8495_v35  ;;  %v7937_v35 = vand.u32 4294901760, %v5299_v40 }
  0x50   : > { %360 = vmatmul.f32.gmra.mxu0 %v359_v24  ;;  %4045 = vmatpush.msrb.mxu1 %v4948_v41  ;;  %v367_v41 = vand.u32 4294901760, %v366_v49 }
  0x51   : > { %1992 = vmatpush.msrb.mxu2 %v5004_v2  ;;  %2669 = vmatpush.msrb.mxu3 %v4973_v52  ;;  %v5287_v2 = vsub.f32 %v218_v32, %v5266_v10  ;;  %v155_v32 = vld [vmem:[%s4940_s10 + $0x40] sm:$0xff] }
  0x52   : > { %3494 = vmatpush.msrb.mxu0 %v8497_v60  ;;  %4047 = vmatpush.msrb.mxu1 %v4973_v52  ;;  %v886_v52 = vsub.f32 %v5250_v46, %v7929_v53  ;;  %v5314_v49 = vand.u32 4294901760, %v155_v32 }
  0x53   : > { %1995 = vmatpush.msrb.mxu2 %v5022_v29  ;;  %2671 = vmatpush.msrb.mxu3 %v4987_v59  ;;  %8499 = vst [vmem:[#allocation17_spill] sm:$0xff] %v5287_v2  ;;  %v374_v29 = vsub.f32 %v5262_v9, %v7938_v36  ;;  %v7928_v5 = vand.u32 4294901760, %v5287_v2 }
  0x54   : > { %3498 = vmatpush.msrb.mxu0 %v8498_v50  ;;  %4049 = vmatpush.msrb.mxu1 %v4987_v59  ;;  %v8500_v59 = vand.u32 4294901760, %v5030_v33  ;;  %v887_v24 = vand.u32 4294901760, %v886_v52  ;;  %v5335_v50 = vand.u32 4294901760, %v220_v28  ;;  %v156_v52 = vld [vmem:[%s4940_s10 + $0x48] sm:$0xff] }
  0x55   : > { %880 = vmatmul.f32.gmra.mxu2 %v879_v34  ;;  %1717 = vmatmul.f32.gmra.mxu3 %v5156_v38  ;;  %v8503_v34 = vand.u32 4294901760, %v5061_v63 }
  0x56   : > { %1998 = vmatpush.msrb.mxu2 %v5030_v33  ;;  %2673 = vmatpush.msrb.mxu3 %v4992_v61  ;;  %v8502_v33 = vand.u32 4294901760, %v5049_v54  ;;  %8505 = vst [vmem:[#allocation20_spill] sm:$0xff] %v5335_v50 }
  0x57   : > { %1461 = vmatmul.f32.gmra.mxu1 %v5167_v55  ;;  %3502 = vmatpush.msrb.mxu0 %v8500_v59 }
  0x58   : > { %368 = vmatmul.f32.gmra.mxu0 %v367_v41  ;;  %4051 = vmatpush.msrb.mxu1 %v4992_v61  ;;  %v375_v61 = vand.u32 4294901760, %v374_v29  ;;  %v5339_v29 = vand.u32 4294901760, %v156_v52 }
  0x59   : > { %2001 = vmatpush.msrb.mxu2 %v5049_v54  ;;  %2675 = vmatpush.msrb.mxu3 %v5018_v17  ;;  %v5324_v54 = vsub.f32 %v219_v3, %v5303_v27 }
  0x5a   : > { %3506 = vmatpush.msrb.mxu0 %v8502_v33  ;;  %4053 = vmatpush.msrb.mxu1 %v5018_v17  ;;  %v894_v17 = vsub.f32 %v5287_v2, %v7928_v5  ;;  %v221_v33 = vld [vmem:[%s4940_s10 + $0x250] sm:$0xff] }
  0x5b   : > { %2004 = vmatpush.msrb.mxu2 %v5061_v63  ;;  %2677 = vmatpush.msrb.mxu3 %v5033_v37  ;;  %8504 = vst [vmem:[#allocation19_spill] sm:$0xff] %v5324_v54  ;;  %v382_v63 = vsub.f32 %v5299_v40, %v7937_v35  ;;  %v7927_v41 = vand.u32 4294901760, %v5324_v54 }
  0x5c   : > { %3510 = vmatpush.msrb.mxu0 %v8503_v34  ;;  %4055 = vmatpush.msrb.mxu1 %v5033_v37  ;;  %v5332_v37 = vsub.f32 %v155_v32, %v5314_v49  ;;  %v895_v60 = vand.u32 4294901760, %v894_v17  ;;  %v5346_v32 = vsub.f32 %v220_v28, %v5335_v50  ;;  %v5354_v34 = vsub.f32 %v156_v52, %v5339_v29 }
  0x5d   : > { %888 = vmatmul.f32.gmra.mxu2 %v887_v24  ;;  %1721 = vmatmul.f32.gmra.mxu3 %v5192_v30  ;;  %v383_v3 = vand.u32 4294901760, %v382_v63  ;;  %v902_v24 = vsub.f32 %v5324_v54, %v7927_v41  ;;  %v157_v41 = vld [vmem:[%s4940_s10 + $0x50] sm:$0xff] }
  0x5e   : > { %v7935_v59 = vand.u32 4294901760, %v5332_v37  ;;  %8506 = vst [vmem:[#allocation21_spill] sm:$0xff] %v5346_v32  ;;  %v7933_v63 = vand.u32 4294901760, %v5346_v32  ;;  %v7936_v5 = vand.u32 4294901760, %v5354_v34  ;;  %v5361_v53 = vand.u32 4294901760, %v157_v41 }
  0x5f   : > { %1465 = vmatmul.f32.gmra.mxu1 %v5204_v15  ;;  %v903_v17 = vand.u32 4294901760, %v902_v24  ;;  %v222_v24 = vld [vmem:[%s4940_s10 + $0x258] sm:$0xff] }
  0x60   : > { %376 = vmatmul.f32.gmra.mxu0 %v375_v61  ;;  %v390_v61 = vsub.f32 %v5332_v37, %v7935_v59  ;;  %v910_v52 = vsub.f32 %v5346_v32, %v7933_v63  ;;  %v5379_v58 = vand.u32 4294901760, %v222_v24  ;;  %v158_v63 = vld [vmem:[%s4940_s10 + $0x58] sm:$0xff] }
  0x61   : > { %v5383_v59 = vand.u32 4294901760, %v158_v63 }
  0x62   : > { %v391_v28 = vand.u32 4294901760, %v390_v61  ;;  %v398_v61 = vsub.f32 %v5354_v34, %v7936_v5  ;;  %v911_v18 = vand.u32 4294901760, %v910_v52  ;;  %8509 = vst [vmem:[#allocation24_spill] sm:$0xff] %v5379_v58  ;;  %v223_v52 = vld [vmem:[%s4940_s10 + $0x260] sm:$0xff] }
  0x63   : > { %v5401_v36 = vand.u32 4294901760, %v223_v52 }
  0x65   : > { %896 = vmatmul.f32.gmra.mxu2 %v895_v60  ;;  %1725 = vmatmul.f32.gmra.mxu3 %v5229_v16  ;;  %v5357_v60 = vand.u32 4294901760, %v221_v33  ;;  %8511 = vst [vmem:[#allocation26_spill] sm:$0xff] %v5401_v36 }
  0x67   : > { %1469 = vmatmul.f32.gmra.mxu1 %v5240_v26  ;;  %8507 = vst [vmem:[#allocation22_spill] sm:$0xff] %v5357_v60 }
  0x68   : > { %384 = vmatmul.f32.gmra.mxu0 %v383_v3  ;;  %v5368_v3 = vsub.f32 %v221_v33, %v5357_v60  ;;  %v399_v33 = vand.u32 4294901760, %v398_v61 }
  0x6a   : > { %8508 = vst [vmem:[#allocation23_spill] sm:$0xff] %v5368_v3  ;;  %v7939_v51 = vand.u32 4294901760, %v5368_v3 }
  0x6d   : > { %904 = vmatmul.f32.gmra.mxu2 %v903_v17  ;;  %1729 = vmatmul.f32.gmra.mxu3 %v5266_v10  ;;  %v5376_v17 = vsub.f32 %v157_v41, %v5361_v53  ;;  %v918_v41 = vsub.f32 %v5368_v3, %v7939_v51  ;;  %v159_v51 = vld [vmem:[%s4940_s10 + $0x60] sm:$0xff] }
  0x6e   : > { %v5405_v14 = vand.u32 4294901760, %v159_v51 }
  0x6f   : > { %1473 = vmatmul.f32.gmra.mxu1 %v5277_v39  ;;  %v7942_v6 = vand.u32 4294901760, %v5376_v17  ;;  %v919_v5 = vand.u32 4294901760, %v918_v41  ;;  %v224_v41 = vld [vmem:[%s4940_s10 + $0x268] sm:$0xff] }
  0x70   : > { %392 = vmatmul.f32.gmra.mxu0 %v391_v28  ;;  %v5390_v28 = vsub.f32 %v222_v24, %v5379_v58  ;;  %v5423_v45 = vand.u32 4294901760, %v224_v41 }
  0x71   : > { %v406_v61 = vsub.f32 %v5376_v17, %v7942_v6 }
  0x72   : > { %8510 = vst [vmem:[#allocation25_spill] sm:$0xff] %v5390_v28  ;;  %v7945_v35 = vand.u32 4294901760, %v5390_v28 }
  0x73   : > { %v407_v24 = vand.u32 4294901760, %v406_v61  ;;  %8513 = vst [vmem:[#allocation28_spill] sm:$0xff] %v5423_v45 }
  0x75   : > { %912 = vmatmul.f32.gmra.mxu2 %v911_v18  ;;  %1733 = vmatmul.f32.gmra.mxu3 %v5303_v27  ;;  %v5398_v18 = vsub.f32 %v158_v63, %v5383_v59  ;;  %v926_v63 = vsub.f32 %v5390_v28, %v7945_v35  ;;  %v160_v35 = vld [vmem:[%s4940_s10 + $0x68] sm:$0xff] }
  0x76   : > { %v5427_v28 = vand.u32 4294901760, %v160_v35 }
  0x77   : > { %1477 = vmatmul.f32.gmra.mxu1 %v5314_v49  ;;  %v7949_v4 = vand.u32 4294901760, %v5398_v18  ;;  %v927_v6 = vand.u32 4294901760, %v926_v63  ;;  %v225_v63 = vld [vmem:[%s4940_s10 + $0x270] sm:$0xff] }
  0x78   : > { %400 = vmatmul.f32.gmra.mxu0 %v399_v33  ;;  %v5412_v33 = vsub.f32 %v223_v52, %v5401_v36  ;;  %v5445_v3 = vand.u32 4294901760, %v225_v63 }
  0x79   : > { %v414_v61 = vsub.f32 %v5398_v18, %v7949_v4 }
  0x7a   : > { %8512 = vst [vmem:[#allocation27_spill] sm:$0xff] %v5412_v33  ;;  %v7954_v23 = vand.u32 4294901760, %v5412_v33 }
  0x7b   : > { %v415_v52 = vand.u32 4294901760, %v414_v61  ;;  %8515 = vst [vmem:[#allocation30_spill] sm:$0xff] %v5445_v3 }
  0x7d   : > { %920 = vmatmul.f32.gmra.mxu2 %v919_v5  ;;  %1737 = vmatmul.f32.gmra.mxu3 %v5335_v50  ;;  %v5420_v5 = vsub.f32 %v159_v51, %v5405_v14  ;;  %v934_v51 = vsub.f32 %v5412_v33, %v7954_v23  ;;  %v161_v23 = vld [vmem:[%s4940_s10 + $0x70] sm:$0xff] }
  0x7e   : > { %v5449_v50 = vand.u32 4294901760, %v161_v23 }
  0x7f   : > { %1481 = vmatmul.f32.gmra.mxu1 %v5339_v29  ;;  %v7959_v13 = vand.u32 4294901760, %v5420_v5  ;;  %v935_v4 = vand.u32 4294901760, %v934_v51  ;;  %v226_v51 = vld [vmem:[%s4940_s10 + $0x278] sm:$0xff] }
  0x80   : > { %408 = vmatmul.f32.gmra.mxu0 %v407_v24  ;;  %v5434_v24 = vsub.f32 %v224_v41, %v5423_v45  ;;  %v5467_v32 = vand.u32 4294901760, %v226_v51 }
  0x81   : > { %v422_v61 = vsub.f32 %v5420_v5, %v7959_v13 }
  0x82   : > { %8514 = vst [vmem:[#allocation29_spill] sm:$0xff] %v5434_v24 }
  0x83   : > { %v423_v41 = vand.u32 4294901760, %v422_v61  ;;  %8517 = vst [vmem:[#allocation32_spill] sm:$0xff] %v5467_v32 }
  0x85   : > { %928 = vmatmul.f32.gmra.mxu2 %v927_v6  ;;  %1741 = vmatmul.f32.gmra.mxu3 %v5357_v60  ;;  %v5442_v6 = vsub.f32 %v160_v35, %v5427_v28  ;;  %v7964_v60 = vand.u32 4294901760, %v5434_v24 }
  0x87   : > { %1485 = vmatmul.f32.gmra.mxu1 %v5361_v53  ;;  %v7969_v33 = vand.u32 4294901760, %v5442_v6  ;;  %v942_v35 = vsub.f32 %v5434_v24, %v7964_v60  ;;  %v162_v60 = vld [vmem:[%s4940_s10 + $0x78] sm:$0xff] }
  0x88   : > { %416 = vmatmul.f32.gmra.mxu0 %v415_v52  ;;  %v5456_v52 = vsub.f32 %v225_v63, %v5445_v3  ;;  %v5471_v27 = vand.u32 4294901760, %v162_v60 }
  0x89   : > { %v430_v61 = vsub.f32 %v5442_v6, %v7969_v33  ;;  %v943_v13 = vand.u32 4294901760, %v942_v35  ;;  %v227_v35 = vld [vmem:[%s4940_s10 + $0x280] sm:$0xff] }
  0x8a   : > { %8516 = vst [vmem:[#allocation31_spill] sm:$0xff] %v5456_v52  ;;  %v5489_v54 = vand.u32 4294901760, %v227_v35 }
  0x8b   : > { %v431_v63 = vand.u32 4294901760, %v430_v61 }
  0x8c   : > { %8519 = vst [vmem:[#allocation34_spill] sm:$0xff] %v5489_v54 }
  0x8d   : > { %936 = vmatmul.f32.gmra.mxu2 %v935_v4  ;;  %1745 = vmatmul.f32.gmra.mxu3 %v5379_v58  ;;  %v5464_v4 = vsub.f32 %v161_v23, %v5449_v50  ;;  %v7974_v58 = vand.u32 4294901760, %v5456_v52 }
  0x8f   : > { %1489 = vmatmul.f32.gmra.mxu1 %v5383_v59  ;;  %v7979_v24 = vand.u32 4294901760, %v5464_v4  ;;  %v950_v23 = vsub.f32 %v5456_v52, %v7974_v58  ;;  %v163_v58 = vld [vmem:[%s4940_s10 + $0x80] sm:$0xff] }
  0x90   : > { %424 = vmatmul.f32.gmra.mxu0 %v423_v41  ;;  %v5478_v41 = vsub.f32 %v226_v51, %v5467_v32  ;;  %v5493_v10 = vand.u32 4294901760, %v163_v58 }
  0x91   : > { %v438_v61 = vsub.f32 %v5464_v4, %v7979_v24  ;;  %v951_v33 = vand.u32 4294901760, %v950_v23  ;;  %v228_v23 = vld [vmem:[%s4940_s10 + $0x288] sm:$0xff] }
  0x92   : > { %8518 = vst [vmem:[#allocation33_spill] sm:$0xff] %v5478_v41  ;;  %v5511_v2 = vand.u32 4294901760, %v228_v23 }
  0x93   : > { %v439_v51 = vand.u32 4294901760, %v438_v61 }
  0x94   : > { %8521 = vst [vmem:[#allocation36_spill] sm:$0xff] %v5511_v2 }
  0x95   : > { %944 = vmatmul.f32.gmra.mxu2 %v943_v13  ;;  %1749 = vmatmul.f32.gmra.mxu3 %v5401_v36  ;;  %v5486_v13 = vsub.f32 %v162_v60, %v5471_v27  ;;  %v7984_v36 = vand.u32 4294901760, %v5478_v41 }
  0x97   : > { %1493 = vmatmul.f32.gmra.mxu1 %v5405_v14  ;;  %v7989_v52 = vand.u32 4294901760, %v5486_v13  ;;  %v958_v60 = vsub.f32 %v5478_v41, %v7984_v36  ;;  %v164_v36 = vld [vmem:[%s4940_s10 + $0x88] sm:$0xff] }
  0x98   : > { %432 = vmatmul.f32.gmra.mxu0 %v431_v63  ;;  %v5500_v63 = vsub.f32 %v227_v35, %v5489_v54  ;;  %v5515_v16 = vand.u32 4294901760, %v164_v36 }
  0x99   : > { %v446_v61 = vsub.f32 %v5486_v13, %v7989_v52  ;;  %v959_v24 = vand.u32 4294901760, %v958_v60  ;;  %v229_v60 = vld [vmem:[%s4940_s10 + $0x290] sm:$0xff] }
  0x9a   : > { %8520 = vst [vmem:[#allocation35_spill] sm:$0xff] %v5500_v63  ;;  %v5533_v46 = vand.u32 4294901760, %v229_v60 }
  0x9b   : > { %v447_v35 = vand.u32 4294901760, %v446_v61 }
  0x9c   : > { %8523 = vst [vmem:[#allocation38_spill] sm:$0xff] %v5533_v46 }
  0x9d   : > { %952 = vmatmul.f32.gmra.mxu2 %v951_v33  ;;  %1753 = vmatmul.f32.gmra.mxu3 %v5423_v45  ;;  %v5508_v33 = vsub.f32 %v163_v58, %v5493_v10  ;;  %v7994_v45 = vand.u32 4294901760, %v5500_v63 }
  0x9f   : > { %1497 = vmatmul.f32.gmra.mxu1 %v5427_v28  ;;  %v7999_v41 = vand.u32 4294901760, %v5508_v33  ;;  %v966_v58 = vsub.f32 %v5500_v63, %v7994_v45  ;;  %v165_v45 = vld [vmem:[%s4940_s10 + $0x90] sm:$0xff] }
  0xa0   : > { %440 = vmatmul.f32.gmra.mxu0 %v439_v51  ;;  %v5522_v51 = vsub.f32 %v228_v23, %v5511_v2  ;;  %v5537_v30 = vand.u32 4294901760, %v165_v45 }
  0xa1   : > { %v454_v61 = vsub.f32 %v5508_v33, %v7999_v41  ;;  %v967_v52 = vand.u32 4294901760, %v966_v58  ;;  %v5546_v58 = vsub.f32 %v229_v60, %v5533_v46  ;;  %v230_v41 = vld [vmem:[%s4940_s10 + $0x298] sm:$0xff] }
  0xa2   : > { %8522 = vst [vmem:[#allocation37_spill] sm:$0xff] %v5522_v51  ;;  %v166_v60 = vld [vmem:[%s4940_s10 + $0x98] sm:$0xff] }
  0xa3   : > { %v455_v23 = vand.u32 4294901760, %v454_v61  ;;  %8524 = vst [vmem:[#allocation39_spill] sm:$0xff] %v5537_v30 }
  0xa4   : > { %8525 = vst [vmem:[#allocation40_spill] sm:$0xff] %v5546_v58 }
  0xa5   : > { %960 = vmatmul.f32.gmra.mxu2 %v959_v24  ;;  %1757 = vmatmul.f32.gmra.mxu3 %v5445_v3  ;;  %v5530_v24 = vsub.f32 %v164_v36, %v5515_v16  ;;  %v8004_v3 = vand.u32 4294901760, %v5522_v51 }
  0xa7   : > { %1501 = vmatmul.f32.gmra.mxu1 %v5449_v50  ;;  %v8013_v63 = vand.u32 4294901760, %v5530_v24  ;;  %v974_v36 = vsub.f32 %v5522_v51, %v8004_v3  ;;  %v8020_v3 = vand.u32 4294901760, %v5546_v58  ;;  %v5557_v51 = vand.u32 4294901760, %v230_v41 }
  0xa8   : > { %448 = vmatmul.f32.gmra.mxu0 %v447_v35 }
  0xa9   : > { %v975_v11 = vand.u32 4294901760, %v974_v36  ;;  %8527 = vst [vmem:[#allocation42_spill] sm:$0xff] %v5557_v51 }
  0xad   : > { %968 = vmatmul.f32.gmra.mxu2 %v967_v52  ;;  %1761 = vmatmul.f32.gmra.mxu3 %v5467_v32  ;;  %v5543_v35 = vpop.f32.mrf.mxu0  ;;  %v462_v52 = vsub.f32 %v5530_v24, %v8013_v63  ;;  %v5554_v32 = vsub.f32 %v165_v45, %v5537_v30  ;;  %v982_v45 = vsub.f32 %v5546_v58, %v8020_v3 }
  0xae   : > { %v5572_v63 = vsub.f32 %v230_v41, %v5557_v51 }
  0xaf   : > { %1505 = vmatmul.f32.gmra.mxu1 %v5471_v27  ;;  %8526 = vst [vmem:[#allocation41_spill] sm:$0xff] %v5554_v32  ;;  %v463_v19 = vand.u32 4294901760, %v462_v52  ;;  %v983_v58 = vand.u32 4294901760, %v982_v45  ;;  %v232_v45 = vld [vmem:[%s4940_s10 + $0x2a8] sm:$0xff] }
  0xb0   : > { %v841_v61 = vpop.f32.mrf.mxu2  ;;  %456 = vmatmul.f32.gmra.mxu0 %v455_v23  ;;  %v5563_v23 = vand.u32 4294901760, %v166_v60  ;;  %8530 = vst [vmem:[#allocation45_spill] sm:$0xff] %v5572_v63  ;;  %v8035_v41 = vand.u32 4294901760, %v5572_v63 }
  0xb2   : > { %8528 = vst [vmem:[#allocation43_spill] sm:$0xff] %v5563_v23 }
  0xb4   : > { %v5560_v38 = vpop.f32.mrf.mxu1 }
  0xb5   : > { %976 = vmatmul.f32.gmra.mxu2 %v975_v11  ;;  %1765 = vmatmul.f32.gmra.mxu3 %v5489_v54  ;;  %v5569_v36 = vpop.f32.mrf.mxu0  ;;  %v8531_v11 = vand.u32 4294901760, %v5554_v32  ;;  %v5580_v54 = vsub.f32 %v166_v60, %v5563_v23  ;;  %v5600_v60 = vsub.f32 %v231_v21, %v5585_v44 }
  0xb6   : > { %8529 = vst [vmem:[#allocation44_spill] sm:$0xff] %v5569_v36 }
  0xb7   : > { %1509 = vmatmul.f32.gmra.mxu1 %v5493_v10  ;;  %v470_v0 = vsub.f32 %v5554_v32, %v8531_v11  ;;  %8532 = vst [vmem:[#allocation46_spill] sm:$0xff] %v5580_v54  ;;  %v8043_v21 = vand.u32 4294901760, %v5600_v60 }
  0xb8   : > { %v849_v52 = vpop.f32.mrf.mxu2  ;;  %v1702_v1 = vpop.f32.mrf.mxu3  ;;  %464 = vmatmul.f32.gmra.mxu0 %v463_v19  ;;  %v8040_v19 = vand.u32 4294901760, %v5580_v54  ;;  %8538 = vst [vmem:[#allocation52_spill] sm:$0xff] %v5600_v60 }
  0xb9   : > { %v5582_v3 = vadd.f32 %v1702_v1, %v841_v61  ;;  %v471_v56 = vand.u32 4294901760, %v470_v0  ;;  %v990_v1 = vsub.f32 %v5572_v63, %v8035_v41 }
  0xbb   : > { %8533 = vst [vmem:[#allocation47_spill] sm:$0xff] %v5582_v3  ;;  %v991_v63 = vand.u32 4294901760, %v990_v1  ;;  %v5613_v3 = vand.u32 4294901760, %v232_v45 }
  0xbc   : > { %v5588_v31 = vpop.f32.mrf.mxu1 }
  0xbd   : > { %8535 = vst [vmem:[#allocation49_spill] sm:$0xff] %v5588_v31  ;;  %984 = vmatmul.f32.gmra.mxu2 %v983_v58  ;;  %1769 = vmatmul.f32.gmra.mxu3 %v5511_v2  ;;  %v5597_v61 = vpop.f32.mrf.mxu0  ;;  %v478_v58 = vsub.f32 %v5580_v54, %v8040_v19  ;;  %v5608_v2 = vsub.f32 %v167_v47, %v5591_v8 }
  0xbe   : > { %8537 = vst [vmem:[#allocation51_spill] sm:$0xff] %v5597_v61  ;;  %v168_v61 = vld [vmem:[%s4940_s10 + $0xa8] sm:$0xff]  ;;  %v998_v47 = vsub.f32 %v5600_v60, %v8043_v21  ;;  %v5628_v1 = vsub.f32 %v232_v45, %v5613_v3 }
  0xbf   : > { %1513 = vmatmul.f32.gmra.mxu1 %v5515_v16  ;;  %8539 = vst [vmem:[#allocation53_spill] sm:$0xff] %v5608_v2  ;;  %v479_v31 = vand.u32 4294901760, %v478_v58  ;;  %v5619_v36 = vand.u32 4294901760, %v168_v61 }
  0xc0   : > { %v857_v0 = vpop.f32.mrf.mxu2  ;;  %v1706_v11 = vpop.f32.mrf.mxu3  ;;  %472 = vmatmul.f32.gmra.mxu0 %v471_v56  ;;  %8541 = vst [vmem:[#allocation55_spill] sm:$0xff] %v5613_v3  ;;  %v8050_v56 = vand.u32 4294901760, %v5608_v2  ;;  %v999_v60 = vand.u32 4294901760, %v998_v47  ;;  %v8053_v45 = vand.u32 4294901760, %v5628_v1  ;;  %v234_v47 = vld [vmem:[%s4940_s10 + $0x2b8] sm:$0xff] }
  0xc1   : > { %v5610_v41 = vadd.f32 %v1706_v11, %v849_v52  ;;  %8543 = vst [vmem:[#allocation57_spill] sm:$0xff] %v5619_v36  ;;  %v233_v11 = vld [vmem:[%s4940_s10 + $0x2b0] sm:$0xff] }
  0xc2   : > { %8545 = vst [vmem:[#allocation59_spill] sm:$0xff] %v5628_v1 }
  0xc3   : > { %8540 = vst [vmem:[#allocation54_spill] sm:$0xff] %v5610_v41  ;;  %v5641_v41 = vand.u32 4294901760, %v233_v11 }
  0xc4   : > { %v5616_v32 = vpop.f32.mrf.mxu1 }
  0xc5   : > { %8542 = vst [vmem:[#allocation56_spill] sm:$0xff] %v5616_v32  ;;  %992 = vmatmul.f32.gmra.mxu2 %v991_v63  ;;  %1773 = vmatmul.f32.gmra.mxu3 %v5533_v46  ;;  %v5625_v52 = vpop.f32.mrf.mxu0  ;;  %v486_v63 = vsub.f32 %v5608_v2, %v8050_v56  ;;  %v5636_v46 = vsub.f32 %v168_v61, %v5619_v36 }
  0xc6   : > { %8544 = vst [vmem:[#allocation58_spill] sm:$0xff] %v5625_v52  ;;  %v169_v52 = vld [vmem:[%s4940_s10 + $0xb0] sm:$0xff] }
  0xc7   : > { %1517 = vmatmul.f32.gmra.mxu1 %v5537_v30  ;;  %8546 = vst [vmem:[#allocation60_spill] sm:$0xff] %v5636_v46  ;;  %v487_v32 = vand.u32 4294901760, %v486_v63  ;;  %v5647_v30 = vand.u32 4294901760, %v169_v52 }
  0xc8   : > { %v865_v58 = vpop.f32.mrf.mxu2  ;;  %v1710_v19 = vpop.f32.mrf.mxu3  ;;  %480 = vmatmul.f32.gmra.mxu0 %v479_v31  ;;  %8548 = vst [vmem:[#allocation62_spill] sm:$0xff] %v5641_v41  ;;  %v8060_v31 = vand.u32 4294901760, %v5636_v46 }
  0xc9   : > { %v5638_v21 = vadd.f32 %v1710_v19, %v857_v0  ;;  %8550 = vst [vmem:[#allocation64_spill] sm:$0xff] %v5647_v30  ;;  %v1006_v19 = vsub.f32 %v5628_v1, %v8053_v45  ;;  %v5656_v0 = vsub.f32 %v233_v11, %v5641_v41 }
  0xcb   : > { %8547 = vst [vmem:[#allocation61_spill] sm:$0xff] %v5638_v21  ;;  %v1007_v1 = vand.u32 4294901760, %v1006_v19  ;;  %v8063_v11 = vand.u32 4294901760, %v5656_v0  ;;  %v5669_v21 = vand.u32 4294901760, %v234_v47  ;;  %v235_v19 = vld [vmem:[%s4940_s10 + $0x2c0] sm:$0xff] }
  0xcc   : > { %v5644_v54 = vpop.f32.mrf.mxu1  ;;  %8552 = vst [vmem:[#allocation66_spill] sm:$0xff] %v5656_v0 }
  0xcd   : > { %8549 = vst [vmem:[#allocation63_spill] sm:$0xff] %v5644_v54  ;;  %1000 = vmatmul.f32.gmra.mxu2 %v999_v60  ;;  %1777 = vmatmul.f32.gmra.mxu3 %v5557_v51  ;;  %v5653_v61 = vpop.f32.mrf.mxu0  ;;  %v494_v60 = vsub.f32 %v5636_v46, %v8060_v31  ;;  %v5664_v51 = vsub.f32 %v169_v52, %v5647_v30 }
  0xce   : > { %8551 = vst [vmem:[#allocation65_spill] sm:$0xff] %v5653_v61  ;;  %v170_v61 = vld [vmem:[%s4940_s10 + $0xb8] sm:$0xff] }
  0xcf   : > { %1521 = vmatmul.f32.gmra.mxu1 %v5563_v23  ;;  %8553 = vst [vmem:[#allocation67_spill] sm:$0xff] %v5664_v51  ;;  %v495_v54 = vand.u32 4294901760, %v494_v60  ;;  %v5675_v23 = vand.u32 4294901760, %v170_v61 }
  0xd0   : > { %v873_v63 = vpop.f32.mrf.mxu2  ;;  %v1714_v56 = vpop.f32.mrf.mxu3  ;;  %488 = vmatmul.f32.gmra.mxu0 %v487_v32  ;;  %8555 = vst [vmem:[#allocation69_spill] sm:$0xff] %v5669_v21  ;;  %v8070_v32 = vand.u32 4294901760, %v5664_v51 }
  0xd1   : > { %v5666_v45 = vadd.f32 %v1714_v56, %v865_v58  ;;  %8557 = vst [vmem:[#allocation71_spill] sm:$0xff] %v5675_v23  ;;  %v1014_v56 = vsub.f32 %v5656_v0, %v8063_v11  ;;  %v5684_v58 = vsub.f32 %v234_v47, %v5669_v21 }
  0xd3   : > { %8554 = vst [vmem:[#allocation68_spill] sm:$0xff] %v5666_v45  ;;  %v1015_v0 = vand.u32 4294901760, %v1014_v56  ;;  %v8073_v47 = vand.u32 4294901760, %v5684_v58  ;;  %v5697_v45 = vand.u32 4294901760, %v235_v19  ;;  %v236_v56 = vld [vmem:[%s4940_s10 + $0x2c8] sm:$0xff] }
  0xd4   : > { %v5672_v2 = vpop.f32.mrf.mxu1  ;;  %8559 = vst [vmem:[#allocation73_spill] sm:$0xff] %v5684_v58 }
  0xd5   : > { %8556 = vst [vmem:[#allocation70_spill] sm:$0xff] %v5672_v2  ;;  %1008 = vmatmul.f32.gmra.mxu2 %v1007_v1  ;;  %1781 = vmatmul.f32.gmra.mxu3 %v5585_v44  ;;  %v5681_v52 = vpop.f32.mrf.mxu0  ;;  %v502_v1 = vsub.f32 %v5664_v51, %v8070_v32  ;;  %v5692_v44 = vsub.f32 %v170_v61, %v5675_v23 }
  0xd6   : > { %8558 = vst [vmem:[#allocation72_spill] sm:$0xff] %v5681_v52  ;;  %v171_v52 = vld [vmem:[%s4940_s10 + $0xc0] sm:$0xff] }
  0xd7   : > { %1525 = vmatmul.f32.gmra.mxu1 %v5591_v8  ;;  %8560 = vst [vmem:[#allocation74_spill] sm:$0xff] %v5692_v44  ;;  %v503_v2 = vand.u32 4294901760, %v502_v1  ;;  %v5703_v8 = vand.u32 4294901760, %v171_v52 }
  0xd8   : > { %v881_v60 = vpop.f32.mrf.mxu2  ;;  %v1718_v31 = vpop.f32.mrf.mxu3  ;;  %496 = vmatmul.f32.gmra.mxu0 %v495_v54  ;;  %8562 = vst [vmem:[#allocation76_spill] sm:$0xff] %v5697_v45  ;;  %v8080_v54 = vand.u32 4294901760, %v5692_v44 }
  0xd9   : > { %v5694_v11 = vadd.f32 %v1718_v31, %v873_v63  ;;  %8564 = vst [vmem:[#allocation78_spill] sm:$0xff] %v5703_v8  ;;  %v1022_v31 = vsub.f32 %v5684_v58, %v8073_v47  ;;  %v5712_v63 = vsub.f32 %v235_v19, %v5697_v45 }
  0xdb   : > { %8561 = vst [vmem:[#allocation75_spill] sm:$0xff] %v5694_v11  ;;  %v1023_v58 = vand.u32 4294901760, %v1022_v31  ;;  %v8083_v19 = vand.u32 4294901760, %v5712_v63  ;;  %v5725_v11 = vand.u32 4294901760, %v236_v56  ;;  %v237_v31 = vld [vmem:[%s4940_s10 + $0x2d0] sm:$0xff] }
  0xdc   : > { %v5700_v46 = vpop.f32.mrf.mxu1  ;;  %8566 = vst [vmem:[#allocation80_spill] sm:$0xff] %v5712_v63 }
  0xdd   : > { %8563 = vst [vmem:[#allocation77_spill] sm:$0xff] %v5700_v46  ;;  %1016 = vmatmul.f32.gmra.mxu2 %v1015_v0  ;;  %1785 = vmatmul.f32.gmra.mxu3 %v5613_v3  ;;  %v5709_v61 = vpop.f32.mrf.mxu0  ;;  %v510_v0 = vsub.f32 %v5692_v44, %v8080_v54  ;;  %v5720_v3 = vsub.f32 %v171_v52, %v5703_v8 }
  0xde   : > { %8565 = vst [vmem:[#allocation79_spill] sm:$0xff] %v5709_v61  ;;  %v172_v61 = vld [vmem:[%s4940_s10 + $0xc8] sm:$0xff] }
  0xdf   : > { %1529 = vmatmul.f32.gmra.mxu1 %v5619_v36  ;;  %8567 = vst [vmem:[#allocation81_spill] sm:$0xff] %v5720_v3  ;;  %v511_v46 = vand.u32 4294901760, %v510_v0  ;;  %v5731_v36 = vand.u32 4294901760, %v172_v61 }
  0xe0   : > { %v889_v1 = vpop.f32.mrf.mxu2  ;;  %v1722_v32 = vpop.f32.mrf.mxu3  ;;  %504 = vmatmul.f32.gmra.mxu0 %v503_v2  ;;  %8569 = vst [vmem:[#allocation83_spill] sm:$0xff] %v5725_v11  ;;  %v8090_v2 = vand.u32 4294901760, %v5720_v3 }
  0xe1   : > { %v5722_v47 = vadd.f32 %v1722_v32, %v881_v60  ;;  %8571 = vst [vmem:[#allocation85_spill] sm:$0xff] %v5731_v36  ;;  %v1030_v32 = vsub.f32 %v5712_v63, %v8083_v19  ;;  %v5740_v60 = vsub.f32 %v236_v56, %v5725_v11 }
  0xe3   : > { %8568 = vst [vmem:[#allocation82_spill] sm:$0xff] %v5722_v47  ;;  %v1031_v63 = vand.u32 4294901760, %v1030_v32  ;;  %v8093_v56 = vand.u32 4294901760, %v5740_v60  ;;  %v5753_v47 = vand.u32 4294901760, %v237_v31  ;;  %v238_v32 = vld [vmem:[%s4940_s10 + $0x2d8] sm:$0xff] }
  0xe4   : > { %v5728_v51 = vpop.f32.mrf.mxu1  ;;  %8573 = vst [vmem:[#allocation87_spill] sm:$0xff] %v5740_v60 }
  0xe5   : > { %8570 = vst [vmem:[#allocation84_spill] sm:$0xff] %v5728_v51  ;;  %1024 = vmatmul.f32.gmra.mxu2 %v1023_v58  ;;  %1789 = vmatmul.f32.gmra.mxu3 %v5641_v41  ;;  %v5737_v52 = vpop.f32.mrf.mxu0  ;;  %v518_v58 = vsub.f32 %v5720_v3, %v8090_v2  ;;  %v5748_v41 = vsub.f32 %v172_v61, %v5731_v36 }
  0xe6   : > { %8572 = vst [vmem:[#allocation86_spill] sm:$0xff] %v5737_v52  ;;  %v173_v52 = vld [vmem:[%s4940_s10 + $0xd0] sm:$0xff] }
  0xe7   : > { %1533 = vmatmul.f32.gmra.mxu1 %v5647_v30  ;;  %8574 = vst [vmem:[#allocation88_spill] sm:$0xff] %v5748_v41  ;;  %v519_v51 = vand.u32 4294901760, %v518_v58  ;;  %v5759_v30 = vand.u32 4294901760, %v173_v52 }
  0xe8   : > { %v897_v0 = vpop.f32.mrf.mxu2  ;;  %v1726_v54 = vpop.f32.mrf.mxu3  ;;  %512 = vmatmul.f32.gmra.mxu0 %v511_v46  ;;  %8576 = vst [vmem:[#allocation90_spill] sm:$0xff] %v5753_v47  ;;  %v8100_v46 = vand.u32 4294901760, %v5748_v41 }
  0xe9   : > { %v5750_v19 = vadd.f32 %v1726_v54, %v889_v1  ;;  %8578 = vst [vmem:[#allocation92_spill] sm:$0xff] %v5759_v30  ;;  %v1038_v54 = vsub.f32 %v5740_v60, %v8093_v56  ;;  %v5768_v1 = vsub.f32 %v237_v31, %v5753_v47 }
  0xeb   : > { %8575 = vst [vmem:[#allocation89_spill] sm:$0xff] %v5750_v19  ;;  %v1039_v60 = vand.u32 4294901760, %v1038_v54  ;;  %v8103_v31 = vand.u32 4294901760, %v5768_v1  ;;  %v5781_v19 = vand.u32 4294901760, %v238_v32  ;;  %v239_v54 = vld [vmem:[%s4940_s10 + $0x2e0] sm:$0xff] }
  0xec   : > { %v5756_v44 = vpop.f32.mrf.mxu1  ;;  %8580 = vst [vmem:[#allocation94_spill] sm:$0xff] %v5768_v1 }
  0xed   : > { %8577 = vst [vmem:[#allocation91_spill] sm:$0xff] %v5756_v44  ;;  %1032 = vmatmul.f32.gmra.mxu2 %v1031_v63  ;;  %1793 = vmatmul.f32.gmra.mxu3 %v5669_v21  ;;  %v5765_v61 = vpop.f32.mrf.mxu0  ;;  %v526_v63 = vsub.f32 %v5748_v41, %v8100_v46  ;;  %v5776_v21 = vsub.f32 %v173_v52, %v5759_v30 }
  0xee   : > { %8579 = vst [vmem:[#allocation93_spill] sm:$0xff] %v5765_v61  ;;  %v174_v61 = vld [vmem:[%s4940_s10 + $0xd8] sm:$0xff] }
  0xef   : > { %1537 = vmatmul.f32.gmra.mxu1 %v5675_v23  ;;  %8581 = vst [vmem:[#allocation95_spill] sm:$0xff] %v5776_v21  ;;  %v527_v44 = vand.u32 4294901760, %v526_v63  ;;  %v5787_v23 = vand.u32 4294901760, %v174_v61 }
  0xf0   : > { %v905_v58 = vpop.f32.mrf.mxu2  ;;  %v1730_v2 = vpop.f32.mrf.mxu3  ;;  %520 = vmatmul.f32.gmra.mxu0 %v519_v51  ;;  %8583 = vst [vmem:[#allocation97_spill] sm:$0xff] %v5781_v19  ;;  %v8110_v51 = vand.u32 4294901760, %v5776_v21 }
  0xf1   : > { %v5778_v56 = vadd.f32 %v1730_v2, %v897_v0  ;;  %8585 = vst [vmem:[#allocation99_spill] sm:$0xff] %v5787_v23  ;;  %v1046_v2 = vsub.f32 %v5768_v1, %v8103_v31  ;;  %v5796_v0 = vsub.f32 %v238_v32, %v5781_v19 }
  0xf3   : > { %8582 = vst [vmem:[#allocation96_spill] sm:$0xff] %v5778_v56  ;;  %v1047_v1 = vand.u32 4294901760, %v1046_v2  ;;  %v8113_v32 = vand.u32 4294901760, %v5796_v0  ;;  %v5809_v56 = vand.u32 4294901760, %v239_v54  ;;  %v240_v2 = vld [vmem:[%s4940_s10 + $0x2e8] sm:$0xff] }
  0xf4   : > { %v5784_v3 = vpop.f32.mrf.mxu1  ;;  %8587 = vst [vmem:[#allocation101_spill] sm:$0xff] %v5796_v0 }
  0xf5   : > { %8584 = vst [vmem:[#allocation98_spill] sm:$0xff] %v5784_v3  ;;  %1040 = vmatmul.f32.gmra.mxu2 %v1039_v60  ;;  %1797 = vmatmul.f32.gmra.mxu3 %v5697_v45  ;;  %v5793_v52 = vpop.f32.mrf.mxu0  ;;  %v534_v60 = vsub.f32 %v5776_v21, %v8110_v51  ;;  %v5804_v45 = vsub.f32 %v174_v61, %v5787_v23 }
  0xf6   : > { %8586 = vst [vmem:[#allocation100_spill] sm:$0xff] %v5793_v52  ;;  %v175_v52 = vld [vmem:[%s4940_s10 + $0xe0] sm:$0xff] }
  0xf7   : > { %1541 = vmatmul.f32.gmra.mxu1 %v5703_v8  ;;  %8588 = vst [vmem:[#allocation102_spill] sm:$0xff] %v5804_v45  ;;  %v535_v3 = vand.u32 4294901760, %v534_v60  ;;  %v5815_v8 = vand.u32 4294901760, %v175_v52 }
  0xf8   : > { %v913_v63 = vpop.f32.mrf.mxu2  ;;  %v1734_v46 = vpop.f32.mrf.mxu3  ;;  %528 = vmatmul.f32.gmra.mxu0 %v527_v44  ;;  %8590 = vst [vmem:[#allocation104_spill] sm:$0xff] %v5809_v56  ;;  %v8120_v44 = vand.u32 4294901760, %v5804_v45 }
  0xf9   : > { %v5806_v31 = vadd.f32 %v1734_v46, %v905_v58  ;;  %8592 = vst [vmem:[#allocation106_spill] sm:$0xff] %v5815_v8  ;;  %v1054_v46 = vsub.f32 %v5796_v0, %v8113_v32  ;;  %v5824_v58 = vsub.f32 %v239_v54, %v5809_v56 }
  0xfb   : > { %8589 = vst [vmem:[#allocation103_spill] sm:$0xff] %v5806_v31  ;;  %v1055_v0 = vand.u32 4294901760, %v1054_v46  ;;  %v8123_v54 = vand.u32 4294901760, %v5824_v58  ;;  %v5837_v31 = vand.u32 4294901760, %v240_v2  ;;  %v241_v46 = vld [vmem:[%s4940_s10 + $0x2f0] sm:$0xff] }
  0xfc   : > { %v5812_v41 = vpop.f32.mrf.mxu1  ;;  %8594 = vst [vmem:[#allocation108_spill] sm:$0xff] %v5824_v58 }
  0xfd   : > { %8591 = vst [vmem:[#allocation105_spill] sm:$0xff] %v5812_v41  ;;  %1048 = vmatmul.f32.gmra.mxu2 %v1047_v1  ;;  %1801 = vmatmul.f32.gmra.mxu3 %v5725_v11  ;;  %v5821_v61 = vpop.f32.mrf.mxu0  ;;  %v542_v1 = vsub.f32 %v5804_v45, %v8120_v44  ;;  %v5832_v11 = vsub.f32 %v175_v52, %v5815_v8 }
  0xfe   : > { %8593 = vst [vmem:[#allocation107_spill] sm:$0xff] %v5821_v61  ;;  %v176_v61 = vld [vmem:[%s4940_s10 + $0xe8] sm:$0xff] }
  0xff   : > { %1545 = vmatmul.f32.gmra.mxu1 %v5731_v36  ;;  %8595 = vst [vmem:[#allocation109_spill] sm:$0xff] %v5832_v11  ;;  %v543_v41 = vand.u32 4294901760, %v542_v1  ;;  %v5843_v36 = vand.u32 4294901760, %v176_v61 }
 0x100   : > { %v921_v60 = vpop.f32.mrf.mxu2  ;;  %v1738_v51 = vpop.f32.mrf.mxu3  ;;  %536 = vmatmul.f32.gmra.mxu0 %v535_v3  ;;  %8597 = vst [vmem:[#allocation111_spill] sm:$0xff] %v5837_v31  ;;  %v8130_v3 = vand.u32 4294901760, %v5832_v11 }
 0x101   : > { %v5834_v32 = vadd.f32 %v1738_v51, %v913_v63  ;;  %8599 = vst [vmem:[#allocation113_spill] sm:$0xff] %v5843_v36  ;;  %v1062_v51 = vsub.f32 %v5824_v58, %v8123_v54  ;;  %v5852_v63 = vsub.f32 %v240_v2, %v5837_v31 }
 0x103   : > { %8596 = vst [vmem:[#allocation110_spill] sm:$0xff] %v5834_v32  ;;  %v1063_v58 = vand.u32 4294901760, %v1062_v51  ;;  %v8133_v2 = vand.u32 4294901760, %v5852_v63  ;;  %v5865_v32 = vand.u32 4294901760, %v241_v46  ;;  %v242_v51 = vld [vmem:[%s4940_s10 + $0x2f8] sm:$0xff] }
 0x104   : > { %v5840_v21 = vpop.f32.mrf.mxu1  ;;  %8601 = vst [vmem:[#allocation115_spill] sm:$0xff] %v5852_v63 }
 0x105   : > { %8598 = vst [vmem:[#allocation112_spill] sm:$0xff] %v5840_v21  ;;  %1056 = vmatmul.f32.gmra.mxu2 %v1055_v0  ;;  %1805 = vmatmul.f32.gmra.mxu3 %v5753_v47  ;;  %v5849_v52 = vpop.f32.mrf.mxu0  ;;  %v550_v0 = vsub.f32 %v5832_v11, %v8130_v3  ;;  %v5860_v47 = vsub.f32 %v176_v61, %v5843_v36 }
 0x106   : > { %8600 = vst [vmem:[#allocation114_spill] sm:$0xff] %v5849_v52  ;;  %v177_v52 = vld [vmem:[%s4940_s10 + $0xf0] sm:$0xff] }
 0x107   : > { %1549 = vmatmul.f32.gmra.mxu1 %v5759_v30  ;;  %8602 = vst [vmem:[#allocation116_spill] sm:$0xff] %v5860_v47  ;;  %v551_v21 = vand.u32 4294901760, %v550_v0  ;;  %v5871_v30 = vand.u32 4294901760, %v177_v52 }
 0x108   : > { %v929_v1 = vpop.f32.mrf.mxu2  ;;  %v1742_v44 = vpop.f32.mrf.mxu3  ;;  %544 = vmatmul.f32.gmra.mxu0 %v543_v41  ;;  %8604 = vst [vmem:[#allocation118_spill] sm:$0xff] %v5865_v32  ;;  %v8140_v41 = vand.u32 4294901760, %v5860_v47 }
 0x109   : > { %v5862_v54 = vadd.f32 %v1742_v44, %v921_v60  ;;  %8606 = vst [vmem:[#allocation120_spill] sm:$0xff] %v5871_v30  ;;  %v1070_v44 = vsub.f32 %v5852_v63, %v8133_v2  ;;  %v5880_v60 = vsub.f32 %v241_v46, %v5865_v32 }
 0x10b   : > { %8603 = vst [vmem:[#allocation117_spill] sm:$0xff] %v5862_v54  ;;  %v1071_v63 = vand.u32 4294901760, %v1070_v44  ;;  %v8143_v46 = vand.u32 4294901760, %v5880_v60  ;;  %v5893_v54 = vand.u32 4294901760, %v242_v51  ;;  %v243_v44 = vld [vmem:[%s4940_s10 + $0x300] sm:$0xff] }
 0x10c   : > { %v5868_v45 = vpop.f32.mrf.mxu1  ;;  %8608 = vst [vmem:[#allocation122_spill] sm:$0xff] %v5880_v60 }
 0x10d   : > { %8605 = vst [vmem:[#allocation119_spill] sm:$0xff] %v5868_v45  ;;  %1064 = vmatmul.f32.gmra.mxu2 %v1063_v58  ;;  %1809 = vmatmul.f32.gmra.mxu3 %v5781_v19  ;;  %v5877_v61 = vpop.f32.mrf.mxu0  ;;  %v558_v58 = vsub.f32 %v5860_v47, %v8140_v41  ;;  %v5888_v19 = vsub.f32 %v177_v52, %v5871_v30 }
 0x10e   : > { %8607 = vst [vmem:[#allocation121_spill] sm:$0xff] %v5877_v61  ;;  %v178_v61 = vld [vmem:[%s4940_s10 + $0xf8] sm:$0xff] }
 0x10f   : > { %1553 = vmatmul.f32.gmra.mxu1 %v5787_v23  ;;  %8609 = vst [vmem:[#allocation123_spill] sm:$0xff] %v5888_v19  ;;  %v559_v45 = vand.u32 4294901760, %v558_v58  ;;  %v5899_v23 = vand.u32 4294901760, %v178_v61 }
 0x110   : > { %v937_v0 = vpop.f32.mrf.mxu2  ;;  %v1746_v3 = vpop.f32.mrf.mxu3  ;;  %552 = vmatmul.f32.gmra.mxu0 %v551_v21  ;;  %8611 = vst [vmem:[#allocation125_spill] sm:$0xff] %v5893_v54  ;;  %v8150_v21 = vand.u32 4294901760, %v5888_v19 }
 0x111   : > { %v5890_v2 = vadd.f32 %v1746_v3, %v929_v1  ;;  %8613 = vst [vmem:[#allocation127_spill] sm:$0xff] %v5899_v23  ;;  %v1078_v3 = vsub.f32 %v5880_v60, %v8143_v46  ;;  %v5908_v1 = vsub.f32 %v242_v51, %v5893_v54 }
 0x113   : > { %8610 = vst [vmem:[#allocation124_spill] sm:$0xff] %v5890_v2  ;;  %v1079_v60 = vand.u32 4294901760, %v1078_v3  ;;  %v8153_v51 = vand.u32 4294901760, %v5908_v1  ;;  %v5921_v2 = vand.u32 4294901760, %v243_v44  ;;  %v244_v3 = vld [vmem:[%s4940_s10 + $0x308] sm:$0xff] }
 0x114   : > { %v5896_v11 = vpop.f32.mrf.mxu1  ;;  %8615 = vst [vmem:[#allocation129_spill] sm:$0xff] %v5908_v1 }
 0x115   : > { %8612 = vst [vmem:[#allocation126_spill] sm:$0xff] %v5896_v11  ;;  %1072 = vmatmul.f32.gmra.mxu2 %v1071_v63  ;;  %1813 = vmatmul.f32.gmra.mxu3 %v5809_v56  ;;  %v5905_v52 = vpop.f32.mrf.mxu0  ;;  %v566_v63 = vsub.f32 %v5888_v19, %v8150_v21  ;;  %v5916_v56 = vsub.f32 %v178_v61, %v5899_v23 }
 0x116   : > { %8614 = vst [vmem:[#allocation128_spill] sm:$0xff] %v5905_v52  ;;  %v179_v52 = vld [vmem:[%s4940_s10 + $0x100] sm:$0xff] }
 0x117   : > { %1557 = vmatmul.f32.gmra.mxu1 %v5815_v8  ;;  %8616 = vst [vmem:[#allocation130_spill] sm:$0xff] %v5916_v56  ;;  %v567_v11 = vand.u32 4294901760, %v566_v63  ;;  %v5927_v8 = vand.u32 4294901760, %v179_v52 }
 0x118   : > { %v945_v58 = vpop.f32.mrf.mxu2  ;;  %v1750_v41 = vpop.f32.mrf.mxu3  ;;  %560 = vmatmul.f32.gmra.mxu0 %v559_v45  ;;  %8618 = vst [vmem:[#allocation132_spill] sm:$0xff] %v5921_v2  ;;  %v8160_v45 = vand.u32 4294901760, %v5916_v56 }
 0x119   : > { %v5918_v46 = vadd.f32 %v1750_v41, %v937_v0  ;;  %8620 = vst [vmem:[#allocation134_spill] sm:$0xff] %v5927_v8  ;;  %v1086_v41 = vsub.f32 %v5908_v1, %v8153_v51  ;;  %v5936_v0 = vsub.f32 %v243_v44, %v5921_v2 }
 0x11b   : > { %8617 = vst [vmem:[#allocation131_spill] sm:$0xff] %v5918_v46  ;;  %v1087_v1 = vand.u32 4294901760, %v1086_v41  ;;  %v8163_v44 = vand.u32 4294901760, %v5936_v0  ;;  %v5949_v46 = vand.u32 4294901760, %v244_v3  ;;  %v245_v41 = vld [vmem:[%s4940_s10 + $0x310] sm:$0xff] }
 0x11c   : > { %v5924_v47 = vpop.f32.mrf.mxu1  ;;  %8622 = vst [vmem:[#allocation136_spill] sm:$0xff] %v5936_v0 }
 0x11d   : > { %8619 = vst [vmem:[#allocation133_spill] sm:$0xff] %v5924_v47  ;;  %1080 = vmatmul.f32.gmra.mxu2 %v1079_v60  ;;  %1817 = vmatmul.f32.gmra.mxu3 %v5837_v31  ;;  %v5933_v61 = vpop.f32.mrf.mxu0  ;;  %v574_v60 = vsub.f32 %v5916_v56, %v8160_v45  ;;  %v5944_v31 = vsub.f32 %v179_v52, %v5927_v8 }
 0x11e   : > { %8621 = vst [vmem:[#allocation135_spill] sm:$0xff] %v5933_v61  ;;  %v180_v61 = vld [vmem:[%s4940_s10 + $0x108] sm:$0xff] }
 0x11f   : > { %1561 = vmatmul.f32.gmra.mxu1 %v5843_v36  ;;  %8623 = vst [vmem:[#allocation137_spill] sm:$0xff] %v5944_v31  ;;  %v575_v47 = vand.u32 4294901760, %v574_v60  ;;  %v5955_v36 = vand.u32 4294901760, %v180_v61 }
 0x120   : > { %v953_v63 = vpop.f32.mrf.mxu2  ;;  %v1754_v21 = vpop.f32.mrf.mxu3  ;;  %568 = vmatmul.f32.gmra.mxu0 %v567_v11  ;;  %8625 = vst [vmem:[#allocation139_spill] sm:$0xff] %v5949_v46  ;;  %v8170_v11 = vand.u32 4294901760, %v5944_v31 }
 0x121   : > { %v5946_v51 = vadd.f32 %v1754_v21, %v945_v58  ;;  %8627 = vst [vmem:[#allocation141_spill] sm:$0xff] %v5955_v36  ;;  %v1094_v21 = vsub.f32 %v5936_v0, %v8163_v44  ;;  %v5964_v58 = vsub.f32 %v244_v3, %v5949_v46 }
 0x123   : > { %8624 = vst [vmem:[#allocation138_spill] sm:$0xff] %v5946_v51  ;;  %v1095_v0 = vand.u32 4294901760, %v1094_v21  ;;  %v8173_v3 = vand.u32 4294901760, %v5964_v58  ;;  %v5977_v51 = vand.u32 4294901760, %v245_v41  ;;  %v246_v21 = vld [vmem:[%s4940_s10 + $0x318] sm:$0xff] }
 0x124   : > { %v5952_v19 = vpop.f32.mrf.mxu1  ;;  %8629 = vst [vmem:[#allocation143_spill] sm:$0xff] %v5964_v58 }
 0x125   : > { %8626 = vst [vmem:[#allocation140_spill] sm:$0xff] %v5952_v19  ;;  %1088 = vmatmul.f32.gmra.mxu2 %v1087_v1  ;;  %1821 = vmatmul.f32.gmra.mxu3 %v5865_v32  ;;  %v5961_v52 = vpop.f32.mrf.mxu0  ;;  %v582_v1 = vsub.f32 %v5944_v31, %v8170_v11  ;;  %v5972_v32 = vsub.f32 %v180_v61, %v5955_v36 }
 0x126   : > { %8628 = vst [vmem:[#allocation142_spill] sm:$0xff] %v5961_v52  ;;  %v181_v52 = vld [vmem:[%s4940_s10 + $0x110] sm:$0xff] }
 0x127   : > { %1565 = vmatmul.f32.gmra.mxu1 %v5871_v30  ;;  %8630 = vst [vmem:[#allocation144_spill] sm:$0xff] %v5972_v32  ;;  %v583_v19 = vand.u32 4294901760, %v582_v1  ;;  %v5983_v30 = vand.u32 4294901760, %v181_v52 }
 0x128   : > { %v961_v60 = vpop.f32.mrf.mxu2  ;;  %v1758_v45 = vpop.f32.mrf.mxu3  ;;  %576 = vmatmul.f32.gmra.mxu0 %v575_v47  ;;  %8632 = vst [vmem:[#allocation146_spill] sm:$0xff] %v5977_v51  ;;  %v8180_v47 = vand.u32 4294901760, %v5972_v32 }
 0x129   : > { %v5974_v44 = vadd.f32 %v1758_v45, %v953_v63  ;;  %8634 = vst [vmem:[#allocation148_spill] sm:$0xff] %v5983_v30  ;;  %v1102_v45 = vsub.f32 %v5964_v58, %v8173_v3  ;;  %v5992_v63 = vsub.f32 %v245_v41, %v5977_v51 }
 0x12b   : > { %8631 = vst [vmem:[#allocation145_spill] sm:$0xff] %v5974_v44  ;;  %v1103_v58 = vand.u32 4294901760, %v1102_v45  ;;  %v8183_v41 = vand.u32 4294901760, %v5992_v63  ;;  %v6005_v44 = vand.u32 4294901760, %v246_v21  ;;  %v247_v45 = vld [vmem:[%s4940_s10 + $0x320] sm:$0xff] }
 0x12c   : > { %v5980_v56 = vpop.f32.mrf.mxu1  ;;  %8636 = vst [vmem:[#allocation150_spill] sm:$0xff] %v5992_v63 }
 0x12d   : > { %8633 = vst [vmem:[#allocation147_spill] sm:$0xff] %v5980_v56  ;;  %1096 = vmatmul.f32.gmra.mxu2 %v1095_v0  ;;  %1825 = vmatmul.f32.gmra.mxu3 %v5893_v54  ;;  %v5989_v61 = vpop.f32.mrf.mxu0  ;;  %v590_v0 = vsub.f32 %v5972_v32, %v8180_v47  ;;  %v6000_v54 = vsub.f32 %v181_v52, %v5983_v30 }
 0x12e   : > { %8635 = vst [vmem:[#allocation149_spill] sm:$0xff] %v5989_v61  ;;  %v182_v61 = vld [vmem:[%s4940_s10 + $0x118] sm:$0xff] }
 0x12f   : > { %1569 = vmatmul.f32.gmra.mxu1 %v5899_v23  ;;  %8637 = vst [vmem:[#allocation151_spill] sm:$0xff] %v6000_v54  ;;  %v591_v56 = vand.u32 4294901760, %v590_v0  ;;  %v6011_v23 = vand.u32 4294901760, %v182_v61 }
 0x130   : > { %v969_v1 = vpop.f32.mrf.mxu2  ;;  %v1762_v11 = vpop.f32.mrf.mxu3  ;;  %584 = vmatmul.f32.gmra.mxu0 %v583_v19  ;;  %8639 = vst [vmem:[#allocation153_spill] sm:$0xff] %v6005_v44  ;;  %v8190_v19 = vand.u32 4294901760, %v6000_v54 }
 0x131   : > { %v6002_v3 = vadd.f32 %v1762_v11, %v961_v60  ;;  %8641 = vst [vmem:[#allocation155_spill] sm:$0xff] %v6011_v23  ;;  %v1110_v11 = vsub.f32 %v5992_v63, %v8183_v41  ;;  %v6020_v60 = vsub.f32 %v246_v21, %v6005_v44 }
 0x133   : > { %8638 = vst [vmem:[#allocation152_spill] sm:$0xff] %v6002_v3  ;;  %v1111_v63 = vand.u32 4294901760, %v1110_v11  ;;  %v8193_v21 = vand.u32 4294901760, %v6020_v60  ;;  %v6033_v3 = vand.u32 4294901760, %v247_v45  ;;  %v248_v11 = vld [vmem:[%s4940_s10 + $0x328] sm:$0xff] }
 0x134   : > { %v6008_v31 = vpop.f32.mrf.mxu1  ;;  %8643 = vst [vmem:[#allocation157_spill] sm:$0xff] %v6020_v60 }
 0x135   : > { %8640 = vst [vmem:[#allocation154_spill] sm:$0xff] %v6008_v31  ;;  %1104 = vmatmul.f32.gmra.mxu2 %v1103_v58  ;;  %1829 = vmatmul.f32.gmra.mxu3 %v5921_v2  ;;  %v6017_v52 = vpop.f32.mrf.mxu0  ;;  %v598_v58 = vsub.f32 %v6000_v54, %v8190_v19  ;;  %v6028_v2 = vsub.f32 %v182_v61, %v6011_v23 }
 0x136   : > { %8642 = vst [vmem:[#allocation156_spill] sm:$0xff] %v6017_v52  ;;  %v183_v52 = vld [vmem:[%s4940_s10 + $0x120] sm:$0xff] }
 0x137   : > { %1573 = vmatmul.f32.gmra.mxu1 %v5927_v8  ;;  %8644 = vst [vmem:[#allocation158_spill] sm:$0xff] %v6028_v2  ;;  %v599_v31 = vand.u32 4294901760, %v598_v58  ;;  %v6039_v8 = vand.u32 4294901760, %v183_v52 }
 0x138   : > { %v977_v0 = vpop.f32.mrf.mxu2  ;;  %v1766_v47 = vpop.f32.mrf.mxu3  ;;  %592 = vmatmul.f32.gmra.mxu0 %v591_v56  ;;  %8646 = vst [vmem:[#allocation160_spill] sm:$0xff] %v6033_v3  ;;  %v8200_v56 = vand.u32 4294901760, %v6028_v2 }
 0x139   : > { %v6030_v41 = vadd.f32 %v1766_v47, %v969_v1  ;;  %8648 = vst [vmem:[#allocation162_spill] sm:$0xff] %v6039_v8  ;;  %v1118_v47 = vsub.f32 %v6020_v60, %v8193_v21  ;;  %v6048_v1 = vsub.f32 %v247_v45, %v6033_v3 }
 0x13b   : > { %8645 = vst [vmem:[#allocation159_spill] sm:$0xff] %v6030_v41  ;;  %v1119_v60 = vand.u32 4294901760, %v1118_v47  ;;  %v8203_v45 = vand.u32 4294901760, %v6048_v1  ;;  %v6061_v41 = vand.u32 4294901760, %v248_v11  ;;  %v249_v47 = vld [vmem:[%s4940_s10 + $0x330] sm:$0xff] }
 0x13c   : > { %v6036_v32 = vpop.f32.mrf.mxu1  ;;  %8650 = vst [vmem:[#allocation164_spill] sm:$0xff] %v6048_v1 }
 0x13d   : > { %8647 = vst [vmem:[#allocation161_spill] sm:$0xff] %v6036_v32  ;;  %1112 = vmatmul.f32.gmra.mxu2 %v1111_v63  ;;  %1833 = vmatmul.f32.gmra.mxu3 %v5949_v46  ;;  %v6045_v61 = vpop.f32.mrf.mxu0  ;;  %v606_v63 = vsub.f32 %v6028_v2, %v8200_v56  ;;  %v6056_v46 = vsub.f32 %v183_v52, %v6039_v8 }
 0x13e   : > { %8649 = vst [vmem:[#allocation163_spill] sm:$0xff] %v6045_v61  ;;  %v184_v61 = vld [vmem:[%s4940_s10 + $0x128] sm:$0xff] }
 0x13f   : > { %1577 = vmatmul.f32.gmra.mxu1 %v5955_v36  ;;  %8651 = vst [vmem:[#allocation165_spill] sm:$0xff] %v6056_v46  ;;  %v607_v32 = vand.u32 4294901760, %v606_v63  ;;  %v6067_v36 = vand.u32 4294901760, %v184_v61 }
 0x140   : > { %v985_v58 = vpop.f32.mrf.mxu2  ;;  %v1770_v19 = vpop.f32.mrf.mxu3  ;;  %600 = vmatmul.f32.gmra.mxu0 %v599_v31  ;;  %8653 = vst [vmem:[#allocation167_spill] sm:$0xff] %v6061_v41  ;;  %v8210_v31 = vand.u32 4294901760, %v6056_v46 }
 0x141   : > { %v6058_v21 = vadd.f32 %v1770_v19, %v977_v0  ;;  %8655 = vst [vmem:[#allocation169_spill] sm:$0xff] %v6067_v36  ;;  %v1126_v19 = vsub.f32 %v6048_v1, %v8203_v45  ;;  %v6076_v0 = vsub.f32 %v248_v11, %v6061_v41 }
 0x143   : > { %8652 = vst [vmem:[#allocation166_spill] sm:$0xff] %v6058_v21  ;;  %v1127_v1 = vand.u32 4294901760, %v1126_v19  ;;  %v8213_v11 = vand.u32 4294901760, %v6076_v0  ;;  %v6089_v21 = vand.u32 4294901760, %v249_v47  ;;  %v250_v19 = vld [vmem:[%s4940_s10 + $0x338] sm:$0xff] }
 0x144   : > { %v6064_v54 = vpop.f32.mrf.mxu1  ;;  %8657 = vst [vmem:[#allocation171_spill] sm:$0xff] %v6076_v0 }
 0x145   : > { %8654 = vst [vmem:[#allocation168_spill] sm:$0xff] %v6064_v54  ;;  %1120 = vmatmul.f32.gmra.mxu2 %v1119_v60  ;;  %1837 = vmatmul.f32.gmra.mxu3 %v5977_v51  ;;  %v6073_v52 = vpop.f32.mrf.mxu0  ;;  %v614_v60 = vsub.f32 %v6056_v46, %v8210_v31  ;;  %v6084_v51 = vsub.f32 %v184_v61, %v6067_v36 }
 0x146   : > { %8656 = vst [vmem:[#allocation170_spill] sm:$0xff] %v6073_v52  ;;  %v185_v52 = vld [vmem:[%s4940_s10 + $0x130] sm:$0xff] }
 0x147   : > { %1581 = vmatmul.f32.gmra.mxu1 %v5983_v30  ;;  %8658 = vst [vmem:[#allocation172_spill] sm:$0xff] %v6084_v51  ;;  %v615_v54 = vand.u32 4294901760, %v614_v60  ;;  %v6095_v30 = vand.u32 4294901760, %v185_v52 }
 0x148   : > { %v993_v63 = vpop.f32.mrf.mxu2  ;;  %v1774_v56 = vpop.f32.mrf.mxu3  ;;  %608 = vmatmul.f32.gmra.mxu0 %v607_v32  ;;  %8660 = vst [vmem:[#allocation174_spill] sm:$0xff] %v6089_v21  ;;  %v8220_v32 = vand.u32 4294901760, %v6084_v51 }
 0x149   : > { %v6086_v45 = vadd.f32 %v1774_v56, %v985_v58  ;;  %8662 = vst [vmem:[#allocation176_spill] sm:$0xff] %v6095_v30  ;;  %v1134_v56 = vsub.f32 %v6076_v0, %v8213_v11  ;;  %v6104_v58 = vsub.f32 %v249_v47, %v6089_v21 }
 0x14b   : > { %8659 = vst [vmem:[#allocation173_spill] sm:$0xff] %v6086_v45  ;;  %v1135_v0 = vand.u32 4294901760, %v1134_v56  ;;  %v8223_v47 = vand.u32 4294901760, %v6104_v58  ;;  %v6117_v45 = vand.u32 4294901760, %v250_v19  ;;  %v251_v56 = vld [vmem:[%s4940_s10 + $0x340] sm:$0xff] }
 0x14c   : > { %v6092_v2 = vpop.f32.mrf.mxu1  ;;  %8664 = vst [vmem:[#allocation178_spill] sm:$0xff] %v6104_v58 }
 0x14d   : > { %8661 = vst [vmem:[#allocation175_spill] sm:$0xff] %v6092_v2  ;;  %1128 = vmatmul.f32.gmra.mxu2 %v1127_v1  ;;  %1841 = vmatmul.f32.gmra.mxu3 %v6005_v44  ;;  %v6101_v61 = vpop.f32.mrf.mxu0  ;;  %v622_v1 = vsub.f32 %v6084_v51, %v8220_v32  ;;  %v6112_v44 = vsub.f32 %v185_v52, %v6095_v30 }
 0x14e   : > { %8663 = vst [vmem:[#allocation177_spill] sm:$0xff] %v6101_v61  ;;  %v186_v61 = vld [vmem:[%s4940_s10 + $0x138] sm:$0xff] }
 0x14f   : > { %1585 = vmatmul.f32.gmra.mxu1 %v6011_v23  ;;  %8665 = vst [vmem:[#allocation179_spill] sm:$0xff] %v6112_v44  ;;  %v623_v2 = vand.u32 4294901760, %v622_v1  ;;  %v6123_v23 = vand.u32 4294901760, %v186_v61 }
 0x150   : > { %v1001_v60 = vpop.f32.mrf.mxu2  ;;  %v1778_v31 = vpop.f32.mrf.mxu3  ;;  %616 = vmatmul.f32.gmra.mxu0 %v615_v54  ;;  %8667 = vst [vmem:[#allocation181_spill] sm:$0xff] %v6117_v45  ;;  %v8230_v54 = vand.u32 4294901760, %v6112_v44 }
 0x151   : > { %v6114_v11 = vadd.f32 %v1778_v31, %v993_v63  ;;  %8669 = vst [vmem:[#allocation183_spill] sm:$0xff] %v6123_v23  ;;  %v1142_v31 = vsub.f32 %v6104_v58, %v8223_v47  ;;  %v6132_v63 = vsub.f32 %v250_v19, %v6117_v45 }
 0x153   : > { %8666 = vst [vmem:[#allocation180_spill] sm:$0xff] %v6114_v11  ;;  %v1143_v58 = vand.u32 4294901760, %v1142_v31  ;;  %v8233_v19 = vand.u32 4294901760, %v6132_v63  ;;  %v6145_v11 = vand.u32 4294901760, %v251_v56  ;;  %v252_v31 = vld [vmem:[%s4940_s10 + $0x348] sm:$0xff] }
 0x154   : > { %v6120_v46 = vpop.f32.mrf.mxu1  ;;  %8671 = vst [vmem:[#allocation185_spill] sm:$0xff] %v6132_v63 }
 0x155   : > { %8668 = vst [vmem:[#allocation182_spill] sm:$0xff] %v6120_v46  ;;  %1136 = vmatmul.f32.gmra.mxu2 %v1135_v0  ;;  %1845 = vmatmul.f32.gmra.mxu3 %v6033_v3  ;;  %v6129_v52 = vpop.f32.mrf.mxu0  ;;  %v630_v0 = vsub.f32 %v6112_v44, %v8230_v54  ;;  %v6140_v3 = vsub.f32 %v186_v61, %v6123_v23 }
 0x156   : > { %8670 = vst [vmem:[#allocation184_spill] sm:$0xff] %v6129_v52  ;;  %v187_v52 = vld [vmem:[%s4940_s10 + $0x140] sm:$0xff] }
 0x157   : > { %1589 = vmatmul.f32.gmra.mxu1 %v6039_v8  ;;  %8672 = vst [vmem:[#allocation186_spill] sm:$0xff] %v6140_v3  ;;  %v631_v46 = vand.u32 4294901760, %v630_v0  ;;  %v6151_v8 = vand.u32 4294901760, %v187_v52 }
 0x158   : > { %v1009_v1 = vpop.f32.mrf.mxu2  ;;  %v1782_v32 = vpop.f32.mrf.mxu3  ;;  %624 = vmatmul.f32.gmra.mxu0 %v623_v2  ;;  %8674 = vst [vmem:[#allocation188_spill] sm:$0xff] %v6145_v11  ;;  %v8240_v2 = vand.u32 4294901760, %v6140_v3 }
 0x159   : > { %v6142_v47 = vadd.f32 %v1782_v32, %v1001_v60  ;;  %8676 = vst [vmem:[#allocation190_spill] sm:$0xff] %v6151_v8  ;;  %v1150_v32 = vsub.f32 %v6132_v63, %v8233_v19  ;;  %v6160_v60 = vsub.f32 %v251_v56, %v6145_v11 }
 0x15b   : > { %8673 = vst [vmem:[#allocation187_spill] sm:$0xff] %v6142_v47  ;;  %v1151_v63 = vand.u32 4294901760, %v1150_v32  ;;  %v8243_v56 = vand.u32 4294901760, %v6160_v60  ;;  %v6173_v47 = vand.u32 4294901760, %v252_v31  ;;  %v253_v32 = vld [vmem:[%s4940_s10 + $0x350] sm:$0xff] }
 0x15c   : > { %v6148_v51 = vpop.f32.mrf.mxu1  ;;  %8678 = vst [vmem:[#allocation192_spill] sm:$0xff] %v6160_v60 }
 0x15d   : > { %8675 = vst [vmem:[#allocation189_spill] sm:$0xff] %v6148_v51  ;;  %1144 = vmatmul.f32.gmra.mxu2 %v1143_v58  ;;  %1849 = vmatmul.f32.gmra.mxu3 %v6061_v41  ;;  %v6157_v61 = vpop.f32.mrf.mxu0  ;;  %v638_v58 = vsub.f32 %v6140_v3, %v8240_v2  ;;  %v6168_v41 = vsub.f32 %v187_v52, %v6151_v8 }
 0x15e   : > { %8677 = vst [vmem:[#allocation191_spill] sm:$0xff] %v6157_v61  ;;  %v188_v61 = vld [vmem:[%s4940_s10 + $0x148] sm:$0xff] }
 0x15f   : > { %1593 = vmatmul.f32.gmra.mxu1 %v6067_v36  ;;  %8679 = vst [vmem:[#allocation193_spill] sm:$0xff] %v6168_v41  ;;  %v639_v51 = vand.u32 4294901760, %v638_v58  ;;  %v6179_v36 = vand.u32 4294901760, %v188_v61 }
 0x160   : > { %v1017_v0 = vpop.f32.mrf.mxu2  ;;  %v1786_v54 = vpop.f32.mrf.mxu3  ;;  %632 = vmatmul.f32.gmra.mxu0 %v631_v46  ;;  %8681 = vst [vmem:[#allocation195_spill] sm:$0xff] %v6173_v47  ;;  %v8250_v46 = vand.u32 4294901760, %v6168_v41 }
 0x161   : > { %v6170_v19 = vadd.f32 %v1786_v54, %v1009_v1  ;;  %8683 = vst [vmem:[#allocation197_spill] sm:$0xff] %v6179_v36  ;;  %v1158_v54 = vsub.f32 %v6160_v60, %v8243_v56  ;;  %v6188_v1 = vsub.f32 %v252_v31, %v6173_v47 }
 0x163   : > { %8680 = vst [vmem:[#allocation194_spill] sm:$0xff] %v6170_v19  ;;  %v1159_v60 = vand.u32 4294901760, %v1158_v54  ;;  %v8253_v31 = vand.u32 4294901760, %v6188_v1  ;;  %v6201_v19 = vand.u32 4294901760, %v253_v32  ;;  %v254_v54 = vld [vmem:[%s4940_s10 + $0x358] sm:$0xff] }
 0x164   : > { %v6176_v44 = vpop.f32.mrf.mxu1  ;;  %8685 = vst [vmem:[#allocation199_spill] sm:$0xff] %v6188_v1 }
 0x165   : > { %8682 = vst [vmem:[#allocation196_spill] sm:$0xff] %v6176_v44  ;;  %1152 = vmatmul.f32.gmra.mxu2 %v1151_v63  ;;  %1853 = vmatmul.f32.gmra.mxu3 %v6089_v21  ;;  %v6185_v52 = vpop.f32.mrf.mxu0  ;;  %v646_v63 = vsub.f32 %v6168_v41, %v8250_v46  ;;  %v6196_v21 = vsub.f32 %v188_v61, %v6179_v36 }
 0x166   : > { %8684 = vst [vmem:[#allocation198_spill] sm:$0xff] %v6185_v52  ;;  %v189_v52 = vld [vmem:[%s4940_s10 + $0x150] sm:$0xff] }
 0x167   : > { %1597 = vmatmul.f32.gmra.mxu1 %v6095_v30  ;;  %8686 = vst [vmem:[#allocation200_spill] sm:$0xff] %v6196_v21  ;;  %v647_v44 = vand.u32 4294901760, %v646_v63  ;;  %v6207_v30 = vand.u32 4294901760, %v189_v52 }
 0x168   : > { %v1025_v58 = vpop.f32.mrf.mxu2  ;;  %v1790_v2 = vpop.f32.mrf.mxu3  ;;  %640 = vmatmul.f32.gmra.mxu0 %v639_v51  ;;  %8688 = vst [vmem:[#allocation202_spill] sm:$0xff] %v6201_v19  ;;  %v8260_v51 = vand.u32 4294901760, %v6196_v21 }
 0x169   : > { %v6198_v56 = vadd.f32 %v1790_v2, %v1017_v0  ;;  %8690 = vst [vmem:[#allocation204_spill] sm:$0xff] %v6207_v30  ;;  %v1166_v2 = vsub.f32 %v6188_v1, %v8253_v31  ;;  %v6216_v0 = vsub.f32 %v253_v32, %v6201_v19 }
 0x16b   : > { %8687 = vst [vmem:[#allocation201_spill] sm:$0xff] %v6198_v56  ;;  %v1167_v1 = vand.u32 4294901760, %v1166_v2  ;;  %v8263_v32 = vand.u32 4294901760, %v6216_v0  ;;  %v6229_v56 = vand.u32 4294901760, %v254_v54  ;;  %v255_v2 = vld [vmem:[%s4940_s10 + $0x360] sm:$0xff] }
 0x16c   : > { %v6204_v3 = vpop.f32.mrf.mxu1  ;;  %8692 = vst [vmem:[#allocation206_spill] sm:$0xff] %v6216_v0 }
 0x16d   : > { %8689 = vst [vmem:[#allocation203_spill] sm:$0xff] %v6204_v3  ;;  %1160 = vmatmul.f32.gmra.mxu2 %v1159_v60  ;;  %1857 = vmatmul.f32.gmra.mxu3 %v6117_v45  ;;  %v6213_v61 = vpop.f32.mrf.mxu0  ;;  %v654_v60 = vsub.f32 %v6196_v21, %v8260_v51  ;;  %v6224_v45 = vsub.f32 %v189_v52, %v6207_v30 }
 0x16e   : > { %8691 = vst [vmem:[#allocation205_spill] sm:$0xff] %v6213_v61  ;;  %v190_v61 = vld [vmem:[%s4940_s10 + $0x158] sm:$0xff] }
 0x16f   : > { %1601 = vmatmul.f32.gmra.mxu1 %v6123_v23  ;;  %8693 = vst [vmem:[#allocation207_spill] sm:$0xff] %v6224_v45  ;;  %v655_v3 = vand.u32 4294901760, %v654_v60  ;;  %v6235_v23 = vand.u32 4294901760, %v190_v61 }
 0x170   : > { %v1033_v63 = vpop.f32.mrf.mxu2  ;;  %v1794_v46 = vpop.f32.mrf.mxu3  ;;  %648 = vmatmul.f32.gmra.mxu0 %v647_v44  ;;  %8695 = vst [vmem:[#allocation209_spill] sm:$0xff] %v6229_v56  ;;  %v8270_v44 = vand.u32 4294901760, %v6224_v45 }
 0x171   : > { %v6226_v31 = vadd.f32 %v1794_v46, %v1025_v58  ;;  %8697 = vst [vmem:[#allocation211_spill] sm:$0xff] %v6235_v23  ;;  %v1174_v46 = vsub.f32 %v6216_v0, %v8263_v32  ;;  %v6244_v58 = vsub.f32 %v254_v54, %v6229_v56 }
 0x173   : > { %8694 = vst [vmem:[#allocation208_spill] sm:$0xff] %v6226_v31  ;;  %v1175_v0 = vand.u32 4294901760, %v1174_v46  ;;  %v8273_v54 = vand.u32 4294901760, %v6244_v58  ;;  %v6257_v31 = vand.u32 4294901760, %v255_v2  ;;  %v256_v46 = vld [vmem:[%s4940_s10 + $0x368] sm:$0xff] }
 0x174   : > { %v6232_v41 = vpop.f32.mrf.mxu1  ;;  %8699 = vst [vmem:[#allocation213_spill] sm:$0xff] %v6244_v58 }
 0x175   : > { %8696 = vst [vmem:[#allocation210_spill] sm:$0xff] %v6232_v41  ;;  %1168 = vmatmul.f32.gmra.mxu2 %v1167_v1  ;;  %1861 = vmatmul.f32.gmra.mxu3 %v6145_v11  ;;  %v6241_v52 = vpop.f32.mrf.mxu0  ;;  %v662_v1 = vsub.f32 %v6224_v45, %v8270_v44  ;;  %v6252_v11 = vsub.f32 %v190_v61, %v6235_v23 }
 0x176   : > { %8698 = vst [vmem:[#allocation212_spill] sm:$0xff] %v6241_v52  ;;  %v191_v52 = vld [vmem:[%s4940_s10 + $0x160] sm:$0xff] }
 0x177   : > { %1605 = vmatmul.f32.gmra.mxu1 %v6151_v8  ;;  %8700 = vst [vmem:[#allocation214_spill] sm:$0xff] %v6252_v11  ;;  %v663_v41 = vand.u32 4294901760, %v662_v1  ;;  %v6263_v8 = vand.u32 4294901760, %v191_v52 }
 0x178   : > { %v1041_v60 = vpop.f32.mrf.mxu2  ;;  %v1798_v51 = vpop.f32.mrf.mxu3  ;;  %656 = vmatmul.f32.gmra.mxu0 %v655_v3  ;;  %8702 = vst [vmem:[#allocation216_spill] sm:$0xff] %v6257_v31  ;;  %v8280_v3 = vand.u32 4294901760, %v6252_v11 }
 0x179   : > { %v6254_v32 = vadd.f32 %v1798_v51, %v1033_v63  ;;  %8704 = vst [vmem:[#allocation218_spill] sm:$0xff] %v6263_v8  ;;  %v1182_v51 = vsub.f32 %v6244_v58, %v8273_v54  ;;  %v6272_v63 = vsub.f32 %v255_v2, %v6257_v31 }
 0x17b   : > { %8701 = vst [vmem:[#allocation215_spill] sm:$0xff] %v6254_v32  ;;  %v1183_v58 = vand.u32 4294901760, %v1182_v51  ;;  %v8283_v2 = vand.u32 4294901760, %v6272_v63  ;;  %v6285_v32 = vand.u32 4294901760, %v256_v46  ;;  %v257_v51 = vld [vmem:[%s4940_s10 + $0x370] sm:$0xff] }
 0x17c   : > { %v6260_v21 = vpop.f32.mrf.mxu1  ;;  %8706 = vst [vmem:[#allocation220_spill] sm:$0xff] %v6272_v63 }
 0x17d   : > { %8703 = vst [vmem:[#allocation217_spill] sm:$0xff] %v6260_v21  ;;  %1176 = vmatmul.f32.gmra.mxu2 %v1175_v0  ;;  %1865 = vmatmul.f32.gmra.mxu3 %v6173_v47  ;;  %v6269_v61 = vpop.f32.mrf.mxu0  ;;  %v670_v0 = vsub.f32 %v6252_v11, %v8280_v3  ;;  %v6280_v47 = vsub.f32 %v191_v52, %v6263_v8 }
 0x17e   : > { %8705 = vst [vmem:[#allocation219_spill] sm:$0xff] %v6269_v61  ;;  %v192_v61 = vld [vmem:[%s4940_s10 + $0x168] sm:$0xff] }
 0x17f   : > { %1609 = vmatmul.f32.gmra.mxu1 %v6179_v36  ;;  %8707 = vst [vmem:[#allocation221_spill] sm:$0xff] %v6280_v47  ;;  %v671_v21 = vand.u32 4294901760, %v670_v0  ;;  %v6291_v36 = vand.u32 4294901760, %v192_v61 }
 0x180   : > { %v1049_v1 = vpop.f32.mrf.mxu2  ;;  %v1802_v44 = vpop.f32.mrf.mxu3  ;;  %664 = vmatmul.f32.gmra.mxu0 %v663_v41  ;;  %8709 = vst [vmem:[#allocation223_spill] sm:$0xff] %v6285_v32  ;;  %v8290_v41 = vand.u32 4294901760, %v6280_v47 }
 0x181   : > { %v6282_v54 = vadd.f32 %v1802_v44, %v1041_v60  ;;  %8711 = vst [vmem:[#allocation225_spill] sm:$0xff] %v6291_v36  ;;  %v1190_v44 = vsub.f32 %v6272_v63, %v8283_v2  ;;  %v6300_v60 = vsub.f32 %v256_v46, %v6285_v32 }
 0x183   : > { %8708 = vst [vmem:[#allocation222_spill] sm:$0xff] %v6282_v54  ;;  %v1191_v63 = vand.u32 4294901760, %v1190_v44  ;;  %v8293_v46 = vand.u32 4294901760, %v6300_v60  ;;  %v6313_v54 = vand.u32 4294901760, %v257_v51  ;;  %v258_v44 = vld [vmem:[%s4940_s10 + $0x378] sm:$0xff] }
 0x184   : > { %v6288_v45 = vpop.f32.mrf.mxu1  ;;  %8713 = vst [vmem:[#allocation227_spill] sm:$0xff] %v6300_v60 }
 0x185   : > { %8710 = vst [vmem:[#allocation224_spill] sm:$0xff] %v6288_v45  ;;  %1184 = vmatmul.f32.gmra.mxu2 %v1183_v58  ;;  %1869 = vmatmul.f32.gmra.mxu3 %v6201_v19  ;;  %v6297_v52 = vpop.f32.mrf.mxu0  ;;  %v678_v58 = vsub.f32 %v6280_v47, %v8290_v41  ;;  %v6308_v19 = vsub.f32 %v192_v61, %v6291_v36 }
 0x186   : > { %8712 = vst [vmem:[#allocation226_spill] sm:$0xff] %v6297_v52  ;;  %v193_v52 = vld [vmem:[%s4940_s10 + $0x170] sm:$0xff] }
 0x187   : > { %1613 = vmatmul.f32.gmra.mxu1 %v6207_v30  ;;  %8714 = vst [vmem:[#allocation228_spill] sm:$0xff] %v6308_v19  ;;  %v679_v45 = vand.u32 4294901760, %v678_v58  ;;  %v6319_v30 = vand.u32 4294901760, %v193_v52 }
 0x188   : > { %v1057_v0 = vpop.f32.mrf.mxu2  ;;  %v1806_v3 = vpop.f32.mrf.mxu3  ;;  %672 = vmatmul.f32.gmra.mxu0 %v671_v21  ;;  %8716 = vst [vmem:[#allocation230_spill] sm:$0xff] %v6313_v54  ;;  %v8300_v21 = vand.u32 4294901760, %v6308_v19 }
 0x189   : > { %v6310_v2 = vadd.f32 %v1806_v3, %v1049_v1  ;;  %8718 = vst [vmem:[#allocation232_spill] sm:$0xff] %v6319_v30  ;;  %v1198_v3 = vsub.f32 %v6300_v60, %v8293_v46  ;;  %v6328_v1 = vsub.f32 %v257_v51, %v6313_v54 }
 0x18b   : > { %8715 = vst [vmem:[#allocation229_spill] sm:$0xff] %v6310_v2  ;;  %v1199_v60 = vand.u32 4294901760, %v1198_v3  ;;  %v8303_v51 = vand.u32 4294901760, %v6328_v1  ;;  %v6341_v2 = vand.u32 4294901760, %v258_v44  ;;  %v259_v3 = vld [vmem:[%s4940_s10 + $0x380] sm:$0xff] }
 0x18c   : > { %v6316_v11 = vpop.f32.mrf.mxu1  ;;  %8720 = vst [vmem:[#allocation234_spill] sm:$0xff] %v6328_v1 }
 0x18d   : > { %8717 = vst [vmem:[#allocation231_spill] sm:$0xff] %v6316_v11  ;;  %1192 = vmatmul.f32.gmra.mxu2 %v1191_v63  ;;  %1873 = vmatmul.f32.gmra.mxu3 %v6229_v56  ;;  %v6325_v61 = vpop.f32.mrf.mxu0  ;;  %v686_v63 = vsub.f32 %v6308_v19, %v8300_v21  ;;  %v6336_v56 = vsub.f32 %v193_v52, %v6319_v30 }
 0x18e   : > { %8719 = vst [vmem:[#allocation233_spill] sm:$0xff] %v6325_v61  ;;  %v194_v61 = vld [vmem:[%s4940_s10 + $0x178] sm:$0xff] }
 0x18f   : > { %1617 = vmatmul.f32.gmra.mxu1 %v6235_v23  ;;  %8721 = vst [vmem:[#allocation235_spill] sm:$0xff] %v6336_v56  ;;  %v687_v11 = vand.u32 4294901760, %v686_v63  ;;  %v6347_v23 = vand.u32 4294901760, %v194_v61 }
 0x190   : > { %v1065_v58 = vpop.f32.mrf.mxu2  ;;  %v1810_v41 = vpop.f32.mrf.mxu3  ;;  %680 = vmatmul.f32.gmra.mxu0 %v679_v45  ;;  %8723 = vst [vmem:[#allocation237_spill] sm:$0xff] %v6341_v2  ;;  %v8310_v45 = vand.u32 4294901760, %v6336_v56 }
 0x191   : > { %v6338_v46 = vadd.f32 %v1810_v41, %v1057_v0  ;;  %8725 = vst [vmem:[#allocation239_spill] sm:$0xff] %v6347_v23  ;;  %v1206_v41 = vsub.f32 %v6328_v1, %v8303_v51  ;;  %v6356_v0 = vsub.f32 %v258_v44, %v6341_v2 }
 0x193   : > { %8722 = vst [vmem:[#allocation236_spill] sm:$0xff] %v6338_v46  ;;  %v1207_v1 = vand.u32 4294901760, %v1206_v41  ;;  %v8313_v44 = vand.u32 4294901760, %v6356_v0  ;;  %v6369_v46 = vand.u32 4294901760, %v259_v3  ;;  %v260_v41 = vld [vmem:[%s4940_s10 + $0x388] sm:$0xff] }
 0x194   : > { %v6344_v47 = vpop.f32.mrf.mxu1  ;;  %8727 = vst [vmem:[#allocation241_spill] sm:$0xff] %v6356_v0 }
 0x195   : > { %8724 = vst [vmem:[#allocation238_spill] sm:$0xff] %v6344_v47  ;;  %1200 = vmatmul.f32.gmra.mxu2 %v1199_v60  ;;  %1877 = vmatmul.f32.gmra.mxu3 %v6257_v31  ;;  %v6353_v52 = vpop.f32.mrf.mxu0  ;;  %v694_v60 = vsub.f32 %v6336_v56, %v8310_v45  ;;  %v6364_v31 = vsub.f32 %v194_v61, %v6347_v23 }
 0x196   : > { %8726 = vst [vmem:[#allocation240_spill] sm:$0xff] %v6353_v52  ;;  %v195_v52 = vld [vmem:[%s4940_s10 + $0x180] sm:$0xff] }
 0x197   : > { %1621 = vmatmul.f32.gmra.mxu1 %v6263_v8  ;;  %8728 = vst [vmem:[#allocation242_spill] sm:$0xff] %v6364_v31  ;;  %v695_v47 = vand.u32 4294901760, %v694_v60  ;;  %v6375_v8 = vand.u32 4294901760, %v195_v52 }
 0x198   : > { %v1073_v63 = vpop.f32.mrf.mxu2  ;;  %v1814_v21 = vpop.f32.mrf.mxu3  ;;  %688 = vmatmul.f32.gmra.mxu0 %v687_v11  ;;  %8730 = vst [vmem:[#allocation244_spill] sm:$0xff] %v6369_v46  ;;  %v8320_v11 = vand.u32 4294901760, %v6364_v31 }
 0x199   : > { %v6366_v51 = vadd.f32 %v1814_v21, %v1065_v58  ;;  %8732 = vst [vmem:[#allocation246_spill] sm:$0xff] %v6375_v8  ;;  %v1214_v21 = vsub.f32 %v6356_v0, %v8313_v44  ;;  %v6384_v58 = vsub.f32 %v259_v3, %v6369_v46 }
 0x19b   : > { %8729 = vst [vmem:[#allocation243_spill] sm:$0xff] %v6366_v51  ;;  %v1215_v0 = vand.u32 4294901760, %v1214_v21  ;;  %v8323_v3 = vand.u32 4294901760, %v6384_v58  ;;  %v6397_v51 = vand.u32 4294901760, %v260_v41  ;;  %v261_v21 = vld [vmem:[%s4940_s10 + $0x390] sm:$0xff] }
 0x19c   : > { %v6372_v19 = vpop.f32.mrf.mxu1  ;;  %8734 = vst [vmem:[#allocation248_spill] sm:$0xff] %v6384_v58 }
 0x19d   : > { %8731 = vst [vmem:[#allocation245_spill] sm:$0xff] %v6372_v19  ;;  %1208 = vmatmul.f32.gmra.mxu2 %v1207_v1  ;;  %1881 = vmatmul.f32.gmra.mxu3 %v6285_v32  ;;  %v6381_v61 = vpop.f32.mrf.mxu0  ;;  %v702_v1 = vsub.f32 %v6364_v31, %v8320_v11  ;;  %v6392_v32 = vsub.f32 %v195_v52, %v6375_v8 }
 0x19e   : > { %8733 = vst [vmem:[#allocation247_spill] sm:$0xff] %v6381_v61  ;;  %v196_v61 = vld [vmem:[%s4940_s10 + $0x188] sm:$0xff] }
 0x19f   : > { %1625 = vmatmul.f32.gmra.mxu1 %v6291_v36  ;;  %8735 = vst [vmem:[#allocation249_spill] sm:$0xff] %v6392_v32  ;;  %v703_v19 = vand.u32 4294901760, %v702_v1  ;;  %v6403_v36 = vand.u32 4294901760, %v196_v61 }
 0x1a0   : > { %v1081_v60 = vpop.f32.mrf.mxu2  ;;  %v1818_v45 = vpop.f32.mrf.mxu3  ;;  %696 = vmatmul.f32.gmra.mxu0 %v695_v47  ;;  %8737 = vst [vmem:[#allocation251_spill] sm:$0xff] %v6397_v51  ;;  %v8330_v47 = vand.u32 4294901760, %v6392_v32 }
 0x1a1   : > { %v6394_v44 = vadd.f32 %v1818_v45, %v1073_v63  ;;  %8739 = vst [vmem:[#allocation253_spill] sm:$0xff] %v6403_v36  ;;  %v1222_v45 = vsub.f32 %v6384_v58, %v8323_v3  ;;  %v6412_v63 = vsub.f32 %v260_v41, %v6397_v51 }
 0x1a3   : > { %8736 = vst [vmem:[#allocation250_spill] sm:$0xff] %v6394_v44  ;;  %v1223_v58 = vand.u32 4294901760, %v1222_v45  ;;  %v8333_v41 = vand.u32 4294901760, %v6412_v63  ;;  %v6425_v44 = vand.u32 4294901760, %v261_v21  ;;  %v262_v45 = vld [vmem:[%s4940_s10 + $0x398] sm:$0xff] }
 0x1a4   : > { %v6400_v56 = vpop.f32.mrf.mxu1  ;;  %8741 = vst [vmem:[#allocation255_spill] sm:$0xff] %v6412_v63 }
 0x1a5   : > { %8738 = vst [vmem:[#allocation252_spill] sm:$0xff] %v6400_v56  ;;  %1216 = vmatmul.f32.gmra.mxu2 %v1215_v0  ;;  %1885 = vmatmul.f32.gmra.mxu3 %v6313_v54  ;;  %v6409_v52 = vpop.f32.mrf.mxu0  ;;  %v710_v0 = vsub.f32 %v6392_v32, %v8330_v47  ;;  %v6420_v54 = vsub.f32 %v196_v61, %v6403_v36 }
 0x1a6   : > { %8740 = vst [vmem:[#allocation254_spill] sm:$0xff] %v6409_v52  ;;  %v197_v52 = vld [vmem:[%s4940_s10 + $0x190] sm:$0xff] }
 0x1a7   : > { %1629 = vmatmul.f32.gmra.mxu1 %v6319_v30  ;;  %8742 = vst [vmem:[#allocation256_spill] sm:$0xff] %v6420_v54  ;;  %v711_v56 = vand.u32 4294901760, %v710_v0  ;;  %v6431_v30 = vand.u32 4294901760, %v197_v52 }
 0x1a8   : > { %v1089_v1 = vpop.f32.mrf.mxu2  ;;  %v1822_v11 = vpop.f32.mrf.mxu3  ;;  %704 = vmatmul.f32.gmra.mxu0 %v703_v19  ;;  %8744 = vst [vmem:[#allocation258_spill] sm:$0xff] %v6425_v44  ;;  %v8340_v19 = vand.u32 4294901760, %v6420_v54 }
 0x1a9   : > { %v6422_v3 = vadd.f32 %v1822_v11, %v1081_v60  ;;  %8746 = vst [vmem:[#allocation260_spill] sm:$0xff] %v6431_v30  ;;  %v1230_v11 = vsub.f32 %v6412_v63, %v8333_v41  ;;  %v6440_v60 = vsub.f32 %v261_v21, %v6425_v44 }
 0x1ab   : > { %8743 = vst [vmem:[#allocation257_spill] sm:$0xff] %v6422_v3  ;;  %v1231_v63 = vand.u32 4294901760, %v1230_v11  ;;  %v8343_v21 = vand.u32 4294901760, %v6440_v60  ;;  %v6453_v3 = vand.u32 4294901760, %v262_v45  ;;  %v263_v11 = vld [vmem:[%s4940_s10 + $0x3a0] sm:$0xff] }
 0x1ac   : > { %v6428_v31 = vpop.f32.mrf.mxu1  ;;  %8748 = vst [vmem:[#allocation262_spill] sm:$0xff] %v6440_v60 }
 0x1ad   : > { %8745 = vst [vmem:[#allocation259_spill] sm:$0xff] %v6428_v31  ;;  %1224 = vmatmul.f32.gmra.mxu2 %v1223_v58  ;;  %1889 = vmatmul.f32.gmra.mxu3 %v6341_v2  ;;  %v6437_v61 = vpop.f32.mrf.mxu0  ;;  %v718_v58 = vsub.f32 %v6420_v54, %v8340_v19  ;;  %v6448_v2 = vsub.f32 %v197_v52, %v6431_v30 }
 0x1ae   : > { %8747 = vst [vmem:[#allocation261_spill] sm:$0xff] %v6437_v61  ;;  %v198_v61 = vld [vmem:[%s4940_s10 + $0x198] sm:$0xff] }
 0x1af   : > { %1633 = vmatmul.f32.gmra.mxu1 %v6347_v23  ;;  %8749 = vst [vmem:[#allocation263_spill] sm:$0xff] %v6448_v2  ;;  %v719_v31 = vand.u32 4294901760, %v718_v58  ;;  %v6459_v23 = vand.u32 4294901760, %v198_v61 }
 0x1b0   : > { %v1097_v0 = vpop.f32.mrf.mxu2  ;;  %v1826_v47 = vpop.f32.mrf.mxu3  ;;  %712 = vmatmul.f32.gmra.mxu0 %v711_v56  ;;  %8751 = vst [vmem:[#allocation265_spill] sm:$0xff] %v6453_v3  ;;  %v8350_v56 = vand.u32 4294901760, %v6448_v2 }
 0x1b1   : > { %v6450_v41 = vadd.f32 %v1826_v47, %v1089_v1  ;;  %8753 = vst [vmem:[#allocation267_spill] sm:$0xff] %v6459_v23  ;;  %v1238_v47 = vsub.f32 %v6440_v60, %v8343_v21  ;;  %v6468_v1 = vsub.f32 %v262_v45, %v6453_v3 }
 0x1b3   : > { %8750 = vst [vmem:[#allocation264_spill] sm:$0xff] %v6450_v41  ;;  %v1239_v60 = vand.u32 4294901760, %v1238_v47  ;;  %v8353_v45 = vand.u32 4294901760, %v6468_v1  ;;  %v6481_v41 = vand.u32 4294901760, %v263_v11  ;;  %v264_v47 = vld [vmem:[%s4940_s10 + $0x3a8] sm:$0xff] }
 0x1b4   : > { %v6456_v32 = vpop.f32.mrf.mxu1  ;;  %8755 = vst [vmem:[#allocation269_spill] sm:$0xff] %v6468_v1 }
 0x1b5   : > { %8752 = vst [vmem:[#allocation266_spill] sm:$0xff] %v6456_v32  ;;  %1232 = vmatmul.f32.gmra.mxu2 %v1231_v63  ;;  %1893 = vmatmul.f32.gmra.mxu3 %v6369_v46  ;;  %v6465_v52 = vpop.f32.mrf.mxu0  ;;  %v726_v63 = vsub.f32 %v6448_v2, %v8350_v56  ;;  %v6476_v46 = vsub.f32 %v198_v61, %v6459_v23 }
 0x1b6   : > { %8754 = vst [vmem:[#allocation268_spill] sm:$0xff] %v6465_v52  ;;  %v199_v52 = vld [vmem:[%s4940_s10 + $0x1a0] sm:$0xff] }
 0x1b7   : > { %1637 = vmatmul.f32.gmra.mxu1 %v6375_v8  ;;  %8756 = vst [vmem:[#allocation270_spill] sm:$0xff] %v6476_v46  ;;  %v727_v32 = vand.u32 4294901760, %v726_v63  ;;  %v6487_v8 = vand.u32 4294901760, %v199_v52 }
 0x1b8   : > { %v1105_v58 = vpop.f32.mrf.mxu2  ;;  %v1830_v19 = vpop.f32.mrf.mxu3  ;;  %720 = vmatmul.f32.gmra.mxu0 %v719_v31  ;;  %8758 = vst [vmem:[#allocation272_spill] sm:$0xff] %v6481_v41  ;;  %v8360_v31 = vand.u32 4294901760, %v6476_v46 }
 0x1b9   : > { %v6478_v21 = vadd.f32 %v1830_v19, %v1097_v0  ;;  %8760 = vst [vmem:[#allocation274_spill] sm:$0xff] %v6487_v8  ;;  %v1246_v19 = vsub.f32 %v6468_v1, %v8353_v45  ;;  %v6496_v0 = vsub.f32 %v263_v11, %v6481_v41 }
 0x1bb   : > { %8757 = vst [vmem:[#allocation271_spill] sm:$0xff] %v6478_v21  ;;  %v1247_v1 = vand.u32 4294901760, %v1246_v19  ;;  %v8363_v11 = vand.u32 4294901760, %v6496_v0  ;;  %v6509_v21 = vand.u32 4294901760, %v264_v47  ;;  %v265_v19 = vld [vmem:[%s4940_s10 + $0x3b0] sm:$0xff] }
 0x1bc   : > { %v6484_v54 = vpop.f32.mrf.mxu1  ;;  %8762 = vst [vmem:[#allocation276_spill] sm:$0xff] %v6496_v0 }
 0x1bd   : > { %8759 = vst [vmem:[#allocation273_spill] sm:$0xff] %v6484_v54  ;;  %1240 = vmatmul.f32.gmra.mxu2 %v1239_v60  ;;  %1897 = vmatmul.f32.gmra.mxu3 %v6397_v51  ;;  %v6493_v61 = vpop.f32.mrf.mxu0  ;;  %v734_v60 = vsub.f32 %v6476_v46, %v8360_v31  ;;  %v6504_v51 = vsub.f32 %v199_v52, %v6487_v8 }
 0x1be   : > { %8761 = vst [vmem:[#allocation275_spill] sm:$0xff] %v6493_v61  ;;  %v200_v61 = vld [vmem:[%s4940_s10 + $0x1a8] sm:$0xff] }
 0x1bf   : > { %1641 = vmatmul.f32.gmra.mxu1 %v6403_v36  ;;  %8763 = vst [vmem:[#allocation277_spill] sm:$0xff] %v6504_v51  ;;  %v735_v54 = vand.u32 4294901760, %v734_v60  ;;  %v6515_v36 = vand.u32 4294901760, %v200_v61 }
 0x1c0   : > { %v1113_v63 = vpop.f32.mrf.mxu2  ;;  %v1834_v56 = vpop.f32.mrf.mxu3  ;;  %728 = vmatmul.f32.gmra.mxu0 %v727_v32  ;;  %8765 = vst [vmem:[#allocation279_spill] sm:$0xff] %v6509_v21  ;;  %v8370_v32 = vand.u32 4294901760, %v6504_v51 }
 0x1c1   : > { %v6506_v45 = vadd.f32 %v1834_v56, %v1105_v58  ;;  %8767 = vst [vmem:[#allocation281_spill] sm:$0xff] %v6515_v36  ;;  %v1254_v56 = vsub.f32 %v6496_v0, %v8363_v11  ;;  %v6524_v58 = vsub.f32 %v264_v47, %v6509_v21 }
 0x1c3   : > { %8764 = vst [vmem:[#allocation278_spill] sm:$0xff] %v6506_v45  ;;  %v1255_v0 = vand.u32 4294901760, %v1254_v56  ;;  %v8373_v47 = vand.u32 4294901760, %v6524_v58  ;;  %v6537_v45 = vand.u32 4294901760, %v265_v19  ;;  %v266_v56 = vld [vmem:[%s4940_s10 + $0x3b8] sm:$0xff] }
 0x1c4   : > { %v6512_v2 = vpop.f32.mrf.mxu1  ;;  %8769 = vst [vmem:[#allocation283_spill] sm:$0xff] %v6524_v58 }
 0x1c5   : > { %8766 = vst [vmem:[#allocation280_spill] sm:$0xff] %v6512_v2  ;;  %1248 = vmatmul.f32.gmra.mxu2 %v1247_v1  ;;  %1901 = vmatmul.f32.gmra.mxu3 %v6425_v44  ;;  %v6521_v52 = vpop.f32.mrf.mxu0  ;;  %v742_v1 = vsub.f32 %v6504_v51, %v8370_v32  ;;  %v6532_v44 = vsub.f32 %v200_v61, %v6515_v36 }
 0x1c6   : > { %8768 = vst [vmem:[#allocation282_spill] sm:$0xff] %v6521_v52  ;;  %v201_v52 = vld [vmem:[%s4940_s10 + $0x1b0] sm:$0xff] }
 0x1c7   : > { %1645 = vmatmul.f32.gmra.mxu1 %v6431_v30  ;;  %8770 = vst [vmem:[#allocation284_spill] sm:$0xff] %v6532_v44  ;;  %v743_v2 = vand.u32 4294901760, %v742_v1  ;;  %v6543_v30 = vand.u32 4294901760, %v201_v52 }
 0x1c8   : > { %v1121_v60 = vpop.f32.mrf.mxu2  ;;  %v1838_v31 = vpop.f32.mrf.mxu3  ;;  %736 = vmatmul.f32.gmra.mxu0 %v735_v54  ;;  %8772 = vst [vmem:[#allocation286_spill] sm:$0xff] %v6537_v45  ;;  %v8380_v54 = vand.u32 4294901760, %v6532_v44 }
 0x1c9   : > { %v6534_v11 = vadd.f32 %v1838_v31, %v1113_v63  ;;  %8774 = vst [vmem:[#allocation288_spill] sm:$0xff] %v6543_v30  ;;  %v1262_v31 = vsub.f32 %v6524_v58, %v8373_v47  ;;  %v6552_v63 = vsub.f32 %v265_v19, %v6537_v45 }
 0x1cb   : > { %8771 = vst [vmem:[#allocation285_spill] sm:$0xff] %v6534_v11  ;;  %v1263_v58 = vand.u32 4294901760, %v1262_v31  ;;  %v8383_v19 = vand.u32 4294901760, %v6552_v63  ;;  %v6565_v11 = vand.u32 4294901760, %v266_v56  ;;  %v267_v31 = vld [vmem:[%s4940_s10 + $0x3c0] sm:$0xff] }
 0x1cc   : > { %v6540_v46 = vpop.f32.mrf.mxu1  ;;  %8776 = vst [vmem:[#allocation290_spill] sm:$0xff] %v6552_v63 }
 0x1cd   : > { %8773 = vst [vmem:[#allocation287_spill] sm:$0xff] %v6540_v46  ;;  %1256 = vmatmul.f32.gmra.mxu2 %v1255_v0  ;;  %1905 = vmatmul.f32.gmra.mxu3 %v6453_v3  ;;  %v6549_v61 = vpop.f32.mrf.mxu0  ;;  %v750_v0 = vsub.f32 %v6532_v44, %v8380_v54  ;;  %v6560_v3 = vsub.f32 %v201_v52, %v6543_v30 }
 0x1ce   : > { %8775 = vst [vmem:[#allocation289_spill] sm:$0xff] %v6549_v61  ;;  %v202_v61 = vld [vmem:[%s4940_s10 + $0x1b8] sm:$0xff] }
 0x1cf   : > { %1649 = vmatmul.f32.gmra.mxu1 %v6459_v23  ;;  %8777 = vst [vmem:[#allocation291_spill] sm:$0xff] %v6560_v3  ;;  %v751_v46 = vand.u32 4294901760, %v750_v0  ;;  %v6571_v23 = vand.u32 4294901760, %v202_v61 }
 0x1d0   : > { %v1129_v1 = vpop.f32.mrf.mxu2  ;;  %v1842_v32 = vpop.f32.mrf.mxu3  ;;  %744 = vmatmul.f32.gmra.mxu0 %v743_v2  ;;  %8779 = vst [vmem:[#allocation293_spill] sm:$0xff] %v6565_v11  ;;  %v8390_v2 = vand.u32 4294901760, %v6560_v3 }
 0x1d1   : > { %v6562_v47 = vadd.f32 %v1842_v32, %v1121_v60  ;;  %8781 = vst [vmem:[#allocation295_spill] sm:$0xff] %v6571_v23  ;;  %v1270_v32 = vsub.f32 %v6552_v63, %v8383_v19  ;;  %v6580_v60 = vsub.f32 %v266_v56, %v6565_v11 }
 0x1d3   : > { %8778 = vst [vmem:[#allocation292_spill] sm:$0xff] %v6562_v47  ;;  %v1271_v63 = vand.u32 4294901760, %v1270_v32  ;;  %v8393_v56 = vand.u32 4294901760, %v6580_v60  ;;  %v6593_v47 = vand.u32 4294901760, %v267_v31  ;;  %v268_v32 = vld [vmem:[%s4940_s10 + $0x3c8] sm:$0xff] }
 0x1d4   : > { %v6568_v51 = vpop.f32.mrf.mxu1  ;;  %8783 = vst [vmem:[#allocation297_spill] sm:$0xff] %v6580_v60 }
 0x1d5   : > { %8780 = vst [vmem:[#allocation294_spill] sm:$0xff] %v6568_v51  ;;  %1264 = vmatmul.f32.gmra.mxu2 %v1263_v58  ;;  %1909 = vmatmul.f32.gmra.mxu3 %v6481_v41  ;;  %v6577_v52 = vpop.f32.mrf.mxu0  ;;  %v758_v58 = vsub.f32 %v6560_v3, %v8390_v2  ;;  %v6588_v41 = vsub.f32 %v202_v61, %v6571_v23 }
 0x1d6   : > { %8782 = vst [vmem:[#allocation296_spill] sm:$0xff] %v6577_v52  ;;  %v203_v52 = vld [vmem:[%s4940_s10 + $0x1c0] sm:$0xff] }
 0x1d7   : > { %1653 = vmatmul.f32.gmra.mxu1 %v6487_v8  ;;  %8784 = vst [vmem:[#allocation298_spill] sm:$0xff] %v6588_v41  ;;  %v759_v51 = vand.u32 4294901760, %v758_v58  ;;  %v6599_v8 = vand.u32 4294901760, %v203_v52 }
 0x1d8   : > { %v1137_v0 = vpop.f32.mrf.mxu2  ;;  %v1846_v54 = vpop.f32.mrf.mxu3  ;;  %752 = vmatmul.f32.gmra.mxu0 %v751_v46  ;;  %8786 = vst [vmem:[#allocation300_spill] sm:$0xff] %v6593_v47  ;;  %v8400_v46 = vand.u32 4294901760, %v6588_v41 }
 0x1d9   : > { %v6590_v19 = vadd.f32 %v1846_v54, %v1129_v1  ;;  %8788 = vst [vmem:[#allocation302_spill] sm:$0xff] %v6599_v8  ;;  %v1278_v54 = vsub.f32 %v6580_v60, %v8393_v56  ;;  %v6608_v1 = vsub.f32 %v267_v31, %v6593_v47 }
 0x1db   : > { %8785 = vst [vmem:[#allocation299_spill] sm:$0xff] %v6590_v19  ;;  %v1279_v60 = vand.u32 4294901760, %v1278_v54  ;;  %v8403_v31 = vand.u32 4294901760, %v6608_v1  ;;  %v6621_v19 = vand.u32 4294901760, %v268_v32  ;;  %v269_v54 = vld [vmem:[%s4940_s10 + $0x3d0] sm:$0xff] }
 0x1dc   : > { %v6596_v44 = vpop.f32.mrf.mxu1  ;;  %8790 = vst [vmem:[#allocation304_spill] sm:$0xff] %v6608_v1 }
 0x1dd   : > { %8787 = vst [vmem:[#allocation301_spill] sm:$0xff] %v6596_v44  ;;  %1272 = vmatmul.f32.gmra.mxu2 %v1271_v63  ;;  %1913 = vmatmul.f32.gmra.mxu3 %v6509_v21  ;;  %v6605_v61 = vpop.f32.mrf.mxu0  ;;  %v766_v63 = vsub.f32 %v6588_v41, %v8400_v46  ;;  %v6616_v21 = vsub.f32 %v203_v52, %v6599_v8 }
 0x1de   : > { %8789 = vst [vmem:[#allocation303_spill] sm:$0xff] %v6605_v61  ;;  %v204_v61 = vld [vmem:[%s4940_s10 + $0x1c8] sm:$0xff] }
 0x1df   : > { %1657 = vmatmul.f32.gmra.mxu1 %v6515_v36  ;;  %8791 = vst [vmem:[#allocation305_spill] sm:$0xff] %v6616_v21  ;;  %v767_v44 = vand.u32 4294901760, %v766_v63  ;;  %v6627_v36 = vand.u32 4294901760, %v204_v61 }
 0x1e0   : > { %v1145_v58 = vpop.f32.mrf.mxu2  ;;  %v1850_v2 = vpop.f32.mrf.mxu3  ;;  %760 = vmatmul.f32.gmra.mxu0 %v759_v51  ;;  %8793 = vst [vmem:[#allocation307_spill] sm:$0xff] %v6621_v19  ;;  %v8410_v51 = vand.u32 4294901760, %v6616_v21 }
 0x1e1   : > { %v6618_v56 = vadd.f32 %v1850_v2, %v1137_v0  ;;  %8795 = vst [vmem:[#allocation309_spill] sm:$0xff] %v6627_v36  ;;  %v1286_v2 = vsub.f32 %v6608_v1, %v8403_v31  ;;  %v6636_v0 = vsub.f32 %v268_v32, %v6621_v19 }
 0x1e3   : > { %8792 = vst [vmem:[#allocation306_spill] sm:$0xff] %v6618_v56  ;;  %v1287_v1 = vand.u32 4294901760, %v1286_v2  ;;  %v8413_v32 = vand.u32 4294901760, %v6636_v0  ;;  %v6649_v56 = vand.u32 4294901760, %v269_v54  ;;  %v270_v2 = vld [vmem:[%s4940_s10 + $0x3d8] sm:$0xff] }
 0x1e4   : > { %v6624_v3 = vpop.f32.mrf.mxu1  ;;  %8797 = vst [vmem:[#allocation311_spill] sm:$0xff] %v6636_v0 }
 0x1e5   : > { %8794 = vst [vmem:[#allocation308_spill] sm:$0xff] %v6624_v3  ;;  %1280 = vmatmul.f32.gmra.mxu2 %v1279_v60  ;;  %1917 = vmatmul.f32.gmra.mxu3 %v6537_v45  ;;  %v6633_v52 = vpop.f32.mrf.mxu0  ;;  %v774_v60 = vsub.f32 %v6616_v21, %v8410_v51  ;;  %v6644_v45 = vsub.f32 %v204_v61, %v6627_v36 }
 0x1e6   : > { %8796 = vst [vmem:[#allocation310_spill] sm:$0xff] %v6633_v52  ;;  %v205_v52 = vld [vmem:[%s4940_s10 + $0x1d0] sm:$0xff] }
 0x1e7   : > { %1661 = vmatmul.f32.gmra.mxu1 %v6543_v30  ;;  %8798 = vst [vmem:[#allocation312_spill] sm:$0xff] %v6644_v45  ;;  %v775_v3 = vand.u32 4294901760, %v774_v60  ;;  %v6655_v30 = vand.u32 4294901760, %v205_v52 }
 0x1e8   : > { %v1153_v63 = vpop.f32.mrf.mxu2  ;;  %v1854_v46 = vpop.f32.mrf.mxu3  ;;  %768 = vmatmul.f32.gmra.mxu0 %v767_v44  ;;  %8800 = vst [vmem:[#allocation314_spill] sm:$0xff] %v6649_v56  ;;  %v8420_v44 = vand.u32 4294901760, %v6644_v45 }
 0x1e9   : > { %v6646_v31 = vadd.f32 %v1854_v46, %v1145_v58  ;;  %8802 = vst [vmem:[#allocation316_spill] sm:$0xff] %v6655_v30  ;;  %v1294_v46 = vsub.f32 %v6636_v0, %v8413_v32  ;;  %v6664_v58 = vsub.f32 %v269_v54, %v6649_v56 }
 0x1eb   : > { %8799 = vst [vmem:[#allocation313_spill] sm:$0xff] %v6646_v31  ;;  %v1295_v0 = vand.u32 4294901760, %v1294_v46  ;;  %v8423_v54 = vand.u32 4294901760, %v6664_v58  ;;  %v6677_v31 = vand.u32 4294901760, %v270_v2  ;;  %v271_v46 = vld [vmem:[%s4940_s10 + $0x3e0] sm:$0xff] }
 0x1ec   : > { %v6652_v41 = vpop.f32.mrf.mxu1  ;;  %8804 = vst [vmem:[#allocation318_spill] sm:$0xff] %v6664_v58 }
 0x1ed   : > { %8801 = vst [vmem:[#allocation315_spill] sm:$0xff] %v6652_v41  ;;  %1288 = vmatmul.f32.gmra.mxu2 %v1287_v1  ;;  %1921 = vmatmul.f32.gmra.mxu3 %v6565_v11  ;;  %v6661_v61 = vpop.f32.mrf.mxu0  ;;  %v782_v1 = vsub.f32 %v6644_v45, %v8420_v44  ;;  %v6672_v11 = vsub.f32 %v205_v52, %v6655_v30 }
 0x1ee   : > { %8803 = vst [vmem:[#allocation317_spill] sm:$0xff] %v6661_v61  ;;  %v206_v61 = vld [vmem:[%s4940_s10 + $0x1d8] sm:$0xff] }
 0x1ef   : > { %1665 = vmatmul.f32.gmra.mxu1 %v6571_v23  ;;  %8805 = vst [vmem:[#allocation319_spill] sm:$0xff] %v6672_v11  ;;  %v783_v41 = vand.u32 4294901760, %v782_v1  ;;  %v6683_v23 = vand.u32 4294901760, %v206_v61 }
 0x1f0   : > { %v1161_v60 = vpop.f32.mrf.mxu2  ;;  %v1858_v51 = vpop.f32.mrf.mxu3  ;;  %776 = vmatmul.f32.gmra.mxu0 %v775_v3  ;;  %8807 = vst [vmem:[#allocation321_spill] sm:$0xff] %v6677_v31  ;;  %v8430_v3 = vand.u32 4294901760, %v6672_v11 }
 0x1f1   : > { %v6674_v32 = vadd.f32 %v1858_v51, %v1153_v63  ;;  %8809 = vst [vmem:[#allocation323_spill] sm:$0xff] %v6683_v23  ;;  %v1302_v51 = vsub.f32 %v6664_v58, %v8423_v54  ;;  %v6692_v63 = vsub.f32 %v270_v2, %v6677_v31 }
 0x1f3   : > { %8806 = vst [vmem:[#allocation320_spill] sm:$0xff] %v6674_v32  ;;  %v1303_v58 = vand.u32 4294901760, %v1302_v51  ;;  %v8433_v2 = vand.u32 4294901760, %v6692_v63  ;;  %v6705_v32 = vand.u32 4294901760, %v271_v46  ;;  %v272_v51 = vld [vmem:[%s4940_s10 + $0x3e8] sm:$0xff] }
 0x1f4   : > { %v6680_v21 = vpop.f32.mrf.mxu1  ;;  %8811 = vst [vmem:[#allocation325_spill] sm:$0xff] %v6692_v63 }
 0x1f5   : > { %8808 = vst [vmem:[#allocation322_spill] sm:$0xff] %v6680_v21  ;;  %1296 = vmatmul.f32.gmra.mxu2 %v1295_v0  ;;  %1925 = vmatmul.f32.gmra.mxu3 %v6593_v47  ;;  %v6689_v52 = vpop.f32.mrf.mxu0  ;;  %v790_v0 = vsub.f32 %v6672_v11, %v8430_v3  ;;  %v6700_v47 = vsub.f32 %v206_v61, %v6683_v23 }
 0x1f6   : > { %8810 = vst [vmem:[#allocation324_spill] sm:$0xff] %v6689_v52  ;;  %v207_v52 = vld [vmem:[%s4940_s10 + $0x1e0] sm:$0xff] }
 0x1f7   : > { %1669 = vmatmul.f32.gmra.mxu1 %v6599_v8  ;;  %8812 = vst [vmem:[#allocation326_spill] sm:$0xff] %v6700_v47  ;;  %v791_v21 = vand.u32 4294901760, %v790_v0  ;;  %v6711_v8 = vand.u32 4294901760, %v207_v52 }
 0x1f8   : > { %v1169_v1 = vpop.f32.mrf.mxu2  ;;  %v1862_v44 = vpop.f32.mrf.mxu3  ;;  %784 = vmatmul.f32.gmra.mxu0 %v783_v41  ;;  %8814 = vst [vmem:[#allocation328_spill] sm:$0xff] %v6705_v32  ;;  %v8440_v41 = vand.u32 4294901760, %v6700_v47 }
 0x1f9   : > { %v6702_v54 = vadd.f32 %v1862_v44, %v1161_v60  ;;  %v1310_v44 = vsub.f32 %v6692_v63, %v8433_v2  ;;  %v6720_v60 = vsub.f32 %v271_v46, %v6705_v32 }
 0x1fb   : > { %8813 = vst [vmem:[#allocation327_spill] sm:$0xff] %v6702_v54  ;;  %v1311_v63 = vand.u32 4294901760, %v1310_v44  ;;  %v8443_v46 = vand.u32 4294901760, %v6720_v60  ;;  %v6733_v54 = vand.u32 4294901760, %v272_v51  ;;  %v273_v44 = vld [vmem:[%s4940_s10 + $0x3f0] sm:$0xff] }
 0x1fc   : > { %v6708_v45 = vpop.f32.mrf.mxu1  ;;  %8817 = vst [vmem:[#allocation331_spill] sm:$0xff] %v6720_v60 }
 0x1fd   : > { %8815 = vst [vmem:[#allocation329_spill] sm:$0xff] %v6708_v45  ;;  %1304 = vmatmul.f32.gmra.mxu2 %v1303_v58  ;;  %1929 = vmatmul.f32.gmra.mxu3 %v6621_v19  ;;  %v6717_v61 = vpop.f32.mrf.mxu0  ;;  %v798_v58 = vsub.f32 %v6700_v47, %v8440_v41  ;;  %v6728_v19 = vsub.f32 %v207_v52, %v6711_v8 }
 0x1fe   : > { %8816 = vst [vmem:[#allocation330_spill] sm:$0xff] %v6717_v61  ;;  %v208_v61 = vld [vmem:[%s4940_s10 + $0x1e8] sm:$0xff] }
 0x1ff   : > { %1673 = vmatmul.f32.gmra.mxu1 %v6627_v36  ;;  %8818 = vst [vmem:[#allocation332_spill] sm:$0xff] %v6728_v19  ;;  %v799_v45 = vand.u32 4294901760, %v798_v58  ;;  %v6739_v36 = vand.u32 4294901760, %v208_v61 }
 0x200   : > { %v1177_v0 = vpop.f32.mrf.mxu2  ;;  %v1866_v3 = vpop.f32.mrf.mxu3  ;;  %792 = vmatmul.f32.gmra.mxu0 %v791_v21  ;;  %8820 = vst [vmem:[#allocation334_spill] sm:$0xff] %v6733_v54  ;;  %v8450_v21 = vand.u32 4294901760, %v6728_v19 }
 0x201   : > { %v6730_v2 = vadd.f32 %v1866_v3, %v1169_v1  ;;  %v1318_v3 = vsub.f32 %v6720_v60, %v8443_v46  ;;  %v6748_v1 = vsub.f32 %v272_v51, %v6733_v54 }
 0x203   : > { %8819 = vst [vmem:[#allocation333_spill] sm:$0xff] %v6730_v2  ;;  %v1319_v60 = vand.u32 4294901760, %v1318_v3  ;;  %v8453_v51 = vand.u32 4294901760, %v6748_v1  ;;  %v6761_v2 = vand.u32 4294901760, %v273_v44  ;;  %v274_v3 = vld [vmem:[%s4940_s10 + $0x3f8] sm:$0xff] }
 0x204   : > { %v6736_v11 = vpop.f32.mrf.mxu1  ;;  %8823 = vst [vmem:[#allocation337_spill] sm:$0xff] %v6748_v1 }
 0x205   : > { %8821 = vst [vmem:[#allocation335_spill] sm:$0xff] %v6736_v11  ;;  %1312 = vmatmul.f32.gmra.mxu2 %v1311_v63  ;;  %1933 = vmatmul.f32.gmra.mxu3 %v6649_v56  ;;  %v6745_v52 = vpop.f32.mrf.mxu0  ;;  %v806_v63 = vsub.f32 %v6728_v19, %v8450_v21  ;;  %v6756_v56 = vsub.f32 %v208_v61, %v6739_v36 }
 0x206   : > { %8822 = vst [vmem:[#allocation336_spill] sm:$0xff] %v6745_v52  ;;  %v209_v52 = vld [vmem:[%s4940_s10 + $0x1f0] sm:$0xff] }
 0x207   : > { %1677 = vmatmul.f32.gmra.mxu1 %v6655_v30  ;;  %8825 = vst [vmem:[#allocation339_spill] sm:$0xff] %v6761_v2  ;;  %v807_v11 = vand.u32 4294901760, %v806_v63  ;;  %v6767_v30 = vand.u32 4294901760, %v209_v52 }
 0x208   : > { %v1185_v58 = vpop.f32.mrf.mxu2  ;;  %v1870_v41 = vpop.f32.mrf.mxu3  ;;  %800 = vmatmul.f32.gmra.mxu0 %v799_v45  ;;  %v8460_v45 = vand.u32 4294901760, %v6756_v56 }
 0x209   : > { %v6758_v46 = vadd.f32 %v1870_v41, %v1177_v0  ;;  %v1326_v41 = vsub.f32 %v6748_v1, %v8453_v51  ;;  %v6776_v0 = vsub.f32 %v273_v44, %v6761_v2  ;;  %v6789_v44 = vand.u32 4294901760, %v274_v3 }
 0x20b   : > { %8824 = vst [vmem:[#allocation338_spill] sm:$0xff] %v6758_v46  ;;  %v1327_v51 = vand.u32 4294901760, %v1326_v41  ;;  %v8463_v1 = vand.u32 4294901760, %v6776_v0 }
 0x20c   : > { %v6764_v47 = vpop.f32.mrf.mxu1  ;;  %8828 = vst [vmem:[#allocation342_spill] sm:$0xff] %v6776_v0 }
 0x20d   : > { %8826 = vst [vmem:[#allocation340_spill] sm:$0xff] %v6764_v47  ;;  %1320 = vmatmul.f32.gmra.mxu2 %v1319_v60  ;;  %1937 = vmatmul.f32.gmra.mxu3 %v6677_v31  ;;  %v6773_v61 = vpop.f32.mrf.mxu0  ;;  %v814_v60 = vsub.f32 %v6756_v56, %v8460_v45  ;;  %v6784_v31 = vsub.f32 %v209_v52, %v6767_v30 }
 0x20e   : > { %8827 = vst [vmem:[#allocation341_spill] sm:$0xff] %v6773_v61  ;;  %v210_v61 = vld [vmem:[%s4940_s10 + $0x1f8] sm:$0xff] }
 0x20f   : > { %1681 = vmatmul.f32.gmra.mxu1 %v6683_v23  ;;  %8830 = vst [vmem:[#allocation344_spill] sm:$0xff] %v6789_v44  ;;  %v815_v47 = vand.u32 4294901760, %v814_v60  ;;  %v6795_v23 = vand.u32 4294901760, %v210_v61 }
 0x210   : > { %v1193_v63 = vpop.f32.mrf.mxu2  ;;  %v1874_v21 = vpop.f32.mrf.mxu3  ;;  %808 = vmatmul.f32.gmra.mxu0 %v807_v11  ;;  %v8466_v11 = vand.u32 4294901760, %v6784_v31 }
 0x211   : > { %v6786_v46 = vadd.f32 %v1874_v21, %v1185_v58  ;;  %v1334_v21 = vsub.f32 %v6776_v0, %v8463_v1  ;;  %v6804_v58 = vsub.f32 %v274_v3, %v6789_v44  ;;  %v6811_v45 = vsub.f32 %v210_v61, %v6795_v23 }
 0x213   : > { %8829 = vst [vmem:[#allocation343_spill] sm:$0xff] %v6786_v46  ;;  %v1335_v1 = vand.u32 4294901760, %v1334_v21  ;;  %v8469_v0 = vand.u32 4294901760, %v6804_v58 }
 0x214   : > { %v6792_v19 = vpop.f32.mrf.mxu1  ;;  %8832 = vst [vmem:[#allocation346_spill] sm:$0xff] %v6804_v58 }
 0x215   : > { %1328 = vmatmul.f32.gmra.mxu2 %v1327_v51  ;;  %1941 = vmatmul.f32.gmra.mxu3 %v6705_v32  ;;  %v6801_v52 = vpop.f32.mrf.mxu0  ;;  %v822_v51 = vsub.f32 %v6784_v31, %v8466_v11 }
 0x216   : > { %8831 = vst [vmem:[#allocation345_spill] sm:$0xff] %v6801_v52  ;;  %v8472_v52 = vand.u32 4294901760, %v6811_v45 }
 0x217   : > { %1685 = vmatmul.f32.gmra.mxu1 %v6711_v8  ;;  %v823_v3 = vand.u32 4294901760, %v822_v51 }
 0x218   : > { %v1201_v41 = vpop.f32.mrf.mxu2  ;;  %v1878_v60 = vpop.f32.mrf.mxu3  ;;  %816 = vmatmul.f32.gmra.mxu0 %v815_v47  ;;  %v1342_v47 = vsub.f32 %v6804_v58, %v8469_v0  ;;  %v830_v21 = vsub.f32 %v6811_v45, %v8472_v52 }
 0x219   : > { %v6813_v32 = vadd.f32 %v1878_v60, %v1193_v63 }
 0x21b   : > { %8833 = vst [vmem:[#allocation347_spill] sm:$0xff] %v6813_v32 }
 0x21c   : > { %v6816_v46 = vpop.f32.mrf.mxu1 }
 0x21d   : > { %1336 = vmatmul.f32.gmra.mxu2 %v1335_v1  ;;  %1945 = vmatmul.f32.gmra.mxu3 %v6733_v54  ;;  %v6823_v11 = vpop.f32.mrf.mxu0  ;;  %v1343_v1 = vand.u32 4294901760, %v1342_v47  ;;  %v831_v54 = vand.u32 4294901760, %v830_v21 }
 0x21e   : > { %8834 = vst [vmem:[#allocation348_spill] sm:$0xff] %v6823_v11 }
 0x21f   : > { %1689 = vmatmul.f32.gmra.mxu1 %v6739_v36 }
 0x220   : > { %v1209_v61 = vpop.f32.mrf.mxu2  ;;  %v1882_v63 = vpop.f32.mrf.mxu3  ;;  %824 = vmatmul.f32.gmra.mxu0 %v823_v3 }
 0x221   : > { %v6829_v60 = vadd.f32 %v1882_v63, %v1201_v41 }
 0x223   : > { %8835 = vst [vmem:[#allocation349_spill] sm:$0xff] %v6829_v60 }
 0x224   : > { %v6831_v51 = vpop.f32.mrf.mxu1 }
 0x225   : > { %1344 = vmatmul.f32.gmra.mxu2 %v1343_v1  ;;  %1949 = vmatmul.f32.gmra.mxu3 %v6761_v2  ;;  %v6834_v0 = vpop.f32.mrf.mxu0 }
 0x227   : > { %1693 = vmatmul.f32.gmra.mxu1 %v6767_v30 }
 0x228   : > { %v1217_v58 = vpop.f32.mrf.mxu2  ;;  %v1886_v32 = vpop.f32.mrf.mxu3  ;;  %832 = vmatmul.f32.gmra.mxu0 %v831_v54 }
 0x229   : > { %v6837_v3 = vadd.f32 %v1886_v32, %v1209_v61  ;;  %v8838_v32 = vand.u32 4294901760, %v5052_v57 }
 0x22b   : > { %8836 = vst [vmem:[#allocation350_spill] sm:$0xff] %v6837_v3 }
 0x22c   : > { %v6839_v11 = vpop.f32.mrf.mxu1 }
 0x22d   : > { %1953 = vmatmul.f32.gmra.mxu3 %v6789_v44  ;;  %2007 = vmatmul.f32.vlgmr.msrb.gmra.mxu2 %v5052_v57  ;;  %v6843_v41 = vpop.f32.mrf.mxu0 }
 0x22f   : > { %1697 = vmatmul.f32.gmra.mxu1 %v6795_v23 }
 0x230   : > { %v1225_v47 = vpop.f32.mrf.mxu2  ;;  %v1890_v63 = vpop.f32.mrf.mxu3  ;;  %3512 = vmatmul.f32.vlgmr.msrb.gmra.mxu0 %v5036_v42 }
 0x231   : > { %v6847_v21 = vadd.f32 %v1890_v63, %v1217_v58  ;;  %v8840_v58 = vand.u32 4294901760, %v5089_v62 }
 0x233   : > { %8837 = vst [vmem:[#allocation351_spill] sm:$0xff] %v6847_v21 }
 0x234   : > { %v6849_v1 = vpop.f32.mrf.mxu1 }
 0x235   : > { %2012 = vmatmul.f32.gmra.mxu2 %v5089_v62  ;;  %2681 = vmatmul.f32.vlgmr.msrb.gmra.mxu3 %v8838_v32  ;;  %v6854_v54 = vpop.f32.mrf.mxu0 }
 0x237   : > { %4057 = vmatmul.f32.vlgmr.msrb.gmra.mxu1 %v5036_v42 }
 0x238   : > { %v1233_v61 = vpop.f32.mrf.mxu2  ;;  %v1894_v52 = vpop.f32.mrf.mxu3  ;;  %3516 = vmatmul.f32.gmra.mxu0 %v5064_v12 }
 0x239   : > { %v6858_v44 = vadd.f32 %v1894_v52, %v1225_v47  ;;  %v8842_v52 = vand.u32 4294901760, %v5121_v43 }
 0x23b   : > { %8839 = vst [vmem:[#allocation352_spill] sm:$0xff] %v6858_v44 }
 0x23c   : > { %v6860_v3 = vpop.f32.mrf.mxu1 }
 0x23d   : > { %2017 = vmatmul.f32.gmra.mxu2 %v5121_v43  ;;  %2687 = vmatmul.f32.gmra.mxu3 %v8840_v58  ;;  %v6865_v63 = vpop.f32.mrf.mxu0 }
 0x23f   : > { %4061 = vmatmul.f32.gmra.mxu1 %v5064_v12 }
 0x240   : > { %v1241_v57 = vpop.f32.mrf.mxu2  ;;  %v1898_v32 = vpop.f32.mrf.mxu3  ;;  %3520 = vmatmul.f32.gmra.mxu0 %v5106_v7 }
 0x241   : > { %v6869_v42 = vadd.f32 %v1898_v32, %v1233_v61  ;;  %v8844_v61 = vand.u32 4294901760, %v5153_v25 }
 0x243   : > { %8841 = vst [vmem:[#allocation353_spill] sm:$0xff] %v6869_v42 }
 0x244   : > { %v6871_v21 = vpop.f32.mrf.mxu1 }
 0x245   : > { %2022 = vmatmul.f32.gmra.mxu2 %v5153_v25  ;;  %2693 = vmatmul.f32.gmra.mxu3 %v8842_v52  ;;  %v6876_v47 = vpop.f32.mrf.mxu0 }
 0x247   : > { %4065 = vmatmul.f32.gmra.mxu1 %v5106_v7 }
 0x248   : > { %v1249_v62 = vpop.f32.mrf.mxu2  ;;  %v1902_v58 = vpop.f32.mrf.mxu3  ;;  %3524 = vmatmul.f32.gmra.mxu0 %v5133_v48 }
 0x249   : > { %v6880_v12 = vadd.f32 %v1902_v58, %v1241_v57  ;;  %v8846_v57 = vand.u32 4294901760, %v5188_v20 }
 0x24b   : > { %8843 = vst [vmem:[#allocation354_spill] sm:$0xff] %v6880_v12 }
 0x24c   : > { %v6882_v44 = vpop.f32.mrf.mxu1 }
 0x24d   : > { %2027 = vmatmul.f32.gmra.mxu2 %v5188_v20  ;;  %2699 = vmatmul.f32.gmra.mxu3 %v8844_v61  ;;  %v6887_v32 = vpop.f32.mrf.mxu0 }
 0x24f   : > { %4069 = vmatmul.f32.gmra.mxu1 %v5133_v48 }
 0x250   : > { %v1257_v43 = vpop.f32.mrf.mxu2  ;;  %v1906_v52 = vpop.f32.mrf.mxu3  ;;  %3528 = vmatmul.f32.gmra.mxu0 %v5167_v55 }
 0x251   : > { %v6891_v7 = vadd.f32 %v1906_v52, %v1249_v62  ;;  %v8848_v62 = vand.u32 4294901760, %v5225_v22 }
 0x253   : > { %8845 = vst [vmem:[#allocation355_spill] sm:$0xff] %v6891_v7 }
 0x254   : > { %v6893_v42 = vpop.f32.mrf.mxu1 }
 0x255   : > { %2032 = vmatmul.f32.gmra.mxu2 %v5225_v22  ;;  %2705 = vmatmul.f32.gmra.mxu3 %v8846_v57  ;;  %v6898_v58 = vpop.f32.mrf.mxu0 }
 0x257   : > { %4073 = vmatmul.f32.gmra.mxu1 %v5167_v55 }
 0x258   : > { %v1265_v25 = vpop.f32.mrf.mxu2  ;;  %v1910_v61 = vpop.f32.mrf.mxu3  ;;  %3532 = vmatmul.f32.gmra.mxu0 %v5204_v15 }
 0x259   : > { %v6902_v48 = vadd.f32 %v1910_v61, %v1257_v43  ;;  %v8850_v43 = vand.u32 4294901760, %v5262_v9 }
 0x25b   : > { %8847 = vst [vmem:[#allocation356_spill] sm:$0xff] %v6902_v48 }
 0x25c   : > { %v6904_v12 = vpop.f32.mrf.mxu1 }
 0x25d   : > { %2037 = vmatmul.f32.gmra.mxu2 %v5262_v9  ;;  %2711 = vmatmul.f32.gmra.mxu3 %v8848_v62  ;;  %v6909_v52 = vpop.f32.mrf.mxu0 }
 0x25f   : > { %4077 = vmatmul.f32.gmra.mxu1 %v5204_v15 }
 0x260   : > { %v1273_v20 = vpop.f32.mrf.mxu2  ;;  %v1914_v57 = vpop.f32.mrf.mxu3  ;;  %3536 = vmatmul.f32.gmra.mxu0 %v5240_v26 }
 0x261   : > { %v6913_v55 = vadd.f32 %v1914_v57, %v1265_v25  ;;  %v8852_v25 = vand.u32 4294901760, %v5299_v40 }
 0x263   : > { %8849 = vst [vmem:[#allocation357_spill] sm:$0xff] %v6913_v55 }
 0x264   : > { %v6915_v7 = vpop.f32.mrf.mxu1 }
 0x265   : > { %2042 = vmatmul.f32.gmra.mxu2 %v5299_v40  ;;  %2717 = vmatmul.f32.gmra.mxu3 %v8850_v43  ;;  %v6920_v61 = vpop.f32.mrf.mxu0 }
 0x267   : > { %4081 = vmatmul.f32.gmra.mxu1 %v5240_v26 }
 0x268   : > { %v1281_v22 = vpop.f32.mrf.mxu2  ;;  %v1918_v62 = vpop.f32.mrf.mxu3  ;;  %3540 = vmatmul.f32.gmra.mxu0 %v5277_v39 }
 0x269   : > { %v6924_v15 = vadd.f32 %v1918_v62, %v1273_v20  ;;  %v8854_v20 = vand.u32 4294901760, %v5332_v37 }
 0x26b   : > { %8851 = vst [vmem:[#allocation358_spill] sm:$0xff] %v6924_v15 }
 0x26c   : > { %v6926_v48 = vpop.f32.mrf.mxu1 }
 0x26d   : > { %2047 = vmatmul.f32.gmra.mxu2 %v5332_v37  ;;  %2723 = vmatmul.f32.gmra.mxu3 %v8852_v25  ;;  %v6931_v57 = vpop.f32.mrf.mxu0 }
 0x26f   : > { %4085 = vmatmul.f32.gmra.mxu1 %v5277_v39 }
 0x270   : > { %v1289_v9 = vpop.f32.mrf.mxu2  ;;  %v1922_v43 = vpop.f32.mrf.mxu3  ;;  %3544 = vmatmul.f32.gmra.mxu0 %v5314_v49 }
 0x271   : > { %v6935_v26 = vadd.f32 %v1922_v43, %v1281_v22  ;;  %v8856_v22 = vand.u32 4294901760, %v5354_v34 }
 0x273   : > { %8853 = vst [vmem:[#allocation359_spill] sm:$0xff] %v6935_v26 }
 0x274   : > { %v6937_v55 = vpop.f32.mrf.mxu1 }
 0x275   : > { %2052 = vmatmul.f32.gmra.mxu2 %v5354_v34  ;;  %2729 = vmatmul.f32.gmra.mxu3 %v8854_v20  ;;  %v6942_v62 = vpop.f32.mrf.mxu0 }
 0x277   : > { %4089 = vmatmul.f32.gmra.mxu1 %v5314_v49 }
 0x278   : > { %v1297_v40 = vpop.f32.mrf.mxu2  ;;  %v1926_v25 = vpop.f32.mrf.mxu3  ;;  %3548 = vmatmul.f32.gmra.mxu0 %v5339_v29 }
 0x279   : > { %v6946_v39 = vadd.f32 %v1926_v25, %v1289_v9  ;;  %v8858_v9 = vand.u32 4294901760, %v5376_v17 }
 0x27b   : > { %8855 = vst [vmem:[#allocation360_spill] sm:$0xff] %v6946_v39 }
 0x27c   : > { %v6948_v15 = vpop.f32.mrf.mxu1 }
 0x27d   : > { %2057 = vmatmul.f32.gmra.mxu2 %v5376_v17  ;;  %2735 = vmatmul.f32.gmra.mxu3 %v8856_v22  ;;  %v6953_v43 = vpop.f32.mrf.mxu0 }
 0x27f   : > { %4093 = vmatmul.f32.gmra.mxu1 %v5339_v29 }
 0x280   : > { %v1305_v37 = vpop.f32.mrf.mxu2  ;;  %v1930_v20 = vpop.f32.mrf.mxu3  ;;  %3552 = vmatmul.f32.gmra.mxu0 %v5361_v53 }
 0x281   : > { %v6957_v49 = vadd.f32 %v1930_v20, %v1297_v40  ;;  %v8860_v40 = vand.u32 4294901760, %v5398_v18 }
 0x283   : > { %8857 = vst [vmem:[#allocation361_spill] sm:$0xff] %v6957_v49 }
 0x284   : > { %v6959_v26 = vpop.f32.mrf.mxu1 }
 0x285   : > { %2062 = vmatmul.f32.gmra.mxu2 %v5398_v18  ;;  %2741 = vmatmul.f32.gmra.mxu3 %v8858_v9  ;;  %v6964_v25 = vpop.f32.mrf.mxu0 }
 0x287   : > { %4097 = vmatmul.f32.gmra.mxu1 %v5361_v53 }
 0x288   : > { %v1313_v34 = vpop.f32.mrf.mxu2  ;;  %v1934_v22 = vpop.f32.mrf.mxu3  ;;  %3556 = vmatmul.f32.gmra.mxu0 %v5383_v59 }
 0x289   : > { %v6968_v29 = vadd.f32 %v1934_v22, %v1305_v37  ;;  %v8862_v37 = vand.u32 4294901760, %v5420_v5 }
 0x28b   : > { %8859 = vst [vmem:[#allocation362_spill] sm:$0xff] %v6968_v29 }
 0x28c   : > { %v6970_v39 = vpop.f32.mrf.mxu1 }
 0x28d   : > { %2067 = vmatmul.f32.gmra.mxu2 %v5420_v5  ;;  %2747 = vmatmul.f32.gmra.mxu3 %v8860_v40  ;;  %v6975_v20 = vpop.f32.mrf.mxu0 }
 0x28f   : > { %4101 = vmatmul.f32.gmra.mxu1 %v5383_v59 }
 0x290   : > { %v1321_v17 = vpop.f32.mrf.mxu2  ;;  %v1938_v9 = vpop.f32.mrf.mxu3  ;;  %3560 = vmatmul.f32.gmra.mxu0 %v5405_v14 }
 0x291   : > { %v6979_v53 = vadd.f32 %v1938_v9, %v1313_v34  ;;  %v8864_v34 = vand.u32 4294901760, %v5442_v6 }
 0x293   : > { %8861 = vst [vmem:[#allocation363_spill] sm:$0xff] %v6979_v53 }
 0x294   : > { %v6981_v49 = vpop.f32.mrf.mxu1 }
 0x295   : > { %2072 = vmatmul.f32.gmra.mxu2 %v5442_v6  ;;  %2753 = vmatmul.f32.gmra.mxu3 %v8862_v37  ;;  %v6986_v22 = vpop.f32.mrf.mxu0 }
 0x297   : > { %4105 = vmatmul.f32.gmra.mxu1 %v5405_v14 }
 0x298   : > { %v1329_v18 = vpop.f32.mrf.mxu2  ;;  %v1942_v40 = vpop.f32.mrf.mxu3  ;;  %3564 = vmatmul.f32.gmra.mxu0 %v5427_v28 }
 0x299   : > { %v6990_v59 = vadd.f32 %v1942_v40, %v1321_v17  ;;  %v8866_v17 = vand.u32 4294901760, %v5464_v4 }
 0x29b   : > { %8863 = vst [vmem:[#allocation364_spill] sm:$0xff] %v6990_v59 }
 0x29c   : > { %v6992_v29 = vpop.f32.mrf.mxu1 }
 0x29d   : > { %2077 = vmatmul.f32.gmra.mxu2 %v5464_v4  ;;  %2759 = vmatmul.f32.gmra.mxu3 %v8864_v34  ;;  %v6997_v9 = vpop.f32.mrf.mxu0 }
 0x29f   : > { %4109 = vmatmul.f32.gmra.mxu1 %v5427_v28 }
 0x2a0   : > { %v1337_v5 = vpop.f32.mrf.mxu2  ;;  %v1946_v37 = vpop.f32.mrf.mxu3  ;;  %3568 = vmatmul.f32.gmra.mxu0 %v5449_v50 }
 0x2a1   : > { %v7001_v14 = vadd.f32 %v1946_v37, %v1329_v18  ;;  %v8870_v18 = vand.u32 4294901760, %v5486_v13 }
 0x2a3   : > { %8865 = vst [vmem:[#allocation365_spill] sm:$0xff] %v7001_v14 }
 0x2a4   : > { %v7003_v53 = vpop.f32.mrf.mxu1 }
 0x2a5   : > { %2082 = vmatmul.f32.gmra.mxu2 %v5486_v13  ;;  %2765 = vmatmul.f32.gmra.mxu3 %v8866_v17  ;;  %v7008_v40 = vpop.f32.mrf.mxu0 }
 0x2a6   : > { %8867 = vst [vmem:[#allocation366_spill] sm:$0xff] %v7008_v40  ;;  %v8880_v40 = vld [vmem:[#allocation46_spill] sm:$0xff] }
 0x2a7   : > { %4113 = vmatmul.f32.gmra.mxu1 %v5449_v50 }
 0x2a8   : > { %v1345_v6 = vpop.f32.mrf.mxu2  ;;  %v1950_v34 = vpop.f32.mrf.mxu3  ;;  %3572 = vmatmul.f32.gmra.mxu0 %v5471_v27 }
 0x2a9   : > { %v7012_v28 = vadd.f32 %v1950_v34, %v1337_v5  ;;  %v1447_v5 = vadd.f32 %v5560_v38, %v5543_v35  ;;  %v8872_v34 = vand.u32 4294901760, %v5508_v33  ;;  %v8874_v35 = vld [vmem:[#allocation49_spill] sm:$0xff] }
 0x2ab   : > { %8868 = vst [vmem:[#allocation367_spill] sm:$0xff] %v7012_v28 }
 0x2ac   : > { %v7014_v59 = vpop.f32.mrf.mxu1 }
 0x2ad   : > { %8869 = vst [vmem:[#allocation368_spill] sm:$0xff] %v7014_v59  ;;  %2087 = vmatmul.f32.gmra.mxu2 %v5508_v33  ;;  %2771 = vmatmul.f32.gmra.mxu3 %v8870_v18  ;;  %v3513_v37 = vpop.f32.mrf.mxu0  ;;  %v8873_v33 = vld [vmem:[#allocation44_spill] sm:$0xff] }
 0x2af   : > { %4117 = vmatmul.f32.gmra.mxu1 %v5471_v27 }
 0x2b0   : > { %v1954_v4 = vpop.f32.mrf.mxu3  ;;  %v2008_v17 = vpop.f32.mrf.mxu2  ;;  %3576 = vmatmul.f32.gmra.mxu0 %v5493_v10 }
 0x2b1   : > { %v7021_v50 = vadd.f32 %v1954_v4, %v1345_v6  ;;  %v2009_v18 = vadd.f32 %v2008_v17, %v1447_v5  ;;  %v1451_v4 = vadd.f32 %v8874_v35, %v8873_v33  ;;  %v8875_v5 = vld [vmem:[#allocation41_spill] sm:$0xff]  ;;  %v8878_v33 = vld [vmem:[#allocation51_spill] sm:$0xff] }
 0x2b3   : > { %8871 = vst [vmem:[#allocation369_spill] sm:$0xff] %v7021_v50 }
 0x2b4   : > { %v4058_v14 = vpop.f32.mrf.mxu1 }
 0x2b5   : > { %2092 = vmatmul.f32.gmra.mxu2 %v5530_v24  ;;  %2777 = vmatmul.f32.gmra.mxu3 %v8872_v34  ;;  %v3517_v13 = vpop.f32.mrf.mxu0 }
 0x2b7   : > { %4121 = vmatmul.f32.gmra.mxu1 %v5493_v10  ;;  %v8876_v10 = vand.u32 4294901760, %v5530_v24  ;;  %v8881_v24 = vand.u32 4294901760, %v8875_v5 }
 0x2b8   : > { %v2013_v27 = vpop.f32.mrf.mxu2  ;;  %v2682_v28 = vpop.f32.mrf.mxu3  ;;  %3580 = vmatmul.f32.gmra.mxu0 %v5515_v16 }
 0x2b9   : > { %v2683_v2 = vadd.f32 %v2682_v28, %v2009_v18  ;;  %v8877_v18 = vld [vmem:[#allocation39_spill] sm:$0xff] }
 0x2bb   : > { %v3514_v6 = vadd.f32 %v3513_v37, %v2683_v2  ;;  %v2014_v2 = vadd.f32 %v2013_v27, %v1451_v4 }
 0x2bc   : > { %v4062_v38 = vpop.f32.mrf.mxu1 }
 0x2bd   : > { %v4059_v17 = vadd.f32 %v4058_v14, %v3514_v6  ;;  %2097 = vmatmul.f32.gmra.mxu2 %v8875_v5  ;;  %2783 = vmatmul.f32.gmra.mxu3 %v8876_v10  ;;  %v3521_v34 = vpop.f32.mrf.mxu0  ;;  %v8879_v14 = vld [vmem:[#allocation56_spill] sm:$0xff]  ;;  %v8882_v10 = vld [vmem:[#allocation43_spill] sm:$0xff]  ;;  %v8886_v5 = vand.u32 4294901760, %v8880_v40 }
 0x2be   : > { %v1455_v6 = vadd.f32 %v8879_v14, %v8878_v33  ;;  %v8885_v14 = vld [vmem:[#allocation53_spill] sm:$0xff] }
 0x2bf   : > { %4569 = vst [vmem:[%s7035_s24] sm:$0xff] %v4059_v17  ;;  %4125 = vmatmul.f32.gmra.mxu1 %v5515_v16 }
 0x2c0   : > { %v2018_v28 = vpop.f32.mrf.mxu2  ;;  %v2688_v37 = vpop.f32.mrf.mxu3  ;;  %3584 = vmatmul.f32.gmra.mxu0 %v8877_v18 }
 0x2c1   : > { %v2689_v50 = vadd.f32 %v2688_v37, %v2014_v2  ;;  %v2019_v4 = vadd.f32 %v2018_v28, %v1455_v6  ;;  %v8883_v37 = vld [vmem:[#allocation58_spill] sm:$0xff] }
 0x2c3   : > { %v3518_v60 = vadd.f32 %v3517_v13, %v2689_v50 }
 0x2c4   : > { %v4066_v59 = vpop.f32.mrf.mxu1 }
 0x2c5   : > { %v4063_v35 = vadd.f32 %v4062_v38, %v3518_v60  ;;  %2102 = vmatmul.f32.gmra.mxu2 %v8880_v40  ;;  %2789 = vmatmul.f32.gmra.mxu3 %v8881_v24  ;;  %v3525_v27 = vpop.f32.mrf.mxu0  ;;  %v8884_v60 = vld [vmem:[#allocation63_spill] sm:$0xff]  ;;  %v8887_v24 = vld [vmem:[#allocation50_spill] sm:$0xff]  ;;  %v8891_v40 = vand.u32 4294901760, %v8885_v14 }
 0x2c6   : > { %v1459_v38 = vadd.f32 %v8884_v60, %v8883_v37  ;;  %v8890_v60 = vld [vmem:[#allocation60_spill] sm:$0xff] }
 0x2c7   : > { %4570 = vst [vmem:[%s7035_s24 + $0x8] sm:$0xff] %v4063_v35  ;;  %4129 = vmatmul.f32.gmra.mxu1 %v8877_v18 }
 0x2c8   : > { %v2023_v16 = vpop.f32.mrf.mxu2  ;;  %v2694_v17 = vpop.f32.mrf.mxu3  ;;  %3588 = vmatmul.f32.gmra.mxu0 %v8882_v10 }
 0x2c9   : > { %v2695_v50 = vadd.f32 %v2694_v17, %v2019_v4  ;;  %v2024_v6 = vadd.f32 %v2023_v16, %v1459_v38 }
 0x2cb   : > { %v3522_v13 = vadd.f32 %v3521_v34, %v2695_v50  ;;  %v8888_v50 = vld [vmem:[#allocation65_spill] sm:$0xff] }
 0x2cc   : > { %v4070_v2 = vpop.f32.mrf.mxu1 }
 0x2cd   : > { %v4067_v33 = vadd.f32 %v4066_v59, %v3522_v13  ;;  %2107 = vmatmul.f32.gmra.mxu2 %v8885_v14  ;;  %2795 = vmatmul.f32.gmra.mxu3 %v8886_v5  ;;  %v3529_v28 = vpop.f32.mrf.mxu0  ;;  %v8889_v59 = vld [vmem:[#allocation70_spill] sm:$0xff]  ;;  %v8892_v5 = vld [vmem:[#allocation57_spill] sm:$0xff]  ;;  %v8896_v14 = vand.u32 4294901760, %v8890_v60 }
 0x2ce   : > { %v1463_v13 = vadd.f32 %v8889_v59, %v8888_v50  ;;  %v8895_v59 = vld [vmem:[#allocation67_spill] sm:$0xff] }
 0x2cf   : > { %4571 = vst [vmem:[%s7035_s24 + $0x10] sm:$0xff] %v4067_v33  ;;  %4133 = vmatmul.f32.gmra.mxu1 %v8882_v10 }
 0x2d0   : > { %v2028_v18 = vpop.f32.mrf.mxu2  ;;  %v2700_v35 = vpop.f32.mrf.mxu3  ;;  %3592 = vmatmul.f32.gmra.mxu0 %v8887_v24 }
 0x2d1   : > { %v2701_v34 = vadd.f32 %v2700_v35, %v2024_v6  ;;  %v2029_v38 = vadd.f32 %v2028_v18, %v1463_v13 }
 0x2d3   : > { %v3526_v4 = vadd.f32 %v3525_v27, %v2701_v34  ;;  %v8893_v34 = vld [vmem:[#allocation72_spill] sm:$0xff] }
 0x2d4   : > { %v4074_v17 = vpop.f32.mrf.mxu1 }
 0x2d5   : > { %v4071_v37 = vadd.f32 %v4070_v2, %v3526_v4  ;;  %2112 = vmatmul.f32.gmra.mxu2 %v8890_v60  ;;  %2801 = vmatmul.f32.gmra.mxu3 %v8891_v40  ;;  %v3533_v16 = vpop.f32.mrf.mxu0  ;;  %v8894_v2 = vld [vmem:[#allocation77_spill] sm:$0xff]  ;;  %v8897_v40 = vld [vmem:[#allocation64_spill] sm:$0xff]  ;;  %v8901_v60 = vand.u32 4294901760, %v8895_v59 }
 0x2d6   : > { %v1467_v4 = vadd.f32 %v8894_v2, %v8893_v34  ;;  %v8900_v2 = vld [vmem:[#allocation74_spill] sm:$0xff] }
 0x2d7   : > { %4572 = vst [vmem:[%s7035_s24 + $0x18] sm:$0xff] %v4071_v37  ;;  %4137 = vmatmul.f32.gmra.mxu1 %v8887_v24 }
 0x2d8   : > { %v2033_v10 = vpop.f32.mrf.mxu2  ;;  %v2706_v33 = vpop.f32.mrf.mxu3  ;;  %3596 = vmatmul.f32.gmra.mxu0 %v8892_v5 }
 0x2d9   : > { %v2707_v27 = vadd.f32 %v2706_v33, %v2029_v38  ;;  %v2034_v13 = vadd.f32 %v2033_v10, %v1467_v4 }
 0x2db   : > { %v3530_v6 = vadd.f32 %v3529_v28, %v2707_v27  ;;  %v8898_v27 = vld [vmem:[#allocation79_spill] sm:$0xff] }
 0x2dc   : > { %v4078_v35 = vpop.f32.mrf.mxu1 }
 0x2dd   : > { %v4075_v50 = vadd.f32 %v4074_v17, %v3530_v6  ;;  %2117 = vmatmul.f32.gmra.mxu2 %v8895_v59  ;;  %2807 = vmatmul.f32.gmra.mxu3 %v8896_v14  ;;  %v3537_v18 = vpop.f32.mrf.mxu0  ;;  %v8899_v17 = vld [vmem:[#allocation84_spill] sm:$0xff]  ;;  %v8902_v14 = vld [vmem:[#allocation71_spill] sm:$0xff]  ;;  %v8906_v59 = vand.u32 4294901760, %v8900_v2 }
 0x2de   : > { %v1471_v6 = vadd.f32 %v8899_v17, %v8898_v27  ;;  %v8905_v17 = vld [vmem:[#allocation81_spill] sm:$0xff] }
 0x2df   : > { %4573 = vst [vmem:[%s7035_s24 + $0x20] sm:$0xff] %v4075_v50  ;;  %4141 = vmatmul.f32.gmra.mxu1 %v8892_v5 }
 0x2e0   : > { %v2038_v24 = vpop.f32.mrf.mxu2  ;;  %v2712_v37 = vpop.f32.mrf.mxu3  ;;  %3600 = vmatmul.f32.gmra.mxu0 %v8897_v40 }
 0x2e1   : > { %v2713_v28 = vadd.f32 %v2712_v37, %v2034_v13  ;;  %v2039_v4 = vadd.f32 %v2038_v24, %v1471_v6 }
 0x2e3   : > { %v3534_v38 = vadd.f32 %v3533_v16, %v2713_v28  ;;  %v8903_v28 = vld [vmem:[#allocation86_spill] sm:$0xff] }
 0x2e4   : > { %v4082_v33 = vpop.f32.mrf.mxu1 }
 0x2e5   : > { %v4079_v34 = vadd.f32 %v4078_v35, %v3534_v38  ;;  %2122 = vmatmul.f32.gmra.mxu2 %v8900_v2  ;;  %2813 = vmatmul.f32.gmra.mxu3 %v8901_v60  ;;  %v3541_v10 = vpop.f32.mrf.mxu0  ;;  %v8904_v35 = vld [vmem:[#allocation91_spill] sm:$0xff]  ;;  %v8907_v60 = vld [vmem:[#allocation78_spill] sm:$0xff]  ;;  %v8911_v2 = vand.u32 4294901760, %v8905_v17 }
 0x2e6   : > { %v1475_v38 = vadd.f32 %v8904_v35, %v8903_v28  ;;  %v8910_v35 = vld [vmem:[#allocation88_spill] sm:$0xff] }
 0x2e7   : > { %4574 = vst [vmem:[%s7035_s24 + $0x28] sm:$0xff] %v4079_v34  ;;  %4145 = vmatmul.f32.gmra.mxu1 %v8897_v40 }
 0x2e8   : > { %v2043_v5 = vpop.f32.mrf.mxu2  ;;  %v2718_v50 = vpop.f32.mrf.mxu3  ;;  %3604 = vmatmul.f32.gmra.mxu0 %v8902_v14 }
 0x2e9   : > { %v2719_v16 = vadd.f32 %v2718_v50, %v2039_v4  ;;  %v2044_v6 = vadd.f32 %v2043_v5, %v1475_v38 }
 0x2eb   : > { %v3538_v13 = vadd.f32 %v3537_v18, %v2719_v16  ;;  %v8908_v16 = vld [vmem:[#allocation93_spill] sm:$0xff] }
 0x2ec   : > { %v4086_v37 = vpop.f32.mrf.mxu1 }
 0x2ed   : > { %v4083_v27 = vadd.f32 %v4082_v33, %v3538_v13  ;;  %2127 = vmatmul.f32.gmra.mxu2 %v8905_v17  ;;  %2819 = vmatmul.f32.gmra.mxu3 %v8906_v59  ;;  %v3545_v24 = vpop.f32.mrf.mxu0  ;;  %v8909_v33 = vld [vmem:[#allocation98_spill] sm:$0xff]  ;;  %v8912_v59 = vld [vmem:[#allocation85_spill] sm:$0xff]  ;;  %v8916_v17 = vand.u32 4294901760, %v8910_v35 }
 0x2ee   : > { %v1479_v13 = vadd.f32 %v8909_v33, %v8908_v16  ;;  %v8915_v33 = vld [vmem:[#allocation95_spill] sm:$0xff] }
 0x2ef   : > { %4575 = vst [vmem:[%s7035_s24 + $0x30] sm:$0xff] %v4083_v27  ;;  %4149 = vmatmul.f32.gmra.mxu1 %v8902_v14 }
 0x2f0   : > { %v2048_v40 = vpop.f32.mrf.mxu2  ;;  %v2724_v34 = vpop.f32.mrf.mxu3  ;;  %3608 = vmatmul.f32.gmra.mxu0 %v8907_v60 }
 0x2f1   : > { %v2725_v18 = vadd.f32 %v2724_v34, %v2044_v6  ;;  %v2049_v38 = vadd.f32 %v2048_v40, %v1479_v13 }
 0x2f3   : > { %v3542_v4 = vadd.f32 %v3541_v10, %v2725_v18  ;;  %v8913_v18 = vld [vmem:[#allocation100_spill] sm:$0xff] }
 0x2f4   : > { %v4090_v50 = vpop.f32.mrf.mxu1 }
 0x2f5   : > { %v4087_v28 = vadd.f32 %v4086_v37, %v3542_v4  ;;  %2132 = vmatmul.f32.gmra.mxu2 %v8910_v35  ;;  %2825 = vmatmul.f32.gmra.mxu3 %v8911_v2  ;;  %v3549_v5 = vpop.f32.mrf.mxu0  ;;  %v8914_v37 = vld [vmem:[#allocation105_spill] sm:$0xff]  ;;  %v8917_v2 = vld [vmem:[#allocation92_spill] sm:$0xff]  ;;  %v8921_v35 = vand.u32 4294901760, %v8915_v33 }
 0x2f6   : > { %v1483_v4 = vadd.f32 %v8914_v37, %v8913_v18  ;;  %v8920_v37 = vld [vmem:[#allocation102_spill] sm:$0xff] }
 0x2f7   : > { %4576 = vst [vmem:[%s7035_s24 + $0x38] sm:$0xff] %v4087_v28  ;;  %4153 = vmatmul.f32.gmra.mxu1 %v8907_v60 }
 0x2f8   : > { %v2053_v14 = vpop.f32.mrf.mxu2  ;;  %v2730_v27 = vpop.f32.mrf.mxu3  ;;  %3612 = vmatmul.f32.gmra.mxu0 %v8912_v59 }
 0x2f9   : > { %v2731_v10 = vadd.f32 %v2730_v27, %v2049_v38  ;;  %v2054_v13 = vadd.f32 %v2053_v14, %v1483_v4 }
 0x2fb   : > { %v3546_v6 = vadd.f32 %v3545_v24, %v2731_v10  ;;  %v8918_v10 = vld [vmem:[#allocation107_spill] sm:$0xff] }
 0x2fc   : > { %v4094_v34 = vpop.f32.mrf.mxu1 }
 0x2fd   : > { %v4091_v16 = vadd.f32 %v4090_v50, %v3546_v6  ;;  %2137 = vmatmul.f32.gmra.mxu2 %v8915_v33  ;;  %2831 = vmatmul.f32.gmra.mxu3 %v8916_v17  ;;  %v3553_v40 = vpop.f32.mrf.mxu0  ;;  %v8919_v50 = vld [vmem:[#allocation112_spill] sm:$0xff]  ;;  %v8922_v17 = vld [vmem:[#allocation99_spill] sm:$0xff]  ;;  %v8926_v33 = vand.u32 4294901760, %v8920_v37 }
 0x2fe   : > { %v1487_v6 = vadd.f32 %v8919_v50, %v8918_v10  ;;  %v8925_v50 = vld [vmem:[#allocation109_spill] sm:$0xff] }
 0x2ff   : > { %4577 = vst [vmem:[%s7035_s24 + $0x40] sm:$0xff] %v4091_v16  ;;  %4157 = vmatmul.f32.gmra.mxu1 %v8912_v59 }
 0x300   : > { %v2058_v60 = vpop.f32.mrf.mxu2  ;;  %v2736_v28 = vpop.f32.mrf.mxu3  ;;  %3616 = vmatmul.f32.gmra.mxu0 %v8917_v2 }
 0x301   : > { %v2737_v24 = vadd.f32 %v2736_v28, %v2054_v13  ;;  %v2059_v4 = vadd.f32 %v2058_v60, %v1487_v6 }
 0x303   : > { %v3550_v38 = vadd.f32 %v3549_v5, %v2737_v24  ;;  %v8923_v24 = vld [vmem:[#allocation114_spill] sm:$0xff] }
 0x304   : > { %v4098_v27 = vpop.f32.mrf.mxu1 }
 0x305   : > { %v4095_v18 = vadd.f32 %v4094_v34, %v3550_v38  ;;  %2142 = vmatmul.f32.gmra.mxu2 %v8920_v37  ;;  %2837 = vmatmul.f32.gmra.mxu3 %v8921_v35  ;;  %v3557_v14 = vpop.f32.mrf.mxu0  ;;  %v8924_v34 = vld [vmem:[#allocation119_spill] sm:$0xff]  ;;  %v8927_v35 = vld [vmem:[#allocation106_spill] sm:$0xff]  ;;  %v8931_v37 = vand.u32 4294901760, %v8925_v50 }
 0x306   : > { %v1491_v38 = vadd.f32 %v8924_v34, %v8923_v24  ;;  %v8930_v34 = vld [vmem:[#allocation116_spill] sm:$0xff] }
 0x307   : > { %4578 = vst [vmem:[%s7035_s24 + $0x48] sm:$0xff] %v4095_v18  ;;  %4161 = vmatmul.f32.gmra.mxu1 %v8917_v2 }
 0x308   : > { %v2063_v59 = vpop.f32.mrf.mxu2  ;;  %v2742_v16 = vpop.f32.mrf.mxu3  ;;  %3620 = vmatmul.f32.gmra.mxu0 %v8922_v17 }
 0x309   : > { %v2743_v5 = vadd.f32 %v2742_v16, %v2059_v4  ;;  %v2064_v6 = vadd.f32 %v2063_v59, %v1491_v38 }
 0x30b   : > { %v3554_v13 = vadd.f32 %v3553_v40, %v2743_v5  ;;  %v8928_v5 = vld [vmem:[#allocation121_spill] sm:$0xff] }
 0x30c   : > { %v4102_v28 = vpop.f32.mrf.mxu1 }
 0x30d   : > { %v4099_v10 = vadd.f32 %v4098_v27, %v3554_v13  ;;  %2147 = vmatmul.f32.gmra.mxu2 %v8925_v50  ;;  %2843 = vmatmul.f32.gmra.mxu3 %v8926_v33  ;;  %v3561_v60 = vpop.f32.mrf.mxu0  ;;  %v8929_v27 = vld [vmem:[#allocation126_spill] sm:$0xff]  ;;  %v8932_v33 = vld [vmem:[#allocation113_spill] sm:$0xff]  ;;  %v8936_v50 = vand.u32 4294901760, %v8930_v34 }
 0x30e   : > { %v1495_v13 = vadd.f32 %v8929_v27, %v8928_v5  ;;  %v8935_v27 = vld [vmem:[#allocation123_spill] sm:$0xff] }
 0x30f   : > { %4579 = vst [vmem:[%s7035_s24 + $0x50] sm:$0xff] %v4099_v10  ;;  %4165 = vmatmul.f32.gmra.mxu1 %v8922_v17 }
 0x310   : > { %v2068_v2 = vpop.f32.mrf.mxu2  ;;  %v2748_v18 = vpop.f32.mrf.mxu3  ;;  %3624 = vmatmul.f32.gmra.mxu0 %v8927_v35 }
 0x311   : > { %v2749_v40 = vadd.f32 %v2748_v18, %v2064_v6  ;;  %v2069_v38 = vadd.f32 %v2068_v2, %v1495_v13 }
 0x313   : > { %v3558_v4 = vadd.f32 %v3557_v14, %v2749_v40  ;;  %v8933_v40 = vld [vmem:[#allocation128_spill] sm:$0xff] }
 0x314   : > { %v4106_v16 = vpop.f32.mrf.mxu1 }
 0x315   : > { %v4103_v24 = vadd.f32 %v4102_v28, %v3558_v4  ;;  %2152 = vmatmul.f32.gmra.mxu2 %v8930_v34  ;;  %2849 = vmatmul.f32.gmra.mxu3 %v8931_v37  ;;  %v3565_v59 = vpop.f32.mrf.mxu0  ;;  %v8934_v28 = vld [vmem:[#allocation133_spill] sm:$0xff]  ;;  %v8937_v37 = vld [vmem:[#allocation120_spill] sm:$0xff]  ;;  %v8941_v34 = vand.u32 4294901760, %v8935_v27 }
 0x316   : > { %v1499_v4 = vadd.f32 %v8934_v28, %v8933_v40  ;;  %v8940_v28 = vld [vmem:[#allocation130_spill] sm:$0xff] }
 0x317   : > { %4580 = vst [vmem:[%s7035_s24 + $0x58] sm:$0xff] %v4103_v24  ;;  %4169 = vmatmul.f32.gmra.mxu1 %v8927_v35 }
 0x318   : > { %v2073_v17 = vpop.f32.mrf.mxu2  ;;  %v2754_v10 = vpop.f32.mrf.mxu3  ;;  %3628 = vmatmul.f32.gmra.mxu0 %v8932_v33 }
 0x319   : > { %v2755_v14 = vadd.f32 %v2754_v10, %v2069_v38  ;;  %v2074_v13 = vadd.f32 %v2073_v17, %v1499_v4 }
 0x31b   : > { %v3562_v6 = vadd.f32 %v3561_v60, %v2755_v14  ;;  %v8938_v14 = vld [vmem:[#allocation135_spill] sm:$0xff] }
 0x31c   : > { %v4110_v18 = vpop.f32.mrf.mxu1 }
 0x31d   : > { %v4107_v5 = vadd.f32 %v4106_v16, %v3562_v6  ;;  %2157 = vmatmul.f32.gmra.mxu2 %v8935_v27  ;;  %2855 = vmatmul.f32.gmra.mxu3 %v8936_v50  ;;  %v3569_v2 = vpop.f32.mrf.mxu0  ;;  %v8939_v16 = vld [vmem:[#allocation140_spill] sm:$0xff]  ;;  %v8942_v50 = vld [vmem:[#allocation127_spill] sm:$0xff]  ;;  %v8946_v27 = vand.u32 4294901760, %v8940_v28 }
 0x31e   : > { %v1503_v6 = vadd.f32 %v8939_v16, %v8938_v14  ;;  %v8945_v16 = vld [vmem:[#allocation137_spill] sm:$0xff] }
 0x31f   : > { %4581 = vst [vmem:[%s7035_s24 + $0x60] sm:$0xff] %v4107_v5  ;;  %4173 = vmatmul.f32.gmra.mxu1 %v8932_v33 }
 0x320   : > { %v2078_v35 = vpop.f32.mrf.mxu2  ;;  %v2760_v24 = vpop.f32.mrf.mxu3  ;;  %3632 = vmatmul.f32.gmra.mxu0 %v8937_v37 }
 0x321   : > { %v2761_v60 = vadd.f32 %v2760_v24, %v2074_v13  ;;  %v2079_v4 = vadd.f32 %v2078_v35, %v1503_v6 }
 0x323   : > { %v3566_v38 = vadd.f32 %v3565_v59, %v2761_v60  ;;  %v8943_v60 = vld [vmem:[#allocation142_spill] sm:$0xff] }
 0x324   : > { %v4114_v10 = vpop.f32.mrf.mxu1 }
 0x325   : > { %v4111_v40 = vadd.f32 %v4110_v18, %v3566_v38  ;;  %2162 = vmatmul.f32.gmra.mxu2 %v8940_v28  ;;  %2861 = vmatmul.f32.gmra.mxu3 %v8941_v34  ;;  %v3573_v17 = vpop.f32.mrf.mxu0  ;;  %v8944_v18 = vld [vmem:[#allocation147_spill] sm:$0xff]  ;;  %v8947_v34 = vld [vmem:[#allocation134_spill] sm:$0xff]  ;;  %v8951_v28 = vand.u32 4294901760, %v8945_v16 }
 0x326   : > { %v1507_v38 = vadd.f32 %v8944_v18, %v8943_v60  ;;  %v8950_v18 = vld [vmem:[#allocation144_spill] sm:$0xff] }
 0x327   : > { %4582 = vst [vmem:[%s7035_s24 + $0x68] sm:$0xff] %v4111_v40  ;;  %4177 = vmatmul.f32.gmra.mxu1 %v8937_v37 }
 0x328   : > { %v2083_v33 = vpop.f32.mrf.mxu2  ;;  %v2766_v5 = vpop.f32.mrf.mxu3  ;;  %3636 = vmatmul.f32.gmra.mxu0 %v8942_v50 }
 0x329   : > { %v2767_v59 = vadd.f32 %v2766_v5, %v2079_v4  ;;  %v2084_v6 = vadd.f32 %v2083_v33, %v1507_v38 }
 0x32b   : > { %v3570_v13 = vadd.f32 %v3569_v2, %v2767_v59  ;;  %v8948_v59 = vld [vmem:[#allocation149_spill] sm:$0xff] }
 0x32c   : > { %v4118_v24 = vpop.f32.mrf.mxu1 }
 0x32d   : > { %v4115_v14 = vadd.f32 %v4114_v10, %v3570_v13  ;;  %2167 = vmatmul.f32.gmra.mxu2 %v8945_v16  ;;  %2867 = vmatmul.f32.gmra.mxu3 %v8946_v27  ;;  %v3577_v35 = vpop.f32.mrf.mxu0  ;;  %v8949_v10 = vld [vmem:[#allocation154_spill] sm:$0xff]  ;;  %v8952_v27 = vld [vmem:[#allocation141_spill] sm:$0xff]  ;;  %v8956_v16 = vand.u32 4294901760, %v8950_v18 }
 0x32e   : > { %v1511_v13 = vadd.f32 %v8949_v10, %v8948_v59  ;;  %v8955_v10 = vld [vmem:[#allocation151_spill] sm:$0xff] }
 0x32f   : > { %4583 = vst [vmem:[%s7035_s24 + $0x70] sm:$0xff] %v4115_v14  ;;  %4181 = vmatmul.f32.gmra.mxu1 %v8942_v50 }
 0x330   : > { %v2088_v37 = vpop.f32.mrf.mxu2  ;;  %v2772_v40 = vpop.f32.mrf.mxu3  ;;  %3640 = vmatmul.f32.gmra.mxu0 %v8947_v34 }
 0x331   : > { %v2773_v2 = vadd.f32 %v2772_v40, %v2084_v6  ;;  %v2089_v38 = vadd.f32 %v2088_v37, %v1511_v13 }
 0x333   : > { %v3574_v4 = vadd.f32 %v3573_v17, %v2773_v2  ;;  %v8953_v2 = vld [vmem:[#allocation156_spill] sm:$0xff] }
 0x334   : > { %v4122_v5 = vpop.f32.mrf.mxu1 }
 0x335   : > { %v4119_v60 = vadd.f32 %v4118_v24, %v3574_v4  ;;  %2172 = vmatmul.f32.gmra.mxu2 %v8950_v18  ;;  %2873 = vmatmul.f32.gmra.mxu3 %v8951_v28  ;;  %v3581_v33 = vpop.f32.mrf.mxu0  ;;  %v8954_v24 = vld [vmem:[#allocation161_spill] sm:$0xff]  ;;  %v8957_v28 = vld [vmem:[#allocation148_spill] sm:$0xff]  ;;  %v8961_v18 = vand.u32 4294901760, %v8955_v10 }
 0x336   : > { %v1515_v4 = vadd.f32 %v8954_v24, %v8953_v2  ;;  %v8960_v24 = vld [vmem:[#allocation158_spill] sm:$0xff] }
 0x337   : > { %4584 = vst [vmem:[%s7035_s24 + $0x78] sm:$0xff] %v4119_v60  ;;  %4185 = vmatmul.f32.gmra.mxu1 %v8947_v34 }
 0x338   : > { %v2093_v50 = vpop.f32.mrf.mxu2  ;;  %v2778_v14 = vpop.f32.mrf.mxu3  ;;  %3644 = vmatmul.f32.gmra.mxu0 %v8952_v27 }
 0x339   : > { %v2779_v17 = vadd.f32 %v2778_v14, %v2089_v38  ;;  %v2094_v13 = vadd.f32 %v2093_v50, %v1515_v4 }
 0x33b   : > { %v3578_v6 = vadd.f32 %v3577_v35, %v2779_v17  ;;  %v8958_v17 = vld [vmem:[#allocation163_spill] sm:$0xff] }
 0x33c   : > { %v4126_v40 = vpop.f32.mrf.mxu1 }
 0x33d   : > { %v4123_v59 = vadd.f32 %v4122_v5, %v3578_v6  ;;  %2177 = vmatmul.f32.gmra.mxu2 %v8955_v10  ;;  %2879 = vmatmul.f32.gmra.mxu3 %v8956_v16  ;;  %v3585_v37 = vpop.f32.mrf.mxu0  ;;  %v8959_v5 = vld [vmem:[#allocation168_spill] sm:$0xff]  ;;  %v8962_v16 = vld [vmem:[#allocation155_spill] sm:$0xff]  ;;  %v8966_v10 = vand.u32 4294901760, %v8960_v24 }
 0x33e   : > { %v1519_v6 = vadd.f32 %v8959_v5, %v8958_v17  ;;  %v8965_v5 = vld [vmem:[#allocation165_spill] sm:$0xff] }
 0x33f   : > { %4585 = vst [vmem:[%s7035_s24 + $0x80] sm:$0xff] %v4123_v59  ;;  %4189 = vmatmul.f32.gmra.mxu1 %v8952_v27 }
 0x340   : > { %v2098_v34 = vpop.f32.mrf.mxu2  ;;  %v2784_v60 = vpop.f32.mrf.mxu3  ;;  %3648 = vmatmul.f32.gmra.mxu0 %v8957_v28 }
 0x341   : > { %v2785_v35 = vadd.f32 %v2784_v60, %v2094_v13  ;;  %v2099_v4 = vadd.f32 %v2098_v34, %v1519_v6 }
 0x343   : > { %v3582_v38 = vadd.f32 %v3581_v33, %v2785_v35  ;;  %v8963_v35 = vld [vmem:[#allocation170_spill] sm:$0xff] }
 0x344   : > { %v4130_v14 = vpop.f32.mrf.mxu1 }
 0x345   : > { %v4127_v2 = vadd.f32 %v4126_v40, %v3582_v38  ;;  %2182 = vmatmul.f32.gmra.mxu2 %v8960_v24  ;;  %2885 = vmatmul.f32.gmra.mxu3 %v8961_v18  ;;  %v3589_v50 = vpop.f32.mrf.mxu0  ;;  %v8964_v40 = vld [vmem:[#allocation175_spill] sm:$0xff]  ;;  %v8967_v18 = vld [vmem:[#allocation162_spill] sm:$0xff]  ;;  %v8971_v24 = vand.u32 4294901760, %v8965_v5 }
 0x346   : > { %v1523_v38 = vadd.f32 %v8964_v40, %v8963_v35  ;;  %v8970_v40 = vld [vmem:[#allocation172_spill] sm:$0xff] }
 0x347   : > { %4586 = vst [vmem:[%s7035_s24 + $0x88] sm:$0xff] %v4127_v2  ;;  %4193 = vmatmul.f32.gmra.mxu1 %v8957_v28 }
 0x348   : > { %v2103_v27 = vpop.f32.mrf.mxu2  ;;  %v2790_v59 = vpop.f32.mrf.mxu3  ;;  %3652 = vmatmul.f32.gmra.mxu0 %v8962_v16 }
 0x349   : > { %v2791_v33 = vadd.f32 %v2790_v59, %v2099_v4  ;;  %v2104_v6 = vadd.f32 %v2103_v27, %v1523_v38 }
 0x34b   : > { %v3586_v13 = vadd.f32 %v3585_v37, %v2791_v33  ;;  %v8968_v33 = vld [vmem:[#allocation177_spill] sm:$0xff] }
 0x34c   : > { %v4134_v60 = vpop.f32.mrf.mxu1 }
 0x34d   : > { %v4131_v17 = vadd.f32 %v4130_v14, %v3586_v13  ;;  %2187 = vmatmul.f32.gmra.mxu2 %v8965_v5  ;;  %2891 = vmatmul.f32.gmra.mxu3 %v8966_v10  ;;  %v3593_v34 = vpop.f32.mrf.mxu0  ;;  %v8969_v14 = vld [vmem:[#allocation182_spill] sm:$0xff]  ;;  %v8972_v10 = vld [vmem:[#allocation169_spill] sm:$0xff]  ;;  %v8976_v5 = vand.u32 4294901760, %v8970_v40 }
 0x34e   : > { %v1527_v13 = vadd.f32 %v8969_v14, %v8968_v33  ;;  %v8975_v14 = vld [vmem:[#allocation179_spill] sm:$0xff] }
 0x34f   : > { %4587 = vst [vmem:[%s7035_s24 + $0x90] sm:$0xff] %v4131_v17  ;;  %4197 = vmatmul.f32.gmra.mxu1 %v8962_v16 }
 0x350   : > { %v2108_v28 = vpop.f32.mrf.mxu2  ;;  %v2796_v2 = vpop.f32.mrf.mxu3  ;;  %3656 = vmatmul.f32.gmra.mxu0 %v8967_v18 }
 0x351   : > { %v2797_v37 = vadd.f32 %v2796_v2, %v2104_v6  ;;  %v2109_v38 = vadd.f32 %v2108_v28, %v1527_v13 }
 0x353   : > { %v3590_v4 = vadd.f32 %v3589_v50, %v2797_v37  ;;  %v8973_v37 = vld [vmem:[#allocation184_spill] sm:$0xff] }
 0x354   : > { %v4138_v59 = vpop.f32.mrf.mxu1 }
 0x355   : > { %v4135_v35 = vadd.f32 %v4134_v60, %v3590_v4  ;;  %2192 = vmatmul.f32.gmra.mxu2 %v8970_v40  ;;  %2897 = vmatmul.f32.gmra.mxu3 %v8971_v24  ;;  %v3597_v27 = vpop.f32.mrf.mxu0  ;;  %v8974_v60 = vld [vmem:[#allocation189_spill] sm:$0xff]  ;;  %v8977_v24 = vld [vmem:[#allocation176_spill] sm:$0xff]  ;;  %v8981_v40 = vand.u32 4294901760, %v8975_v14 }
 0x356   : > { %v1531_v4 = vadd.f32 %v8974_v60, %v8973_v37  ;;  %v8980_v60 = vld [vmem:[#allocation186_spill] sm:$0xff] }
 0x357   : > { %4588 = vst [vmem:[%s7035_s24 + $0x98] sm:$0xff] %v4135_v35  ;;  %4201 = vmatmul.f32.gmra.mxu1 %v8967_v18 }
 0x358   : > { %v2113_v16 = vpop.f32.mrf.mxu2  ;;  %v2802_v17 = vpop.f32.mrf.mxu3  ;;  %3660 = vmatmul.f32.gmra.mxu0 %v8972_v10 }
 0x359   : > { %v2803_v50 = vadd.f32 %v2802_v17, %v2109_v38  ;;  %v2114_v13 = vadd.f32 %v2113_v16, %v1531_v4 }
 0x35b   : > { %v3594_v6 = vadd.f32 %v3593_v34, %v2803_v50  ;;  %v8978_v50 = vld [vmem:[#allocation191_spill] sm:$0xff] }
 0x35c   : > { %v4142_v2 = vpop.f32.mrf.mxu1 }
 0x35d   : > { %v4139_v33 = vadd.f32 %v4138_v59, %v3594_v6  ;;  %2197 = vmatmul.f32.gmra.mxu2 %v8975_v14  ;;  %2903 = vmatmul.f32.gmra.mxu3 %v8976_v5  ;;  %v3601_v28 = vpop.f32.mrf.mxu0  ;;  %v8979_v59 = vld [vmem:[#allocation196_spill] sm:$0xff]  ;;  %v8982_v5 = vld [vmem:[#allocation183_spill] sm:$0xff]  ;;  %v8986_v14 = vand.u32 4294901760, %v8980_v60 }
 0x35e   : > { %v1535_v6 = vadd.f32 %v8979_v59, %v8978_v50  ;;  %v8985_v59 = vld [vmem:[#allocation193_spill] sm:$0xff] }
 0x35f   : > { %4589 = vst [vmem:[%s7035_s24 + $0xa0] sm:$0xff] %v4139_v33  ;;  %4205 = vmatmul.f32.gmra.mxu1 %v8972_v10 }
 0x360   : > { %v2118_v18 = vpop.f32.mrf.mxu2  ;;  %v2808_v35 = vpop.f32.mrf.mxu3  ;;  %3664 = vmatmul.f32.gmra.mxu0 %v8977_v24 }
 0x361   : > { %v2809_v34 = vadd.f32 %v2808_v35, %v2114_v13  ;;  %v2119_v4 = vadd.f32 %v2118_v18, %v1535_v6 }
 0x363   : > { %v3598_v38 = vadd.f32 %v3597_v27, %v2809_v34  ;;  %v8983_v34 = vld [vmem:[#allocation198_spill] sm:$0xff] }
 0x364   : > { %v4146_v17 = vpop.f32.mrf.mxu1 }
 0x365   : > { %v4143_v37 = vadd.f32 %v4142_v2, %v3598_v38  ;;  %2202 = vmatmul.f32.gmra.mxu2 %v8980_v60  ;;  %2909 = vmatmul.f32.gmra.mxu3 %v8981_v40  ;;  %v3605_v16 = vpop.f32.mrf.mxu0  ;;  %v8984_v2 = vld [vmem:[#allocation203_spill] sm:$0xff]  ;;  %v8987_v40 = vld [vmem:[#allocation190_spill] sm:$0xff]  ;;  %v8991_v60 = vand.u32 4294901760, %v8985_v59 }
 0x366   : > { %v1539_v38 = vadd.f32 %v8984_v2, %v8983_v34  ;;  %v8990_v2 = vld [vmem:[#allocation200_spill] sm:$0xff] }
 0x367   : > { %4590 = vst [vmem:[%s7035_s24 + $0xa8] sm:$0xff] %v4143_v37  ;;  %4209 = vmatmul.f32.gmra.mxu1 %v8977_v24 }
 0x368   : > { %v2123_v10 = vpop.f32.mrf.mxu2  ;;  %v2814_v33 = vpop.f32.mrf.mxu3  ;;  %3668 = vmatmul.f32.gmra.mxu0 %v8982_v5 }
 0x369   : > { %v2815_v27 = vadd.f32 %v2814_v33, %v2119_v4  ;;  %v2124_v6 = vadd.f32 %v2123_v10, %v1539_v38 }
 0x36b   : > { %v3602_v13 = vadd.f32 %v3601_v28, %v2815_v27  ;;  %v8988_v27 = vld [vmem:[#allocation205_spill] sm:$0xff] }
 0x36c   : > { %v4150_v35 = vpop.f32.mrf.mxu1 }
 0x36d   : > { %v4147_v50 = vadd.f32 %v4146_v17, %v3602_v13  ;;  %2207 = vmatmul.f32.gmra.mxu2 %v8985_v59  ;;  %2915 = vmatmul.f32.gmra.mxu3 %v8986_v14  ;;  %v3609_v18 = vpop.f32.mrf.mxu0  ;;  %v8989_v17 = vld [vmem:[#allocation210_spill] sm:$0xff]  ;;  %v8992_v14 = vld [vmem:[#allocation197_spill] sm:$0xff]  ;;  %v8996_v59 = vand.u32 4294901760, %v8990_v2 }
 0x36e   : > { %v1543_v13 = vadd.f32 %v8989_v17, %v8988_v27  ;;  %v8995_v17 = vld [vmem:[#allocation207_spill] sm:$0xff] }
 0x36f   : > { %4591 = vst [vmem:[%s7035_s24 + $0xb0] sm:$0xff] %v4147_v50  ;;  %4213 = vmatmul.f32.gmra.mxu1 %v8982_v5 }
 0x370   : > { %v2128_v24 = vpop.f32.mrf.mxu2  ;;  %v2820_v37 = vpop.f32.mrf.mxu3  ;;  %3672 = vmatmul.f32.gmra.mxu0 %v8987_v40 }
 0x371   : > { %v2821_v28 = vadd.f32 %v2820_v37, %v2124_v6  ;;  %v2129_v38 = vadd.f32 %v2128_v24, %v1543_v13 }
 0x373   : > { %v3606_v4 = vadd.f32 %v3605_v16, %v2821_v28  ;;  %v8993_v28 = vld [vmem:[#allocation212_spill] sm:$0xff] }
 0x374   : > { %v4154_v33 = vpop.f32.mrf.mxu1 }
 0x375   : > { %v4151_v34 = vadd.f32 %v4150_v35, %v3606_v4  ;;  %2212 = vmatmul.f32.gmra.mxu2 %v8990_v2  ;;  %2921 = vmatmul.f32.gmra.mxu3 %v8991_v60  ;;  %v3613_v10 = vpop.f32.mrf.mxu0  ;;  %v8994_v35 = vld [vmem:[#allocation217_spill] sm:$0xff]  ;;  %v8997_v60 = vld [vmem:[#allocation204_spill] sm:$0xff]  ;;  %v9001_v2 = vand.u32 4294901760, %v8995_v17 }
 0x376   : > { %v1547_v4 = vadd.f32 %v8994_v35, %v8993_v28  ;;  %v9000_v35 = vld [vmem:[#allocation214_spill] sm:$0xff] }
 0x377   : > { %4592 = vst [vmem:[%s7035_s24 + $0xb8] sm:$0xff] %v4151_v34  ;;  %4217 = vmatmul.f32.gmra.mxu1 %v8987_v40 }
 0x378   : > { %v2133_v5 = vpop.f32.mrf.mxu2  ;;  %v2826_v50 = vpop.f32.mrf.mxu3  ;;  %3676 = vmatmul.f32.gmra.mxu0 %v8992_v14 }
 0x379   : > { %v2827_v16 = vadd.f32 %v2826_v50, %v2129_v38  ;;  %v2134_v13 = vadd.f32 %v2133_v5, %v1547_v4 }
 0x37b   : > { %v3610_v6 = vadd.f32 %v3609_v18, %v2827_v16  ;;  %v8998_v16 = vld [vmem:[#allocation219_spill] sm:$0xff] }
 0x37c   : > { %v4158_v37 = vpop.f32.mrf.mxu1 }
 0x37d   : > { %v4155_v27 = vadd.f32 %v4154_v33, %v3610_v6  ;;  %2217 = vmatmul.f32.gmra.mxu2 %v8995_v17  ;;  %2927 = vmatmul.f32.gmra.mxu3 %v8996_v59  ;;  %v3617_v24 = vpop.f32.mrf.mxu0  ;;  %v8999_v33 = vld [vmem:[#allocation224_spill] sm:$0xff]  ;;  %v9002_v59 = vld [vmem:[#allocation211_spill] sm:$0xff]  ;;  %v9006_v17 = vand.u32 4294901760, %v9000_v35 }
 0x37e   : > { %v1551_v6 = vadd.f32 %v8999_v33, %v8998_v16  ;;  %v9005_v33 = vld [vmem:[#allocation221_spill] sm:$0xff] }
 0x37f   : > { %4593 = vst [vmem:[%s7035_s24 + $0xc0] sm:$0xff] %v4155_v27  ;;  %4221 = vmatmul.f32.gmra.mxu1 %v8992_v14 }
 0x380   : > { %v2138_v40 = vpop.f32.mrf.mxu2  ;;  %v2832_v34 = vpop.f32.mrf.mxu3  ;;  %3680 = vmatmul.f32.gmra.mxu0 %v8997_v60 }
 0x381   : > { %v2833_v18 = vadd.f32 %v2832_v34, %v2134_v13  ;;  %v2139_v4 = vadd.f32 %v2138_v40, %v1551_v6 }
 0x383   : > { %v3614_v38 = vadd.f32 %v3613_v10, %v2833_v18  ;;  %v9003_v18 = vld [vmem:[#allocation226_spill] sm:$0xff] }
 0x384   : > { %v4162_v50 = vpop.f32.mrf.mxu1 }
 0x385   : > { %v4159_v28 = vadd.f32 %v4158_v37, %v3614_v38  ;;  %2222 = vmatmul.f32.gmra.mxu2 %v9000_v35  ;;  %2933 = vmatmul.f32.gmra.mxu3 %v9001_v2  ;;  %v3621_v5 = vpop.f32.mrf.mxu0  ;;  %v9004_v37 = vld [vmem:[#allocation231_spill] sm:$0xff]  ;;  %v9007_v2 = vld [vmem:[#allocation218_spill] sm:$0xff]  ;;  %v9011_v35 = vand.u32 4294901760, %v9005_v33 }
 0x386   : > { %v1555_v38 = vadd.f32 %v9004_v37, %v9003_v18  ;;  %v9010_v37 = vld [vmem:[#allocation228_spill] sm:$0xff] }
 0x387   : > { %4594 = vst [vmem:[%s7035_s24 + $0xc8] sm:$0xff] %v4159_v28  ;;  %4225 = vmatmul.f32.gmra.mxu1 %v8997_v60 }
 0x388   : > { %v2143_v14 = vpop.f32.mrf.mxu2  ;;  %v2838_v27 = vpop.f32.mrf.mxu3  ;;  %3684 = vmatmul.f32.gmra.mxu0 %v9002_v59 }
 0x389   : > { %v2839_v10 = vadd.f32 %v2838_v27, %v2139_v4  ;;  %v2144_v6 = vadd.f32 %v2143_v14, %v1555_v38 }
 0x38b   : > { %v3618_v13 = vadd.f32 %v3617_v24, %v2839_v10  ;;  %v9008_v10 = vld [vmem:[#allocation233_spill] sm:$0xff] }
 0x38c   : > { %v4166_v34 = vpop.f32.mrf.mxu1 }
 0x38d   : > { %v4163_v16 = vadd.f32 %v4162_v50, %v3618_v13  ;;  %2227 = vmatmul.f32.gmra.mxu2 %v9005_v33  ;;  %2939 = vmatmul.f32.gmra.mxu3 %v9006_v17  ;;  %v3625_v40 = vpop.f32.mrf.mxu0  ;;  %v9009_v50 = vld [vmem:[#allocation238_spill] sm:$0xff]  ;;  %v9012_v17 = vld [vmem:[#allocation225_spill] sm:$0xff]  ;;  %v9016_v33 = vand.u32 4294901760, %v9010_v37 }
 0x38e   : > { %v1559_v13 = vadd.f32 %v9009_v50, %v9008_v10  ;;  %v9015_v50 = vld [vmem:[#allocation235_spill] sm:$0xff] }
 0x38f   : > { %4595 = vst [vmem:[%s7035_s24 + $0xd0] sm:$0xff] %v4163_v16  ;;  %4229 = vmatmul.f32.gmra.mxu1 %v9002_v59 }
 0x390   : > { %v2148_v60 = vpop.f32.mrf.mxu2  ;;  %v2844_v28 = vpop.f32.mrf.mxu3  ;;  %3688 = vmatmul.f32.gmra.mxu0 %v9007_v2 }
 0x391   : > { %v2845_v24 = vadd.f32 %v2844_v28, %v2144_v6  ;;  %v2149_v38 = vadd.f32 %v2148_v60, %v1559_v13 }
 0x393   : > { %v3622_v4 = vadd.f32 %v3621_v5, %v2845_v24  ;;  %v9013_v24 = vld [vmem:[#allocation240_spill] sm:$0xff] }
 0x394   : > { %v4170_v27 = vpop.f32.mrf.mxu1 }
 0x395   : > { %v4167_v18 = vadd.f32 %v4166_v34, %v3622_v4  ;;  %2232 = vmatmul.f32.gmra.mxu2 %v9010_v37  ;;  %2945 = vmatmul.f32.gmra.mxu3 %v9011_v35  ;;  %v3629_v14 = vpop.f32.mrf.mxu0  ;;  %v9014_v34 = vld [vmem:[#allocation245_spill] sm:$0xff]  ;;  %v9017_v35 = vld [vmem:[#allocation232_spill] sm:$0xff]  ;;  %v9021_v37 = vand.u32 4294901760, %v9015_v50 }
 0x396   : > { %v1563_v4 = vadd.f32 %v9014_v34, %v9013_v24  ;;  %v9020_v34 = vld [vmem:[#allocation242_spill] sm:$0xff] }
 0x397   : > { %4596 = vst [vmem:[%s7035_s24 + $0xd8] sm:$0xff] %v4167_v18  ;;  %4233 = vmatmul.f32.gmra.mxu1 %v9007_v2 }
 0x398   : > { %v2153_v59 = vpop.f32.mrf.mxu2  ;;  %v2850_v16 = vpop.f32.mrf.mxu3  ;;  %3692 = vmatmul.f32.gmra.mxu0 %v9012_v17 }
 0x399   : > { %v2851_v5 = vadd.f32 %v2850_v16, %v2149_v38  ;;  %v2154_v13 = vadd.f32 %v2153_v59, %v1563_v4 }
 0x39b   : > { %v3626_v6 = vadd.f32 %v3625_v40, %v2851_v5  ;;  %v9018_v5 = vld [vmem:[#allocation247_spill] sm:$0xff] }
 0x39c   : > { %v4174_v28 = vpop.f32.mrf.mxu1 }
 0x39d   : > { %v4171_v10 = vadd.f32 %v4170_v27, %v3626_v6  ;;  %2237 = vmatmul.f32.gmra.mxu2 %v9015_v50  ;;  %2951 = vmatmul.f32.gmra.mxu3 %v9016_v33  ;;  %v3633_v60 = vpop.f32.mrf.mxu0  ;;  %v9019_v27 = vld [vmem:[#allocation252_spill] sm:$0xff]  ;;  %v9022_v33 = vld [vmem:[#allocation239_spill] sm:$0xff]  ;;  %v9026_v50 = vand.u32 4294901760, %v9020_v34 }
 0x39e   : > { %v1567_v6 = vadd.f32 %v9019_v27, %v9018_v5  ;;  %v9025_v27 = vld [vmem:[#allocation249_spill] sm:$0xff] }
 0x39f   : > { %4597 = vst [vmem:[%s7035_s24 + $0xe0] sm:$0xff] %v4171_v10  ;;  %4237 = vmatmul.f32.gmra.mxu1 %v9012_v17 }
 0x3a0   : > { %v2158_v2 = vpop.f32.mrf.mxu2  ;;  %v2856_v18 = vpop.f32.mrf.mxu3  ;;  %3696 = vmatmul.f32.gmra.mxu0 %v9017_v35 }
 0x3a1   : > { %v2857_v40 = vadd.f32 %v2856_v18, %v2154_v13  ;;  %v2159_v4 = vadd.f32 %v2158_v2, %v1567_v6 }
 0x3a3   : > { %v3630_v38 = vadd.f32 %v3629_v14, %v2857_v40  ;;  %v9023_v40 = vld [vmem:[#allocation254_spill] sm:$0xff] }
 0x3a4   : > { %v4178_v16 = vpop.f32.mrf.mxu1 }
 0x3a5   : > { %v4175_v24 = vadd.f32 %v4174_v28, %v3630_v38  ;;  %2242 = vmatmul.f32.gmra.mxu2 %v9020_v34  ;;  %2957 = vmatmul.f32.gmra.mxu3 %v9021_v37  ;;  %v3637_v59 = vpop.f32.mrf.mxu0  ;;  %v9024_v28 = vld [vmem:[#allocation259_spill] sm:$0xff]  ;;  %v9027_v37 = vld [vmem:[#allocation246_spill] sm:$0xff]  ;;  %v9031_v34 = vand.u32 4294901760, %v9025_v27 }
 0x3a6   : > { %v1571_v38 = vadd.f32 %v9024_v28, %v9023_v40  ;;  %v9030_v28 = vld [vmem:[#allocation256_spill] sm:$0xff] }
 0x3a7   : > { %4598 = vst [vmem:[%s7035_s24 + $0xe8] sm:$0xff] %v4175_v24  ;;  %4241 = vmatmul.f32.gmra.mxu1 %v9017_v35 }
 0x3a8   : > { %v2163_v17 = vpop.f32.mrf.mxu2  ;;  %v2862_v10 = vpop.f32.mrf.mxu3  ;;  %3700 = vmatmul.f32.gmra.mxu0 %v9022_v33 }
 0x3a9   : > { %v2863_v14 = vadd.f32 %v2862_v10, %v2159_v4  ;;  %v2164_v6 = vadd.f32 %v2163_v17, %v1571_v38 }
 0x3ab   : > { %v3634_v13 = vadd.f32 %v3633_v60, %v2863_v14  ;;  %v9028_v14 = vld [vmem:[#allocation261_spill] sm:$0xff] }
 0x3ac   : > { %v4182_v18 = vpop.f32.mrf.mxu1 }
 0x3ad   : > { %v4179_v5 = vadd.f32 %v4178_v16, %v3634_v13  ;;  %2247 = vmatmul.f32.gmra.mxu2 %v9025_v27  ;;  %2963 = vmatmul.f32.gmra.mxu3 %v9026_v50  ;;  %v3641_v2 = vpop.f32.mrf.mxu0  ;;  %v9029_v16 = vld [vmem:[#allocation266_spill] sm:$0xff]  ;;  %v9032_v50 = vld [vmem:[#allocation253_spill] sm:$0xff]  ;;  %v9036_v27 = vand.u32 4294901760, %v9030_v28 }
 0x3ae   : > { %v1575_v13 = vadd.f32 %v9029_v16, %v9028_v14  ;;  %v9035_v16 = vld [vmem:[#allocation263_spill] sm:$0xff] }
 0x3af   : > { %4599 = vst [vmem:[%s7035_s24 + $0xf0] sm:$0xff] %v4179_v5  ;;  %4245 = vmatmul.f32.gmra.mxu1 %v9022_v33 }
 0x3b0   : > { %v2168_v35 = vpop.f32.mrf.mxu2  ;;  %v2868_v24 = vpop.f32.mrf.mxu3  ;;  %3704 = vmatmul.f32.gmra.mxu0 %v9027_v37 }
 0x3b1   : > { %v2869_v60 = vadd.f32 %v2868_v24, %v2164_v6  ;;  %v2169_v38 = vadd.f32 %v2168_v35, %v1575_v13 }
 0x3b3   : > { %v3638_v4 = vadd.f32 %v3637_v59, %v2869_v60  ;;  %v9033_v60 = vld [vmem:[#allocation268_spill] sm:$0xff] }
 0x3b4   : > { %v4186_v10 = vpop.f32.mrf.mxu1 }
 0x3b5   : > { %v4183_v40 = vadd.f32 %v4182_v18, %v3638_v4  ;;  %2252 = vmatmul.f32.gmra.mxu2 %v9030_v28  ;;  %2969 = vmatmul.f32.gmra.mxu3 %v9031_v34  ;;  %v3645_v17 = vpop.f32.mrf.mxu0  ;;  %v9034_v18 = vld [vmem:[#allocation273_spill] sm:$0xff]  ;;  %v9037_v34 = vld [vmem:[#allocation260_spill] sm:$0xff]  ;;  %v9041_v28 = vand.u32 4294901760, %v9035_v16 }
 0x3b6   : > { %v1579_v4 = vadd.f32 %v9034_v18, %v9033_v60  ;;  %v9040_v18 = vld [vmem:[#allocation270_spill] sm:$0xff] }
 0x3b7   : > { %4600 = vst [vmem:[%s7035_s24 + $0xf8] sm:$0xff] %v4183_v40  ;;  %4249 = vmatmul.f32.gmra.mxu1 %v9027_v37 }
 0x3b8   : > { %v2173_v33 = vpop.f32.mrf.mxu2  ;;  %v2874_v5 = vpop.f32.mrf.mxu3  ;;  %3708 = vmatmul.f32.gmra.mxu0 %v9032_v50 }
 0x3b9   : > { %v2875_v59 = vadd.f32 %v2874_v5, %v2169_v38  ;;  %v2174_v13 = vadd.f32 %v2173_v33, %v1579_v4 }
 0x3bb   : > { %v3642_v6 = vadd.f32 %v3641_v2, %v2875_v59  ;;  %v9038_v59 = vld [vmem:[#allocation275_spill] sm:$0xff] }
 0x3bc   : > { %v4190_v24 = vpop.f32.mrf.mxu1 }
 0x3bd   : > { %v4187_v14 = vadd.f32 %v4186_v10, %v3642_v6  ;;  %2257 = vmatmul.f32.gmra.mxu2 %v9035_v16  ;;  %2975 = vmatmul.f32.gmra.mxu3 %v9036_v27  ;;  %v3649_v35 = vpop.f32.mrf.mxu0  ;;  %v9039_v10 = vld [vmem:[#allocation280_spill] sm:$0xff]  ;;  %v9042_v27 = vld [vmem:[#allocation267_spill] sm:$0xff]  ;;  %v9046_v16 = vand.u32 4294901760, %v9040_v18 }
 0x3be   : > { %v1583_v6 = vadd.f32 %v9039_v10, %v9038_v59  ;;  %v9045_v10 = vld [vmem:[#allocation277_spill] sm:$0xff] }
 0x3bf   : > { %4601 = vst [vmem:[%s7035_s24 + $0x100] sm:$0xff] %v4187_v14  ;;  %4253 = vmatmul.f32.gmra.mxu1 %v9032_v50 }
 0x3c0   : > { %v2178_v37 = vpop.f32.mrf.mxu2  ;;  %v2880_v40 = vpop.f32.mrf.mxu3  ;;  %3712 = vmatmul.f32.gmra.mxu0 %v9037_v34 }
 0x3c1   : > { %v2881_v2 = vadd.f32 %v2880_v40, %v2174_v13  ;;  %v2179_v4 = vadd.f32 %v2178_v37, %v1583_v6 }
 0x3c3   : > { %v3646_v38 = vadd.f32 %v3645_v17, %v2881_v2  ;;  %v9043_v2 = vld [vmem:[#allocation282_spill] sm:$0xff] }
 0x3c4   : > { %v4194_v5 = vpop.f32.mrf.mxu1 }
 0x3c5   : > { %v4191_v60 = vadd.f32 %v4190_v24, %v3646_v38  ;;  %2262 = vmatmul.f32.gmra.mxu2 %v9040_v18  ;;  %2981 = vmatmul.f32.gmra.mxu3 %v9041_v28  ;;  %v3653_v33 = vpop.f32.mrf.mxu0  ;;  %v9044_v24 = vld [vmem:[#allocation287_spill] sm:$0xff]  ;;  %v9047_v28 = vld [vmem:[#allocation274_spill] sm:$0xff]  ;;  %v9051_v18 = vand.u32 4294901760, %v9045_v10 }
 0x3c6   : > { %v1587_v38 = vadd.f32 %v9044_v24, %v9043_v2  ;;  %v9050_v24 = vld [vmem:[#allocation284_spill] sm:$0xff] }
 0x3c7   : > { %4602 = vst [vmem:[%s7035_s24 + $0x108] sm:$0xff] %v4191_v60  ;;  %4257 = vmatmul.f32.gmra.mxu1 %v9037_v34 }
 0x3c8   : > { %v2183_v50 = vpop.f32.mrf.mxu2  ;;  %v2886_v14 = vpop.f32.mrf.mxu3  ;;  %3716 = vmatmul.f32.gmra.mxu0 %v9042_v27 }
 0x3c9   : > { %v2887_v17 = vadd.f32 %v2886_v14, %v2179_v4  ;;  %v2184_v6 = vadd.f32 %v2183_v50, %v1587_v38 }
 0x3cb   : > { %v3650_v13 = vadd.f32 %v3649_v35, %v2887_v17  ;;  %v9048_v17 = vld [vmem:[#allocation289_spill] sm:$0xff] }
 0x3cc   : > { %v4198_v40 = vpop.f32.mrf.mxu1 }
 0x3cd   : > { %v4195_v59 = vadd.f32 %v4194_v5, %v3650_v13  ;;  %2267 = vmatmul.f32.gmra.mxu2 %v9045_v10  ;;  %2987 = vmatmul.f32.gmra.mxu3 %v9046_v16  ;;  %v3657_v37 = vpop.f32.mrf.mxu0  ;;  %v9049_v5 = vld [vmem:[#allocation294_spill] sm:$0xff]  ;;  %v9052_v16 = vld [vmem:[#allocation281_spill] sm:$0xff]  ;;  %v9056_v10 = vand.u32 4294901760, %v9050_v24 }
 0x3ce   : > { %v1591_v13 = vadd.f32 %v9049_v5, %v9048_v17  ;;  %v9055_v5 = vld [vmem:[#allocation291_spill] sm:$0xff] }
 0x3cf   : > { %4603 = vst [vmem:[%s7035_s24 + $0x110] sm:$0xff] %v4195_v59  ;;  %4261 = vmatmul.f32.gmra.mxu1 %v9042_v27 }
 0x3d0   : > { %v2188_v34 = vpop.f32.mrf.mxu2  ;;  %v2892_v60 = vpop.f32.mrf.mxu3  ;;  %3720 = vmatmul.f32.gmra.mxu0 %v9047_v28 }
 0x3d1   : > { %v2893_v35 = vadd.f32 %v2892_v60, %v2184_v6  ;;  %v2189_v38 = vadd.f32 %v2188_v34, %v1591_v13 }
 0x3d3   : > { %v3654_v4 = vadd.f32 %v3653_v33, %v2893_v35  ;;  %v9053_v35 = vld [vmem:[#allocation296_spill] sm:$0xff] }
 0x3d4   : > { %v4202_v14 = vpop.f32.mrf.mxu1 }
 0x3d5   : > { %v4199_v2 = vadd.f32 %v4198_v40, %v3654_v4  ;;  %2272 = vmatmul.f32.gmra.mxu2 %v9050_v24  ;;  %2993 = vmatmul.f32.gmra.mxu3 %v9051_v18  ;;  %v3661_v50 = vpop.f32.mrf.mxu0  ;;  %v9054_v40 = vld [vmem:[#allocation301_spill] sm:$0xff]  ;;  %v9057_v18 = vld [vmem:[#allocation288_spill] sm:$0xff]  ;;  %v9061_v24 = vand.u32 4294901760, %v9055_v5 }
 0x3d6   : > { %v1595_v4 = vadd.f32 %v9054_v40, %v9053_v35  ;;  %v9060_v40 = vld [vmem:[#allocation298_spill] sm:$0xff] }
 0x3d7   : > { %4604 = vst [vmem:[%s7035_s24 + $0x118] sm:$0xff] %v4199_v2  ;;  %4265 = vmatmul.f32.gmra.mxu1 %v9047_v28 }
 0x3d8   : > { %v2193_v27 = vpop.f32.mrf.mxu2  ;;  %v2898_v59 = vpop.f32.mrf.mxu3  ;;  %3724 = vmatmul.f32.gmra.mxu0 %v9052_v16 }
 0x3d9   : > { %v2899_v33 = vadd.f32 %v2898_v59, %v2189_v38  ;;  %v2194_v13 = vadd.f32 %v2193_v27, %v1595_v4 }
 0x3db   : > { %v3658_v6 = vadd.f32 %v3657_v37, %v2899_v33  ;;  %v9058_v33 = vld [vmem:[#allocation303_spill] sm:$0xff] }
 0x3dc   : > { %v4206_v60 = vpop.f32.mrf.mxu1 }
 0x3dd   : > { %v4203_v17 = vadd.f32 %v4202_v14, %v3658_v6  ;;  %2277 = vmatmul.f32.gmra.mxu2 %v9055_v5  ;;  %2999 = vmatmul.f32.gmra.mxu3 %v9056_v10  ;;  %v3665_v34 = vpop.f32.mrf.mxu0  ;;  %v9059_v14 = vld [vmem:[#allocation308_spill] sm:$0xff]  ;;  %v9062_v10 = vld [vmem:[#allocation295_spill] sm:$0xff]  ;;  %v9066_v5 = vand.u32 4294901760, %v9060_v40 }
 0x3de   : > { %v1599_v6 = vadd.f32 %v9059_v14, %v9058_v33  ;;  %v9065_v14 = vld [vmem:[#allocation305_spill] sm:$0xff] }
 0x3df   : > { %4605 = vst [vmem:[%s7035_s24 + $0x120] sm:$0xff] %v4203_v17  ;;  %4269 = vmatmul.f32.gmra.mxu1 %v9052_v16 }
 0x3e0   : > { %v2198_v28 = vpop.f32.mrf.mxu2  ;;  %v2904_v2 = vpop.f32.mrf.mxu3  ;;  %3728 = vmatmul.f32.gmra.mxu0 %v9057_v18 }
 0x3e1   : > { %v2905_v37 = vadd.f32 %v2904_v2, %v2194_v13  ;;  %v2199_v4 = vadd.f32 %v2198_v28, %v1599_v6 }
 0x3e3   : > { %v3662_v38 = vadd.f32 %v3661_v50, %v2905_v37  ;;  %v9063_v37 = vld [vmem:[#allocation310_spill] sm:$0xff] }
 0x3e4   : > { %v4210_v59 = vpop.f32.mrf.mxu1 }
 0x3e5   : > { %v4207_v35 = vadd.f32 %v4206_v60, %v3662_v38  ;;  %2282 = vmatmul.f32.gmra.mxu2 %v9060_v40  ;;  %3005 = vmatmul.f32.gmra.mxu3 %v9061_v24  ;;  %v3669_v27 = vpop.f32.mrf.mxu0  ;;  %v9064_v60 = vld [vmem:[#allocation315_spill] sm:$0xff]  ;;  %v9067_v24 = vld [vmem:[#allocation302_spill] sm:$0xff]  ;;  %v9071_v40 = vand.u32 4294901760, %v9065_v14 }
 0x3e6   : > { %v1603_v38 = vadd.f32 %v9064_v60, %v9063_v37  ;;  %v9070_v60 = vld [vmem:[#allocation312_spill] sm:$0xff] }
 0x3e7   : > { %4606 = vst [vmem:[%s7035_s24 + $0x128] sm:$0xff] %v4207_v35  ;;  %4273 = vmatmul.f32.gmra.mxu1 %v9057_v18 }
 0x3e8   : > { %v2203_v16 = vpop.f32.mrf.mxu2  ;;  %v2910_v17 = vpop.f32.mrf.mxu3  ;;  %3732 = vmatmul.f32.gmra.mxu0 %v9062_v10 }
 0x3e9   : > { %v2911_v50 = vadd.f32 %v2910_v17, %v2199_v4  ;;  %v2204_v6 = vadd.f32 %v2203_v16, %v1603_v38 }
 0x3eb   : > { %v3666_v13 = vadd.f32 %v3665_v34, %v2911_v50  ;;  %v9068_v50 = vld [vmem:[#allocation317_spill] sm:$0xff] }
 0x3ec   : > { %v4214_v2 = vpop.f32.mrf.mxu1 }
 0x3ed   : > { %v4211_v33 = vadd.f32 %v4210_v59, %v3666_v13  ;;  %2287 = vmatmul.f32.gmra.mxu2 %v9065_v14  ;;  %3011 = vmatmul.f32.gmra.mxu3 %v9066_v5  ;;  %v3673_v28 = vpop.f32.mrf.mxu0  ;;  %v9069_v59 = vld [vmem:[#allocation322_spill] sm:$0xff]  ;;  %v9072_v5 = vld [vmem:[#allocation309_spill] sm:$0xff]  ;;  %v9076_v14 = vand.u32 4294901760, %v9070_v60 }
 0x3ee   : > { %v1607_v13 = vadd.f32 %v9069_v59, %v9068_v50  ;;  %v9075_v59 = vld [vmem:[#allocation319_spill] sm:$0xff] }
 0x3ef   : > { %4607 = vst [vmem:[%s7035_s24 + $0x130] sm:$0xff] %v4211_v33  ;;  %4277 = vmatmul.f32.gmra.mxu1 %v9062_v10 }
 0x3f0   : > { %v2208_v18 = vpop.f32.mrf.mxu2  ;;  %v2916_v35 = vpop.f32.mrf.mxu3  ;;  %3736 = vmatmul.f32.gmra.mxu0 %v9067_v24 }
 0x3f1   : > { %v2917_v34 = vadd.f32 %v2916_v35, %v2204_v6  ;;  %v2209_v38 = vadd.f32 %v2208_v18, %v1607_v13 }
 0x3f3   : > { %v3670_v4 = vadd.f32 %v3669_v27, %v2917_v34  ;;  %v9073_v34 = vld [vmem:[#allocation324_spill] sm:$0xff] }
 0x3f4   : > { %v4218_v17 = vpop.f32.mrf.mxu1 }
 0x3f5   : > { %v4215_v37 = vadd.f32 %v4214_v2, %v3670_v4  ;;  %2292 = vmatmul.f32.gmra.mxu2 %v9070_v60  ;;  %3017 = vmatmul.f32.gmra.mxu3 %v9071_v40  ;;  %v3677_v16 = vpop.f32.mrf.mxu0  ;;  %v9074_v2 = vld [vmem:[#allocation329_spill] sm:$0xff]  ;;  %v9077_v40 = vld [vmem:[#allocation316_spill] sm:$0xff]  ;;  %v9081_v60 = vand.u32 4294901760, %v9075_v59 }
 0x3f6   : > { %v1611_v4 = vadd.f32 %v9074_v2, %v9073_v34  ;;  %v9080_v2 = vld [vmem:[#allocation326_spill] sm:$0xff] }
 0x3f7   : > { %4608 = vst [vmem:[%s7035_s24 + $0x138] sm:$0xff] %v4215_v37  ;;  %4281 = vmatmul.f32.gmra.mxu1 %v9067_v24 }
 0x3f8   : > { %v2213_v10 = vpop.f32.mrf.mxu2  ;;  %v2922_v33 = vpop.f32.mrf.mxu3  ;;  %3740 = vmatmul.f32.gmra.mxu0 %v9072_v5 }
 0x3f9   : > { %v2923_v27 = vadd.f32 %v2922_v33, %v2209_v38  ;;  %v2214_v13 = vadd.f32 %v2213_v10, %v1611_v4 }
 0x3fb   : > { %v3674_v6 = vadd.f32 %v3673_v28, %v2923_v27  ;;  %v9078_v27 = vld [vmem:[#allocation330_spill] sm:$0xff] }
 0x3fc   : > { %v4222_v35 = vpop.f32.mrf.mxu1 }
 0x3fd   : > { %v4219_v50 = vadd.f32 %v4218_v17, %v3674_v6  ;;  %2297 = vmatmul.f32.gmra.mxu2 %v9075_v59  ;;  %3023 = vmatmul.f32.gmra.mxu3 %v9076_v14  ;;  %v3681_v18 = vpop.f32.mrf.mxu0  ;;  %v9079_v17 = vld [vmem:[#allocation335_spill] sm:$0xff]  ;;  %v9086_v59 = vand.u32 4294901760, %v9080_v2 }
 0x3fe   : > { %v1615_v6 = vadd.f32 %v9079_v17, %v9078_v27  ;;  %v9082_v14 = vld [vmem:[#allocation323_spill] sm:$0xff]  ;;  %v9085_v17 = vld [vmem:[#allocation332_spill] sm:$0xff] }
 0x3ff   : > { %4609 = vst [vmem:[%s7035_s24 + $0x140] sm:$0xff] %v4219_v50  ;;  %4285 = vmatmul.f32.gmra.mxu1 %v9072_v5 }
 0x400   : > { %v2218_v24 = vpop.f32.mrf.mxu2  ;;  %v2928_v37 = vpop.f32.mrf.mxu3  ;;  %3744 = vmatmul.f32.gmra.mxu0 %v9077_v40 }
 0x401   : > { %v2929_v28 = vadd.f32 %v2928_v37, %v2214_v13  ;;  %v2219_v4 = vadd.f32 %v2218_v24, %v1615_v6 }
 0x403   : > { %v3678_v38 = vadd.f32 %v3677_v16, %v2929_v28  ;;  %v9083_v28 = vld [vmem:[#allocation336_spill] sm:$0xff] }
 0x404   : > { %v4226_v33 = vpop.f32.mrf.mxu1 }
 0x405   : > { %v4223_v34 = vadd.f32 %v4222_v35, %v3678_v38  ;;  %2302 = vmatmul.f32.gmra.mxu2 %v9080_v2  ;;  %3029 = vmatmul.f32.gmra.mxu3 %v9081_v60  ;;  %v3685_v10 = vpop.f32.mrf.mxu0  ;;  %v9084_v35 = vld [vmem:[#allocation340_spill] sm:$0xff]  ;;  %v9088_v2 = vand.u32 4294901760, %v9085_v17 }
 0x406   : > { %v1619_v38 = vadd.f32 %v9084_v35, %v9083_v28 }
 0x407   : > { %4610 = vst [vmem:[%s7035_s24 + $0x148] sm:$0xff] %v4223_v34  ;;  %4289 = vmatmul.f32.gmra.mxu1 %v9077_v40 }
 0x408   : > { %v2223_v5 = vpop.f32.mrf.mxu2  ;;  %v2934_v50 = vpop.f32.mrf.mxu3  ;;  %3748 = vmatmul.f32.gmra.mxu0 %v9082_v14 }
 0x409   : > { %v2935_v16 = vadd.f32 %v2934_v50, %v2219_v4  ;;  %v2224_v6 = vadd.f32 %v2223_v5, %v1619_v38  ;;  %v9087_v50 = vld [vmem:[#allocation341_spill] sm:$0xff] }
 0x40b   : > { %v3682_v13 = vadd.f32 %v3681_v18, %v2935_v16 }
 0x40c   : > { %v4230_v37 = vpop.f32.mrf.mxu1 }
 0x40d   : > { %v4227_v27 = vadd.f32 %v4226_v33, %v3682_v13  ;;  %2307 = vmatmul.f32.gmra.mxu2 %v9085_v17  ;;  %3035 = vmatmul.f32.gmra.mxu3 %v9086_v59  ;;  %v3689_v24 = vpop.f32.mrf.mxu0  ;;  %v1623_v33 = vadd.f32 %v6792_v19, %v9087_v50  ;;  %v9089_v19 = vld [vmem:[#allocation345_spill] sm:$0xff]  ;;  %v9090_v17 = vand.u32 4294901760, %v6756_v56 }
 0x40f   : > { %4611 = vst [vmem:[%s7035_s24 + $0x150] sm:$0xff] %v4227_v27  ;;  %4293 = vmatmul.f32.gmra.mxu1 %v9082_v14 }
 0x410   : > { %v2228_v40 = vpop.f32.mrf.mxu2  ;;  %v2940_v34 = vpop.f32.mrf.mxu3  ;;  %3752 = vmatmul.f32.gmra.mxu0 %v6711_v8 }
 0x411   : > { %v2941_v18 = vadd.f32 %v2940_v34, %v2224_v6  ;;  %v2229_v13 = vadd.f32 %v2228_v40, %v1623_v33 }
 0x413   : > { %v3686_v60 = vadd.f32 %v3685_v10, %v2941_v18 }
 0x414   : > { %v4234_v4 = vpop.f32.mrf.mxu1 }
 0x415   : > { %v4231_v16 = vadd.f32 %v4230_v37, %v3686_v60  ;;  %2312 = vmatmul.f32.gmra.mxu2 %v6756_v56  ;;  %3041 = vmatmul.f32.gmra.mxu3 %v9088_v2  ;;  %v3693_v5 = vpop.f32.mrf.mxu0  ;;  %v1627_v37 = vadd.f32 %v6816_v46, %v9089_v19  ;;  %v9091_v46 = vld [vmem:[#allocation348_spill] sm:$0xff]  ;;  %v9092_v56 = vand.u32 4294901760, %v6784_v31  ;;  %v9095_v19 = vld [vmem:[#allocation2_spill] sm:$0xff] }
 0x416   : > { %v1631_v60 = vadd.f32 %v6831_v51, %v9091_v46  ;;  %v1635_v51 = vadd.f32 %v6839_v11, %v6834_v0  ;;  %v1639_v0 = vadd.f32 %v6849_v1, %v6843_v41  ;;  %v1643_v41 = vadd.f32 %v6860_v3, %v6854_v54 }
 0x417   : > { %4612 = vst [vmem:[%s7035_s24 + $0x158] sm:$0xff] %v4231_v16  ;;  %4297 = vmatmul.f32.gmra.mxu1 %v6711_v8  ;;  %v1647_v3 = vadd.f32 %v6871_v21, %v6865_v63  ;;  %v1651_v21 = vadd.f32 %v6882_v44, %v6876_v47  ;;  %v1655_v44 = vadd.f32 %v6893_v42, %v6887_v32 }
 0x418   : > { %v2233_v14 = vpop.f32.mrf.mxu2  ;;  %v2946_v28 = vpop.f32.mrf.mxu3  ;;  %3756 = vmatmul.f32.gmra.mxu0 %v6739_v36  ;;  %v1659_v42 = vadd.f32 %v6904_v12, %v6898_v58  ;;  %v1663_v12 = vadd.f32 %v6915_v7, %v6909_v52  ;;  %v1667_v7 = vadd.f32 %v6926_v48, %v6920_v61  ;;  %v1671_v48 = vadd.f32 %v6937_v55, %v6931_v57 }
 0x419   : > { %v2947_v10 = vadd.f32 %v2946_v28, %v2229_v13  ;;  %v2234_v6 = vadd.f32 %v2233_v14, %v1627_v37  ;;  %v9093_v28 = vld [vmem:[#allocation3_spill] sm:$0xff]  ;;  %v1675_v55 = vadd.f32 %v6948_v15, %v6942_v62  ;;  %v1679_v15 = vadd.f32 %v6959_v26, %v6953_v43 }
 0x41a   : > { %v1683_v26 = vadd.f32 %v6970_v39, %v6964_v25  ;;  %v1687_v39 = vadd.f32 %v6981_v49, %v6975_v20  ;;  %v1691_v49 = vadd.f32 %v6992_v29, %v6986_v22  ;;  %v1695_v29 = vadd.f32 %v7003_v53, %v6997_v9  ;;  %v9141_v53 = vld [vmem:[#allocation366_spill] sm:$0xff]  ;;  %v9142_v9 = vld [vmem:[#allocation368_spill] sm:$0xff] }
 0x41b   : > { %v3690_v35 = vadd.f32 %v3689_v24, %v2947_v10 }
 0x41c   : > { %v4238_v38 = vpop.f32.mrf.mxu1 }
 0x41d   : > { %v4235_v27 = vadd.f32 %v4234_v4, %v3690_v35  ;;  %2317 = vmatmul.f32.gmra.mxu2 %v6784_v31  ;;  %3047 = vmatmul.f32.gmra.mxu3 %v9090_v17  ;;  %v3697_v59 = vpop.f32.mrf.mxu0  ;;  %v9094_v31 = vand.u32 4294901760, %v6811_v45 }
 0x41f   : > { %4613 = vst [vmem:[%s7035_s24 + $0x160] sm:$0xff] %v4235_v27  ;;  %4301 = vmatmul.f32.gmra.mxu1 %v6739_v36 }
 0x420   : > { %v2238_v8 = vpop.f32.mrf.mxu2  ;;  %v2952_v40 = vpop.f32.mrf.mxu3  ;;  %3760 = vmatmul.f32.gmra.mxu0 %v6767_v30 }
 0x421   : > { %v2953_v24 = vadd.f32 %v2952_v40, %v2234_v6  ;;  %v2239_v33 = vadd.f32 %v2238_v8, %v1631_v60  ;;  %v9099_v60 = vld [vmem:[#allocation7_spill] sm:$0xff] }
 0x423   : > { %v3694_v34 = vadd.f32 %v3693_v5, %v2953_v24  ;;  %v9098_v24 = vld [vmem:[#allocation4_spill] sm:$0xff] }
 0x424   : > { %v4242_v18 = vpop.f32.mrf.mxu1 }
 0x425   : > { %v4239_v4 = vadd.f32 %v4238_v38, %v3694_v34  ;;  %2322 = vmatmul.f32.gmra.mxu2 %v6811_v45  ;;  %3053 = vmatmul.f32.gmra.mxu3 %v9092_v56  ;;  %v3701_v50 = vpop.f32.mrf.mxu0  ;;  %v9097_v45 = vand.u32 4294901760, %v9093_v28 }
 0x427   : > { %4614 = vst [vmem:[%s7035_s24 + $0x168] sm:$0xff] %v4239_v4  ;;  %4305 = vmatmul.f32.gmra.mxu1 %v6767_v30 }
 0x428   : > { %v2243_v36 = vpop.f32.mrf.mxu2  ;;  %v2958_v16 = vpop.f32.mrf.mxu3  ;;  %3764 = vmatmul.f32.gmra.mxu0 %v6795_v23 }
 0x429   : > { %v2959_v2 = vadd.f32 %v2958_v16, %v2239_v33  ;;  %v2244_v35 = vadd.f32 %v2243_v36, %v1635_v51  ;;  %v9101_v16 = vld [vmem:[#allocation6_spill] sm:$0xff]  ;;  %v9102_v51 = vld [vmem:[#allocation9_spill] sm:$0xff] }
 0x42b   : > { %v3698_v5 = vadd.f32 %v3697_v59, %v2959_v2  ;;  %v9096_v59 = vld [vmem:[#allocation5_spill] sm:$0xff] }
 0x42c   : > { %v4246_v13 = vpop.f32.mrf.mxu1  ;;  %v9100_v4 = vand.u32 4294901760, %v9096_v59 }
 0x42d   : > { %v4243_v14 = vadd.f32 %v4242_v18, %v3698_v5  ;;  %2327 = vmatmul.f32.gmra.mxu2 %v9093_v28  ;;  %3059 = vmatmul.f32.gmra.mxu3 %v9094_v31  ;;  %v3705_v10 = vpop.f32.mrf.mxu0 }
 0x42f   : > { %4615 = vst [vmem:[%s7035_s24 + $0x170] sm:$0xff] %v4243_v14  ;;  %4309 = vmatmul.f32.gmra.mxu1 %v6795_v23  ;;  %v9103_v14 = vand.u32 4294901760, %v9099_v60 }
 0x430   : > { %v2248_v30 = vpop.f32.mrf.mxu2  ;;  %v2964_v38 = vpop.f32.mrf.mxu3  ;;  %3768 = vmatmul.f32.gmra.mxu0 %v9095_v19 }
 0x431   : > { %v2965_v37 = vadd.f32 %v2964_v38, %v2244_v35  ;;  %v2249_v8 = vadd.f32 %v2248_v30, %v1639_v0  ;;  %v9104_v30 = vld [vmem:[#allocation8_spill] sm:$0xff] }
 0x433   : > { %v3702_v27 = vadd.f32 %v3701_v50, %v2965_v37 }
 0x434   : > { %v4250_v17 = vpop.f32.mrf.mxu1 }
 0x435   : > { %v4247_v11 = vadd.f32 %v4246_v13, %v3702_v27  ;;  %2332 = vmatmul.f32.gmra.mxu2 %v9096_v59  ;;  %3065 = vmatmul.f32.gmra.mxu3 %v9097_v45  ;;  %v3709_v6 = vpop.f32.mrf.mxu0  ;;  %v9105_v27 = vld [vmem:[#allocation11_spill] sm:$0xff] }
 0x437   : > { %4616 = vst [vmem:[%s7035_s24 + $0x178] sm:$0xff] %v4247_v11  ;;  %4313 = vmatmul.f32.gmra.mxu1 %v9095_v19 }
 0x438   : > { %v2253_v23 = vpop.f32.mrf.mxu2  ;;  %v2970_v40 = vpop.f32.mrf.mxu3  ;;  %3772 = vmatmul.f32.gmra.mxu0 %v9098_v24 }
 0x439   : > { %v2971_v34 = vadd.f32 %v2970_v40, %v2249_v8  ;;  %v2254_v50 = vadd.f32 %v2253_v23, %v1643_v41 }
 0x43b   : > { %v3706_v18 = vadd.f32 %v3705_v10, %v2971_v34  ;;  %v9109_v34 = vand.u32 4294901760, %v9105_v27 }
 0x43c   : > { %v4254_v46 = vpop.f32.mrf.mxu1 }
 0x43d   : > { %v4251_v1 = vadd.f32 %v4250_v17, %v3706_v18  ;;  %2337 = vmatmul.f32.gmra.mxu2 %v9099_v60  ;;  %3071 = vmatmul.f32.gmra.mxu3 %v9100_v4  ;;  %v3713_v56 = vpop.f32.mrf.mxu0  ;;  %v9106_v17 = vand.u32 4294901760, %v9102_v51  ;;  %v9110_v60 = vld [vmem:[#allocation12_spill] sm:$0xff] }
 0x43f   : > { %4617 = vst [vmem:[%s7035_s24 + $0x180] sm:$0xff] %v4251_v1  ;;  %4317 = vmatmul.f32.gmra.mxu1 %v9098_v24  ;;  %v9108_v24 = vld [vmem:[#allocation13_spill] sm:$0xff] }
 0x440   : > { %v2258_v33 = vpop.f32.mrf.mxu2  ;;  %v2976_v36 = vpop.f32.mrf.mxu3  ;;  %3776 = vmatmul.f32.gmra.mxu0 %v9101_v16 }
 0x441   : > { %v2977_v2 = vadd.f32 %v2976_v36, %v2254_v50  ;;  %v2259_v31 = vadd.f32 %v2258_v33, %v1647_v3  ;;  %v9111_v33 = vld [vmem:[#allocation15_spill] sm:$0xff]  ;;  %v9112_v36 = vand.u32 4294901760, %v9108_v24  ;;  %v9113_v3 = vld [vmem:[#allocation14_spill] sm:$0xff] }
 0x443   : > { %v3710_v5 = vadd.f32 %v3709_v6, %v2977_v2  ;;  %v9107_v6 = vld [vmem:[#allocation10_spill] sm:$0xff] }
 0x444   : > { %v4258_v13 = vpop.f32.mrf.mxu1 }
 0x445   : > { %v4255_v54 = vadd.f32 %v4254_v46, %v3710_v5  ;;  %2342 = vmatmul.f32.gmra.mxu2 %v9102_v51  ;;  %3077 = vmatmul.f32.gmra.mxu3 %v9103_v14  ;;  %v3717_v28 = vpop.f32.mrf.mxu0 }
 0x447   : > { %4618 = vst [vmem:[%s7035_s24 + $0x188] sm:$0xff] %v4255_v54  ;;  %4321 = vmatmul.f32.gmra.mxu1 %v9101_v16 }
 0x448   : > { %v2263_v10 = vpop.f32.mrf.mxu2  ;;  %v2982_v35 = vpop.f32.mrf.mxu3  ;;  %3780 = vmatmul.f32.gmra.mxu0 %v9104_v30 }
 0x449   : > { %v2983_v38 = vadd.f32 %v2982_v35, %v2259_v31  ;;  %v2264_v11 = vadd.f32 %v2263_v10, %v1651_v21  ;;  %v9115_v31 = vand.u32 4294901760, %v9111_v33 }
 0x44b   : > { %v3714_v19 = vadd.f32 %v3713_v56, %v2983_v38 }
 0x44c   : > { %v4262_v37 = vpop.f32.mrf.mxu1 }
 0x44d   : > { %v4259_v63 = vadd.f32 %v4258_v13, %v3714_v19  ;;  %2347 = vmatmul.f32.gmra.mxu2 %v9105_v27  ;;  %3083 = vmatmul.f32.gmra.mxu3 %v9106_v17  ;;  %v3721_v0 = vpop.f32.mrf.mxu0  ;;  %v9116_v19 = vld [vmem:[#allocation16_spill] sm:$0xff]  ;;  %v9117_v27 = vld [vmem:[#allocation19_spill] sm:$0xff] }
 0x44f   : > { %4619 = vst [vmem:[%s7035_s24 + $0x190] sm:$0xff] %v4259_v63  ;;  %4325 = vmatmul.f32.gmra.mxu1 %v9104_v30 }
 0x450   : > { %v2268_v59 = vpop.f32.mrf.mxu2  ;;  %v2988_v45 = vpop.f32.mrf.mxu3  ;;  %3784 = vmatmul.f32.gmra.mxu0 %v9107_v6 }
 0x451   : > { %v2989_v8 = vadd.f32 %v2988_v45, %v2264_v11  ;;  %v2269_v46 = vadd.f32 %v2268_v59, %v1655_v44  ;;  %v9120_v44 = vld [vmem:[#allocation21_spill] sm:$0xff] }
 0x453   : > { %v3718_v23 = vadd.f32 %v3717_v28, %v2989_v8  ;;  %v9114_v28 = vld [vmem:[#allocation17_spill] sm:$0xff] }
 0x454   : > { %v4266_v40 = vpop.f32.mrf.mxu1  ;;  %v9118_v17 = vand.u32 4294901760, %v9114_v28 }
 0x455   : > { %v4263_v47 = vadd.f32 %v4262_v37, %v3718_v23  ;;  %2352 = vmatmul.f32.gmra.mxu2 %v9108_v24  ;;  %3089 = vmatmul.f32.gmra.mxu3 %v9109_v34  ;;  %v3725_v18 = vpop.f32.mrf.mxu0 }
 0x457   : > { %4620 = vst [vmem:[%s7035_s24 + $0x198] sm:$0xff] %v4263_v47  ;;  %4329 = vmatmul.f32.gmra.mxu1 %v9107_v6  ;;  %v9119_v6 = vld [vmem:[#allocation18_spill] sm:$0xff]  ;;  %v9121_v47 = vand.u32 4294901760, %v9117_v27 }
 0x458   : > { %v2273_v41 = vpop.f32.mrf.mxu2  ;;  %v2994_v1 = vpop.f32.mrf.mxu3  ;;  %3788 = vmatmul.f32.gmra.mxu0 %v9110_v60 }
 0x459   : > { %v2995_v4 = vadd.f32 %v2994_v1, %v2269_v46  ;;  %v2274_v2 = vadd.f32 %v2273_v41, %v1659_v42  ;;  %v9122_v41 = vld [vmem:[#allocation20_spill] sm:$0xff] }
 0x45b   : > { %v3722_v56 = vadd.f32 %v3721_v0, %v2995_v4 }
 0x45c   : > { %v4270_v50 = vpop.f32.mrf.mxu1 }
 0x45d   : > { %v4267_v32 = vadd.f32 %v4266_v40, %v3722_v56  ;;  %2357 = vmatmul.f32.gmra.mxu2 %v9111_v33  ;;  %3095 = vmatmul.f32.gmra.mxu3 %v9112_v36  ;;  %v3729_v16 = vpop.f32.mrf.mxu0  ;;  %v9123_v56 = vld [vmem:[#allocation23_spill] sm:$0xff] }
 0x45f   : > { %4621 = vst [vmem:[%s7035_s24 + $0x1a0] sm:$0xff] %v4267_v32  ;;  %4333 = vmatmul.f32.gmra.mxu1 %v9110_v60 }
 0x460   : > { %v2278_v5 = vpop.f32.mrf.mxu2  ;;  %v3000_v13 = vpop.f32.mrf.mxu3  ;;  %3792 = vmatmul.f32.gmra.mxu0 %v9113_v3 }
 0x461   : > { %v3001_v54 = vadd.f32 %v3000_v13, %v2274_v2  ;;  %v2279_v35 = vadd.f32 %v2278_v5, %v1663_v12 }
 0x463   : > { %v3726_v51 = vadd.f32 %v3725_v18, %v3001_v54  ;;  %v9127_v54 = vand.u32 4294901760, %v9123_v56 }
 0x464   : > { %v4274_v14 = vpop.f32.mrf.mxu1 }
 0x465   : > { %v4271_v58 = vadd.f32 %v4270_v50, %v3726_v51  ;;  %2362 = vmatmul.f32.gmra.mxu2 %v9114_v28  ;;  %3101 = vmatmul.f32.gmra.mxu3 %v9115_v31  ;;  %v3733_v10 = vpop.f32.mrf.mxu0  ;;  %v9124_v50 = vand.u32 4294901760, %v9120_v44  ;;  %v9128_v28 = vld [vmem:[#allocation24_spill] sm:$0xff] }
 0x467   : > { %4622 = vst [vmem:[%s7035_s24 + $0x1a8] sm:$0xff] %v4271_v58  ;;  %4337 = vmatmul.f32.gmra.mxu1 %v9113_v3  ;;  %v9126_v3 = vld [vmem:[#allocation25_spill] sm:$0xff] }
 0x468   : > { %v2283_v30 = vpop.f32.mrf.mxu2  ;;  %v3006_v38 = vpop.f32.mrf.mxu3  ;;  %3796 = vmatmul.f32.gmra.mxu0 %v9116_v19 }
 0x469   : > { %v3007_v37 = vadd.f32 %v3006_v38, %v2279_v35  ;;  %v2284_v11 = vadd.f32 %v2283_v30, %v1667_v7  ;;  %v9129_v30 = vld [vmem:[#allocation27_spill] sm:$0xff]  ;;  %v9130_v38 = vand.u32 4294901760, %v9126_v3  ;;  %v9131_v7 = vld [vmem:[#allocation26_spill] sm:$0xff] }
 0x46b   : > { %v3730_v21 = vadd.f32 %v3729_v16, %v3007_v37  ;;  %v9125_v16 = vld [vmem:[#allocation22_spill] sm:$0xff] }
 0x46c   : > { %v4278_v63 = vpop.f32.mrf.mxu1 }
 0x46d   : > { %v4275_v52 = vadd.f32 %v4274_v14, %v3730_v21  ;;  %2367 = vmatmul.f32.gmra.mxu2 %v9117_v27  ;;  %3107 = vmatmul.f32.gmra.mxu3 %v9118_v17  ;;  %v3737_v0 = vpop.f32.mrf.mxu0 }
 0x46f   : > { %4623 = vst [vmem:[%s7035_s24 + $0x1b0] sm:$0xff] %v4275_v52  ;;  %4341 = vmatmul.f32.gmra.mxu1 %v9116_v19 }
 0x470   : > { %v2288_v59 = vpop.f32.mrf.mxu2  ;;  %v3012_v45 = vpop.f32.mrf.mxu3  ;;  %3800 = vmatmul.f32.gmra.mxu0 %v9119_v6 }
 0x471   : > { %v3013_v8 = vadd.f32 %v3012_v45, %v2284_v11  ;;  %v2289_v34 = vadd.f32 %v2288_v59, %v1671_v48  ;;  %v9133_v11 = vand.u32 4294901760, %v9129_v30 }
 0x473   : > { %v3734_v23 = vadd.f32 %v3733_v10, %v3013_v8 }
 0x474   : > { %v4282_v40 = vpop.f32.mrf.mxu1 }
 0x475   : > { %v4279_v61 = vadd.f32 %v4278_v63, %v3734_v23  ;;  %2372 = vmatmul.f32.gmra.mxu2 %v9120_v44  ;;  %3113 = vmatmul.f32.gmra.mxu3 %v9121_v47  ;;  %v3741_v24 = vpop.f32.mrf.mxu0  ;;  %v9134_v23 = vld [vmem:[#allocation28_spill] sm:$0xff]  ;;  %v9135_v44 = vld [vmem:[#allocation31_spill] sm:$0xff] }
 0x477   : > { %4624 = vst [vmem:[%s7035_s24 + $0x1b8] sm:$0xff] %v4279_v61  ;;  %4345 = vmatmul.f32.gmra.mxu1 %v9119_v6 }
 0x478   : > { %v2293_v18 = vpop.f32.mrf.mxu2  ;;  %v3018_v46 = vpop.f32.mrf.mxu3  ;;  %3804 = vmatmul.f32.gmra.mxu0 %v9122_v41 }
 0x479   : > { %v3019_v1 = vadd.f32 %v3018_v46, %v2289_v34  ;;  %v2294_v32 = vadd.f32 %v2293_v18, %v1675_v55  ;;  %v9138_v55 = vld [vmem:[#allocation33_spill] sm:$0xff] }
 0x47b   : > { %v3738_v60 = vadd.f32 %v3737_v0, %v3019_v1  ;;  %v9132_v0 = vld [vmem:[#allocation29_spill] sm:$0xff] }
 0x47c   : > { %v4286_v4 = vpop.f32.mrf.mxu1  ;;  %v9136_v47 = vand.u32 4294901760, %v9132_v0 }
 0x47d   : > { %v4283_v57 = vadd.f32 %v4282_v40, %v3738_v60  ;;  %2377 = vmatmul.f32.gmra.mxu2 %v9123_v56  ;;  %3119 = vmatmul.f32.gmra.mxu3 %v9124_v50  ;;  %v3745_v42 = vpop.f32.mrf.mxu0 }
 0x47f   : > { %4625 = vst [vmem:[%s7035_s24 + $0x1c0] sm:$0xff] %v4283_v57  ;;  %4349 = vmatmul.f32.gmra.mxu1 %v9122_v41  ;;  %v9137_v41 = vld [vmem:[#allocation30_spill] sm:$0xff]  ;;  %v9139_v57 = vand.u32 4294901760, %v9135_v44 }
 0x480   : > { %v2298_v33 = vpop.f32.mrf.mxu2  ;;  %v3024_v36 = vpop.f32.mrf.mxu3  ;;  %3808 = vmatmul.f32.gmra.mxu0 %v9125_v16 }
 0x481   : > { %v3025_v2 = vadd.f32 %v3024_v36, %v2294_v32  ;;  %v2299_v14 = vadd.f32 %v2298_v33, %v1679_v15  ;;  %v9140_v33 = vld [vmem:[#allocation32_spill] sm:$0xff]  ;;  %v9143_v15 = vld [vmem:[#allocation35_spill] sm:$0xff] }
 0x483   : > { %v3742_v5 = vadd.f32 %v3741_v24, %v3025_v2 }
 0x484   : > { %v4290_v13 = vpop.f32.mrf.mxu1 }
 0x485   : > { %v4287_v62 = vadd.f32 %v4286_v4, %v3742_v5  ;;  %2382 = vmatmul.f32.gmra.mxu2 %v9126_v3  ;;  %3125 = vmatmul.f32.gmra.mxu3 %v9127_v54  ;;  %v3749_v51 = vpop.f32.mrf.mxu0  ;;  %v1699_v5 = vadd.f32 %v9142_v9, %v9141_v53 }
 0x487   : > { %4626 = vst [vmem:[%s7035_s24 + $0x1c8] sm:$0xff] %v4287_v62  ;;  %4353 = vmatmul.f32.gmra.mxu1 %v9125_v16  ;;  %v9144_v62 = vand.u32 4294901760, %v9138_v55 }
 0x488   : > { %v2303_v12 = vpop.f32.mrf.mxu2  ;;  %v3030_v58 = vpop.f32.mrf.mxu3  ;;  %3812 = vmatmul.f32.gmra.mxu0 %v9128_v28 }
 0x489   : > { %v3031_v31 = vadd.f32 %v3030_v58, %v2299_v14  ;;  %v2304_v37 = vadd.f32 %v2303_v12, %v1683_v26  ;;  %v9145_v12 = vld [vmem:[#allocation34_spill] sm:$0xff]  ;;  %v9147_v26 = vand.u32 4294901760, %v9143_v15 }
 0x48b   : > { %v3746_v10 = vadd.f32 %v3745_v42, %v3031_v31 }
 0x48c   : > { %v4294_v35 = vpop.f32.mrf.mxu1 }
 0x48d   : > { %v4291_v43 = vadd.f32 %v4290_v13, %v3746_v10  ;;  %2387 = vmatmul.f32.gmra.mxu2 %v9129_v30  ;;  %3131 = vmatmul.f32.gmra.mxu3 %v9130_v38  ;;  %v3753_v19 = vpop.f32.mrf.mxu0  ;;  %v9148_v30 = vld [vmem:[#allocation47_spill] sm:$0xff] }
 0x48f   : > { %4627 = vst [vmem:[%s7035_s24 + $0x1d0] sm:$0xff] %v4291_v43  ;;  %4357 = vmatmul.f32.gmra.mxu1 %v9128_v28 }
 0x490   : > { %v2308_v21 = vpop.f32.mrf.mxu2  ;;  %v3036_v63 = vpop.f32.mrf.mxu3  ;;  %3816 = vmatmul.f32.gmra.mxu0 %v9131_v7 }
 0x491   : > { %v3037_v52 = vadd.f32 %v3036_v63, %v2304_v37  ;;  %v2309_v45 = vadd.f32 %v2308_v21, %v1687_v39  ;;  %v9149_v21 = vld [vmem:[#allocation36_spill] sm:$0xff] }
 0x493   : > { %v3750_v27 = vadd.f32 %v3749_v51, %v3037_v52 }
 0x494   : > { %v4298_v17 = vpop.f32.mrf.mxu1 }
 0x495   : > { %v4295_v25 = vadd.f32 %v4294_v35, %v3750_v27  ;;  %2392 = vmatmul.f32.gmra.mxu2 %v9132_v0  ;;  %3137 = vmatmul.f32.gmra.mxu3 %v9133_v11  ;;  %v3757_v59 = vpop.f32.mrf.mxu0  ;;  %v9146_v35 = vld [vmem:[#allocation37_spill] sm:$0xff]  ;;  %v9152_v0 = vld [vmem:[#allocation54_spill] sm:$0xff] }
 0x496   : > { %v9151_v39 = vand.u32 4294901760, %v9146_v35 }
 0x497   : > { %4628 = vst [vmem:[%s7035_s24 + $0x1d8] sm:$0xff] %v4295_v25  ;;  %4361 = vmatmul.f32.gmra.mxu1 %v9131_v7 }
 0x498   : > { %v2313_v6 = vpop.f32.mrf.mxu2  ;;  %v3042_v8 = vpop.f32.mrf.mxu3  ;;  %3820 = vmatmul.f32.gmra.mxu0 %v9134_v23 }
 0x499   : > { %v3043_v40 = vadd.f32 %v3042_v8, %v2309_v45  ;;  %v2314_v34 = vadd.f32 %v2313_v6, %v1691_v49  ;;  %v9153_v6 = vld [vmem:[#allocation38_spill] sm:$0xff] }
 0x49b   : > { %v3754_v48 = vadd.f32 %v3753_v19, %v3043_v40 }
 0x49c   : > { %v4302_v61 = vpop.f32.mrf.mxu1 }
 0x49d   : > { %v4299_v20 = vadd.f32 %v4298_v17, %v3754_v48  ;;  %2397 = vmatmul.f32.gmra.mxu2 %v9135_v44  ;;  %3143 = vmatmul.f32.gmra.mxu3 %v9136_v47  ;;  %v3761_v24 = vpop.f32.mrf.mxu0  ;;  %v9150_v17 = vld [vmem:[#allocation40_spill] sm:$0xff]  ;;  %v9156_v44 = vld [vmem:[#allocation61_spill] sm:$0xff] }
 0x49e   : > { %v9155_v49 = vand.u32 4294901760, %v9150_v17 }
 0x49f   : > { %4629 = vst [vmem:[%s7035_s24 + $0x1e0] sm:$0xff] %v4299_v20  ;;  %4365 = vmatmul.f32.gmra.mxu1 %v9134_v23 }
 0x4a0   : > { %v2318_v18 = vpop.f32.mrf.mxu2  ;;  %v3048_v46 = vpop.f32.mrf.mxu3  ;;  %3824 = vmatmul.f32.gmra.mxu0 %v9137_v41 }
 0x4a1   : > { %v3049_v1 = vadd.f32 %v3048_v46, %v2314_v34  ;;  %v2319_v50 = vadd.f32 %v2318_v18, %v1695_v29  ;;  %v9157_v18 = vld [vmem:[#allocation42_spill] sm:$0xff] }
 0x4a3   : > { %v3758_v60 = vadd.f32 %v3757_v59, %v3049_v1 }
 0x4a4   : > { %v4306_v4 = vpop.f32.mrf.mxu1 }
 0x4a5   : > { %v4303_v22 = vadd.f32 %v4302_v61, %v3758_v60  ;;  %2402 = vmatmul.f32.gmra.mxu2 %v9138_v55  ;;  %3149 = vmatmul.f32.gmra.mxu3 %v9139_v57  ;;  %v3765_v56 = vpop.f32.mrf.mxu0  ;;  %v9154_v61 = vld [vmem:[#allocation45_spill] sm:$0xff]  ;;  %v9160_v55 = vld [vmem:[#allocation68_spill] sm:$0xff] }
 0x4a6   : > { %v9159_v29 = vand.u32 4294901760, %v9154_v61 }
 0x4a7   : > { %4630 = vst [vmem:[%s7035_s24 + $0x1e8] sm:$0xff] %v4303_v22  ;;  %4369 = vmatmul.f32.gmra.mxu1 %v9137_v41 }
 0x4a8   : > { %v2323_v42 = vpop.f32.mrf.mxu2  ;;  %v3054_v32 = vpop.f32.mrf.mxu3  ;;  %3828 = vmatmul.f32.gmra.mxu0 %v9140_v33 }
 0x4a9   : > { %v3055_v36 = vadd.f32 %v3054_v32, %v2319_v50  ;;  %v2324_v54 = vadd.f32 %v2323_v42, %v1699_v5  ;;  %v9161_v42 = vld [vmem:[#allocation48_spill] sm:$0xff]  ;;  %v9164_v5 = vld [vmem:[#allocation75_spill] sm:$0xff] }
 0x4ab   : > { %v3762_v16 = vadd.f32 %v3761_v24, %v3055_v36 }
 0x4ac   : > { %v4310_v2 = vpop.f32.mrf.mxu1 }
 0x4ad   : > { %v4307_v13 = vadd.f32 %v4306_v4, %v3762_v16  ;;  %2407 = vmatmul.f32.gmra.mxu2 %v9143_v15  ;;  %3155 = vmatmul.f32.gmra.mxu3 %v9144_v62  ;;  %v3769_v3 = vpop.f32.mrf.mxu0  ;;  %v9158_v4 = vld [vmem:[#allocation52_spill] sm:$0xff] }
 0x4ae   : > { %v9163_v53 = vand.u32 4294901760, %v9158_v4 }
 0x4af   : > { %4631 = vst [vmem:[%s7035_s24 + $0x1f0] sm:$0xff] %v4307_v13  ;;  %4373 = vmatmul.f32.gmra.mxu1 %v9140_v33 }
 0x4b0   : > { %v2328_v51 = vpop.f32.mrf.mxu2  ;;  %v3060_v14 = vpop.f32.mrf.mxu3  ;;  %3832 = vmatmul.f32.gmra.mxu0 %v9145_v12 }
 0x4b1   : > { %v3061_v58 = vadd.f32 %v3060_v14, %v2324_v54  ;;  %v2329_v38 = vadd.f32 %v2328_v51, %v9148_v30  ;;  %v9169_v30 = vld [vmem:[#allocation62_spill] sm:$0xff] }
 0x4b3   : > { %v3766_v28 = vadd.f32 %v3765_v56, %v3061_v58  ;;  %v9166_v58 = vld [vmem:[#allocation66_spill] sm:$0xff] }
 0x4b4   : > { %v4314_v31 = vpop.f32.mrf.mxu1 }
 0x4b5   : > { %v4311_v10 = vadd.f32 %v4310_v2, %v3766_v28  ;;  %2412 = vmatmul.f32.gmra.mxu2 %v9146_v35  ;;  %3161 = vmatmul.f32.gmra.mxu3 %v9147_v26  ;;  %v3773_v43 = vpop.f32.mrf.mxu0  ;;  %v9162_v2 = vld [vmem:[#allocation59_spill] sm:$0xff] }
 0x4b6   : > { %v9167_v28 = vand.u32 4294901760, %v9162_v2 }
 0x4b7   : > { %4632 = vst [vmem:[%s7035_s24 + $0x1f8] sm:$0xff] %v4311_v10  ;;  %4377 = vmatmul.f32.gmra.mxu1 %v9145_v12  ;;  %v9168_v10 = vld [vmem:[#allocation82_spill] sm:$0xff] }
 0x4b8   : > { %v2333_v19 = vpop.f32.mrf.mxu2  ;;  %v3066_v37 = vpop.f32.mrf.mxu3  ;;  %3836 = vmatmul.f32.gmra.mxu0 %v9149_v21 }
 0x4b9   : > { %v3067_v63 = vadd.f32 %v3066_v37, %v2329_v38  ;;  %v2334_v11 = vadd.f32 %v2333_v19, %v9152_v0  ;;  %v9173_v0 = vld [vmem:[#allocation69_spill] sm:$0xff] }
 0x4bb   : > { %v3770_v7 = vadd.f32 %v3769_v3, %v3067_v63  ;;  %v9165_v3 = vld [vmem:[#allocation55_spill] sm:$0xff]  ;;  %v9170_v63 = vld [vmem:[#allocation73_spill] sm:$0xff] }
 0x4bc   : > { %v4318_v52 = vpop.f32.mrf.mxu1 }
 0x4bd   : > { %v4315_v27 = vadd.f32 %v4314_v31, %v3770_v7  ;;  %2417 = vmatmul.f32.gmra.mxu2 %v9150_v17  ;;  %3167 = vmatmul.f32.gmra.mxu3 %v9151_v39  ;;  %v3777_v25 = vpop.f32.mrf.mxu0  ;;  %v9171_v7 = vand.u32 4294901760, %v9166_v58 }
 0x4bf   : > { %4633 = vst [vmem:[%s7035_s24 + $0x200] sm:$0xff] %v4315_v27  ;;  %4381 = vmatmul.f32.gmra.mxu1 %v9149_v21  ;;  %v9172_v27 = vld [vmem:[#allocation89_spill] sm:$0xff] }
 0x4c0   : > { %v2338_v59 = vpop.f32.mrf.mxu2  ;;  %v3072_v45 = vpop.f32.mrf.mxu3  ;;  %3840 = vmatmul.f32.gmra.mxu0 %v9153_v6 }
 0x4c1   : > { %v3073_v8 = vadd.f32 %v3072_v45, %v2334_v11  ;;  %v2339_v47 = vadd.f32 %v2338_v59, %v9156_v44  ;;  %v9177_v44 = vld [vmem:[#allocation76_spill] sm:$0xff] }
 0x4c3   : > { %v3774_v23 = vadd.f32 %v3773_v43, %v3073_v8  ;;  %v9174_v8 = vld [vmem:[#allocation80_spill] sm:$0xff] }
 0x4c4   : > { %v4322_v40 = vpop.f32.mrf.mxu1 }
 0x4c5   : > { %v4319_v48 = vadd.f32 %v4318_v52, %v3774_v23  ;;  %2422 = vmatmul.f32.gmra.mxu2 %v9154_v61  ;;  %3173 = vmatmul.f32.gmra.mxu3 %v9155_v49  ;;  %v3781_v20 = vpop.f32.mrf.mxu0  ;;  %v9175_v23 = vand.u32 4294901760, %v9170_v63 }
 0x4c7   : > { %4634 = vst [vmem:[%s7035_s24 + $0x208] sm:$0xff] %v4319_v48  ;;  %4385 = vmatmul.f32.gmra.mxu1 %v9153_v6  ;;  %v9176_v48 = vld [vmem:[#allocation96_spill] sm:$0xff] }
 0x4c8   : > { %v2343_v24 = vpop.f32.mrf.mxu2  ;;  %v3078_v34 = vpop.f32.mrf.mxu3  ;;  %3844 = vmatmul.f32.gmra.mxu0 %v9157_v18 }
 0x4c9   : > { %v3079_v46 = vadd.f32 %v3078_v34, %v2339_v47  ;;  %v2344_v57 = vadd.f32 %v2343_v24, %v9160_v55  ;;  %v9181_v55 = vld [vmem:[#allocation83_spill] sm:$0xff] }
 0x4cb   : > { %v3778_v41 = vadd.f32 %v3777_v25, %v3079_v46  ;;  %v9178_v46 = vld [vmem:[#allocation87_spill] sm:$0xff] }
 0x4cc   : > { %v4326_v1 = vpop.f32.mrf.mxu1 }
 0x4cd   : > { %v4323_v60 = vadd.f32 %v4322_v40, %v3778_v41  ;;  %2427 = vmatmul.f32.gmra.mxu2 %v9158_v4  ;;  %3179 = vmatmul.f32.gmra.mxu3 %v9159_v29  ;;  %v3785_v22 = vpop.f32.mrf.mxu0  ;;  %v9179_v41 = vand.u32 4294901760, %v9174_v8 }
 0x4cf   : > { %4635 = vst [vmem:[%s7035_s24 + $0x210] sm:$0xff] %v4323_v60  ;;  %4389 = vmatmul.f32.gmra.mxu1 %v9157_v18  ;;  %v9180_v60 = vld [vmem:[#allocation103_spill] sm:$0xff] }
 0x4d0   : > { %v2348_v56 = vpop.f32.mrf.mxu2  ;;  %v3084_v50 = vpop.f32.mrf.mxu3  ;;  %3848 = vmatmul.f32.gmra.mxu0 %v9161_v42 }
 0x4d1   : > { %v3085_v32 = vadd.f32 %v3084_v50, %v2344_v57  ;;  %v2349_v13 = vadd.f32 %v2348_v56, %v9164_v5  ;;  %v9185_v5 = vld [vmem:[#allocation90_spill] sm:$0xff] }
 0x4d3   : > { %v3782_v33 = vadd.f32 %v3781_v20, %v3085_v32  ;;  %v9182_v32 = vld [vmem:[#allocation94_spill] sm:$0xff] }
 0x4d4   : > { %v4330_v36 = vpop.f32.mrf.mxu1 }
 0x4d5   : > { %v4327_v16 = vadd.f32 %v4326_v1, %v3782_v33  ;;  %2432 = vmatmul.f32.gmra.mxu2 %v9162_v2  ;;  %3185 = vmatmul.f32.gmra.mxu3 %v9163_v53  ;;  %v3789_v9 = vpop.f32.mrf.mxu0  ;;  %v9183_v33 = vand.u32 4294901760, %v9178_v46 }
 0x4d7   : > { %4636 = vst [vmem:[%s7035_s24 + $0x218] sm:$0xff] %v4327_v16  ;;  %4393 = vmatmul.f32.gmra.mxu1 %v9161_v42  ;;  %v9184_v16 = vld [vmem:[#allocation110_spill] sm:$0xff] }
 0x4d8   : > { %v2353_v15 = vpop.f32.mrf.mxu2  ;;  %v3090_v62 = vpop.f32.mrf.mxu3  ;;  %3852 = vmatmul.f32.gmra.mxu0 %v9165_v3 }
 0x4d9   : > { %v3091_v54 = vadd.f32 %v3090_v62, %v2349_v13  ;;  %v2354_v35 = vadd.f32 %v2353_v15, %v9168_v10  ;;  %v9189_v10 = vld [vmem:[#allocation97_spill] sm:$0xff] }
 0x4db   : > { %v3786_v51 = vadd.f32 %v3785_v22, %v3091_v54  ;;  %v9186_v54 = vld [vmem:[#allocation101_spill] sm:$0xff] }
 0x4dc   : > { %v4334_v14 = vpop.f32.mrf.mxu1 }
 0x4dd   : > { %v4331_v12 = vadd.f32 %v4330_v36, %v3786_v51  ;;  %2437 = vmatmul.f32.gmra.mxu2 %v9166_v58  ;;  %3191 = vmatmul.f32.gmra.mxu3 %v9167_v28  ;;  %v3793_v31 = vpop.f32.mrf.mxu0  ;;  %v9187_v51 = vand.u32 4294901760, %v9182_v32 }
 0x4df   : > { %4637 = vst [vmem:[%s7035_s24 + $0x220] sm:$0xff] %v4331_v12  ;;  %4397 = vmatmul.f32.gmra.mxu1 %v9165_v3  ;;  %v9188_v12 = vld [vmem:[#allocation117_spill] sm:$0xff] }
 0x4e0   : > { %v2358_v26 = vpop.f32.mrf.mxu2  ;;  %v3096_v43 = vpop.f32.mrf.mxu3  ;;  %3856 = vmatmul.f32.gmra.mxu0 %v9169_v30 }
 0x4e1   : > { %v3097_v38 = vadd.f32 %v3096_v43, %v2354_v35  ;;  %v2359_v17 = vadd.f32 %v2358_v26, %v9172_v27  ;;  %v9193_v27 = vld [vmem:[#allocation104_spill] sm:$0xff] }
 0x4e3   : > { %v3790_v19 = vadd.f32 %v3789_v9, %v3097_v38  ;;  %v9190_v38 = vld [vmem:[#allocation108_spill] sm:$0xff] }
 0x4e4   : > { %v4338_v37 = vpop.f32.mrf.mxu1 }
 0x4e5   : > { %v4335_v21 = vadd.f32 %v4334_v14, %v3790_v19  ;;  %2442 = vmatmul.f32.gmra.mxu2 %v9170_v63  ;;  %3197 = vmatmul.f32.gmra.mxu3 %v9171_v7  ;;  %v3797_v52 = vpop.f32.mrf.mxu0  ;;  %v9191_v19 = vand.u32 4294901760, %v9186_v54 }
 0x4e7   : > { %4638 = vst [vmem:[%s7035_s24 + $0x228] sm:$0xff] %v4335_v21  ;;  %4401 = vmatmul.f32.gmra.mxu1 %v9169_v30  ;;  %v9192_v21 = vld [vmem:[#allocation124_spill] sm:$0xff] }
 0x4e8   : > { %v2363_v39 = vpop.f32.mrf.mxu2  ;;  %v3102_v25 = vpop.f32.mrf.mxu3  ;;  %3860 = vmatmul.f32.gmra.mxu0 %v9173_v0 }
 0x4e9   : > { %v3103_v11 = vadd.f32 %v3102_v25, %v2359_v17  ;;  %v2364_v61 = vadd.f32 %v2363_v39, %v9176_v48  ;;  %v9197_v48 = vld [vmem:[#allocation111_spill] sm:$0xff] }
 0x4eb   : > { %v3794_v59 = vadd.f32 %v3793_v31, %v3103_v11  ;;  %v9194_v11 = vld [vmem:[#allocation115_spill] sm:$0xff] }
 0x4ec   : > { %v4342_v45 = vpop.f32.mrf.mxu1 }
 0x4ed   : > { %v4339_v6 = vadd.f32 %v4338_v37, %v3794_v59  ;;  %2447 = vmatmul.f32.gmra.mxu2 %v9174_v8  ;;  %3203 = vmatmul.f32.gmra.mxu3 %v9175_v23  ;;  %v3801_v40 = vpop.f32.mrf.mxu0  ;;  %v9195_v59 = vand.u32 4294901760, %v9190_v38 }
 0x4ef   : > { %4639 = vst [vmem:[%s7035_s24 + $0x230] sm:$0xff] %v4339_v6  ;;  %4405 = vmatmul.f32.gmra.mxu1 %v9173_v0  ;;  %v9196_v6 = vld [vmem:[#allocation131_spill] sm:$0xff] }
 0x4f0   : > { %v2368_v49 = vpop.f32.mrf.mxu2  ;;  %v3108_v20 = vpop.f32.mrf.mxu3  ;;  %3864 = vmatmul.f32.gmra.mxu0 %v9177_v44 }
 0x4f1   : > { %v3109_v47 = vadd.f32 %v3108_v20, %v2364_v61  ;;  %v2369_v4 = vadd.f32 %v2368_v49, %v9180_v60  ;;  %v9201_v60 = vld [vmem:[#allocation118_spill] sm:$0xff] }
 0x4f3   : > { %v3798_v24 = vadd.f32 %v3797_v52, %v3109_v47  ;;  %v9198_v47 = vld [vmem:[#allocation122_spill] sm:$0xff] }
 0x4f4   : > { %v4346_v34 = vpop.f32.mrf.mxu1 }
 0x4f5   : > { %v4343_v18 = vadd.f32 %v4342_v45, %v3798_v24  ;;  %2452 = vmatmul.f32.gmra.mxu2 %v9178_v46  ;;  %3209 = vmatmul.f32.gmra.mxu3 %v9179_v41  ;;  %v3805_v1 = vpop.f32.mrf.mxu0  ;;  %v9199_v24 = vand.u32 4294901760, %v9194_v11 }
 0x4f7   : > { %4640 = vst [vmem:[%s7035_s24 + $0x238] sm:$0xff] %v4343_v18  ;;  %4409 = vmatmul.f32.gmra.mxu1 %v9177_v44  ;;  %v9200_v18 = vld [vmem:[#allocation138_spill] sm:$0xff] }
 0x4f8   : > { %v2373_v29 = vpop.f32.mrf.mxu2  ;;  %v3114_v22 = vpop.f32.mrf.mxu3  ;;  %3868 = vmatmul.f32.gmra.mxu0 %v9181_v55 }
 0x4f9   : > { %v3115_v57 = vadd.f32 %v3114_v22, %v2369_v4  ;;  %v2374_v2 = vadd.f32 %v2373_v29, %v9184_v16  ;;  %v9205_v16 = vld [vmem:[#allocation125_spill] sm:$0xff] }
 0x4fb   : > { %v3802_v56 = vadd.f32 %v3801_v40, %v3115_v57  ;;  %v9202_v57 = vld [vmem:[#allocation129_spill] sm:$0xff] }
 0x4fc   : > { %v4350_v50 = vpop.f32.mrf.mxu1 }
 0x4fd   : > { %v4347_v42 = vadd.f32 %v4346_v34, %v3802_v56  ;;  %2457 = vmatmul.f32.gmra.mxu2 %v9182_v32  ;;  %3215 = vmatmul.f32.gmra.mxu3 %v9183_v33  ;;  %v3809_v36 = vpop.f32.mrf.mxu0  ;;  %v9203_v56 = vand.u32 4294901760, %v9198_v47 }
 0x4ff   : > { %4641 = vst [vmem:[%s7035_s24 + $0x240] sm:$0xff] %v4347_v42  ;;  %4413 = vmatmul.f32.gmra.mxu1 %v9181_v55  ;;  %v9204_v42 = vld [vmem:[#allocation145_spill] sm:$0xff] }
 0x500   : > { %v2378_v53 = vpop.f32.mrf.mxu2  ;;  %v3120_v9 = vpop.f32.mrf.mxu3  ;;  %3872 = vmatmul.f32.gmra.mxu0 %v9185_v5 }
 0x501   : > { %v3121_v13 = vadd.f32 %v3120_v9, %v2374_v2  ;;  %v2379_v58 = vadd.f32 %v2378_v53, %v9188_v12  ;;  %v9209_v12 = vld [vmem:[#allocation132_spill] sm:$0xff] }
 0x503   : > { %v3806_v15 = vadd.f32 %v3805_v1, %v3121_v13  ;;  %v9206_v13 = vld [vmem:[#allocation136_spill] sm:$0xff] }
 0x504   : > { %v4354_v62 = vpop.f32.mrf.mxu1 }
 0x505   : > { %v4351_v3 = vadd.f32 %v4350_v50, %v3806_v15  ;;  %2462 = vmatmul.f32.gmra.mxu2 %v9186_v54  ;;  %3221 = vmatmul.f32.gmra.mxu3 %v9187_v51  ;;  %v3813_v14 = vpop.f32.mrf.mxu0  ;;  %v9207_v15 = vand.u32 4294901760, %v9202_v57 }
 0x507   : > { %4642 = vst [vmem:[%s7035_s24 + $0x248] sm:$0xff] %v4351_v3  ;;  %4417 = vmatmul.f32.gmra.mxu1 %v9185_v5  ;;  %v9208_v3 = vld [vmem:[#allocation152_spill] sm:$0xff] }
 0x508   : > { %v2383_v28 = vpop.f32.mrf.mxu2  ;;  %v3126_v31 = vpop.f32.mrf.mxu3  ;;  %3876 = vmatmul.f32.gmra.mxu0 %v9189_v10 }
 0x509   : > { %v3127_v35 = vadd.f32 %v3126_v31, %v2379_v58  ;;  %v2384_v63 = vadd.f32 %v2383_v28, %v9192_v21  ;;  %v9213_v21 = vld [vmem:[#allocation139_spill] sm:$0xff] }
 0x50b   : > { %v3810_v26 = vadd.f32 %v3809_v36, %v3127_v35  ;;  %v9210_v35 = vld [vmem:[#allocation143_spill] sm:$0xff] }
 0x50c   : > { %v4358_v43 = vpop.f32.mrf.mxu1 }
 0x50d   : > { %v4355_v30 = vadd.f32 %v4354_v62, %v3810_v26  ;;  %2467 = vmatmul.f32.gmra.mxu2 %v9190_v38  ;;  %3227 = vmatmul.f32.gmra.mxu3 %v9191_v19  ;;  %v3817_v37 = vpop.f32.mrf.mxu0  ;;  %v9211_v26 = vand.u32 4294901760, %v9206_v13 }
 0x50f   : > { %4643 = vst [vmem:[%s7035_s24 + $0x250] sm:$0xff] %v4355_v30  ;;  %4421 = vmatmul.f32.gmra.mxu1 %v9189_v10  ;;  %v9212_v30 = vld [vmem:[#allocation159_spill] sm:$0xff] }
 0x510   : > { %v2388_v7 = vpop.f32.mrf.mxu2  ;;  %v3132_v52 = vpop.f32.mrf.mxu3  ;;  %3880 = vmatmul.f32.gmra.mxu0 %v9193_v27 }
 0x511   : > { %v3133_v17 = vadd.f32 %v3132_v52, %v2384_v63  ;;  %v2389_v8 = vadd.f32 %v2388_v7, %v9196_v6  ;;  %v9217_v6 = vld [vmem:[#allocation146_spill] sm:$0xff] }
 0x513   : > { %v3814_v39 = vadd.f32 %v3813_v14, %v3133_v17  ;;  %v9214_v17 = vld [vmem:[#allocation150_spill] sm:$0xff] }
 0x514   : > { %v4362_v25 = vpop.f32.mrf.mxu1 }
 0x515   : > { %v4359_v0 = vadd.f32 %v4358_v43, %v3814_v39  ;;  %2472 = vmatmul.f32.gmra.mxu2 %v9194_v11  ;;  %3233 = vmatmul.f32.gmra.mxu3 %v9195_v59  ;;  %v3821_v45 = vpop.f32.mrf.mxu0  ;;  %v9215_v39 = vand.u32 4294901760, %v9210_v35 }
 0x517   : > { %4644 = vst [vmem:[%s7035_s24 + $0x258] sm:$0xff] %v4359_v0  ;;  %4425 = vmatmul.f32.gmra.mxu1 %v9193_v27  ;;  %v9216_v0 = vld [vmem:[#allocation166_spill] sm:$0xff] }
 0x518   : > { %v2393_v23 = vpop.f32.mrf.mxu2  ;;  %v3138_v40 = vpop.f32.mrf.mxu3  ;;  %3884 = vmatmul.f32.gmra.mxu0 %v9197_v48 }
 0x519   : > { %v3139_v61 = vadd.f32 %v3138_v40, %v2389_v8  ;;  %v2394_v46 = vadd.f32 %v2393_v23, %v9200_v18  ;;  %v9221_v18 = vld [vmem:[#allocation153_spill] sm:$0xff] }
 0x51b   : > { %v3818_v49 = vadd.f32 %v3817_v37, %v3139_v61  ;;  %v9218_v61 = vld [vmem:[#allocation157_spill] sm:$0xff] }
 0x51c   : > { %v4366_v20 = vpop.f32.mrf.mxu1 }
 0x51d   : > { %v4363_v44 = vadd.f32 %v4362_v25, %v3818_v49  ;;  %2477 = vmatmul.f32.gmra.mxu2 %v9198_v47  ;;  %3239 = vmatmul.f32.gmra.mxu3 %v9199_v24  ;;  %v3825_v34 = vpop.f32.mrf.mxu0  ;;  %v9219_v49 = vand.u32 4294901760, %v9214_v17 }
 0x51f   : > { %4645 = vst [vmem:[%s7035_s24 + $0x260] sm:$0xff] %v4363_v44  ;;  %4429 = vmatmul.f32.gmra.mxu1 %v9197_v48  ;;  %v9220_v44 = vld [vmem:[#allocation173_spill] sm:$0xff] }
 0x520   : > { %v2398_v41 = vpop.f32.mrf.mxu2  ;;  %v3144_v1 = vpop.f32.mrf.mxu3  ;;  %3888 = vmatmul.f32.gmra.mxu0 %v9201_v60 }
 0x521   : > { %v3145_v4 = vadd.f32 %v3144_v1, %v2394_v46  ;;  %v2399_v32 = vadd.f32 %v2398_v41, %v9204_v42  ;;  %v9225_v42 = vld [vmem:[#allocation160_spill] sm:$0xff] }
 0x523   : > { %v3822_v29 = vadd.f32 %v3821_v45, %v3145_v4  ;;  %v9222_v4 = vld [vmem:[#allocation164_spill] sm:$0xff] }
 0x524   : > { %v4370_v22 = vpop.f32.mrf.mxu1 }
 0x525   : > { %v4367_v55 = vadd.f32 %v4366_v20, %v3822_v29  ;;  %2482 = vmatmul.f32.gmra.mxu2 %v9202_v57  ;;  %3245 = vmatmul.f32.gmra.mxu3 %v9203_v56  ;;  %v3829_v50 = vpop.f32.mrf.mxu0  ;;  %v9223_v29 = vand.u32 4294901760, %v9218_v61 }
 0x527   : > { %4646 = vst [vmem:[%s7035_s24 + $0x268] sm:$0xff] %v4367_v55  ;;  %4433 = vmatmul.f32.gmra.mxu1 %v9201_v60  ;;  %v9224_v55 = vld [vmem:[#allocation180_spill] sm:$0xff] }
 0x528   : > { %v2403_v33 = vpop.f32.mrf.mxu2  ;;  %v3150_v36 = vpop.f32.mrf.mxu3  ;;  %3892 = vmatmul.f32.gmra.mxu0 %v9205_v16 }
 0x529   : > { %v3151_v2 = vadd.f32 %v3150_v36, %v2399_v32  ;;  %v2404_v54 = vadd.f32 %v2403_v33, %v9208_v3  ;;  %v9229_v3 = vld [vmem:[#allocation167_spill] sm:$0xff] }
 0x52b   : > { %v3826_v53 = vadd.f32 %v3825_v34, %v3151_v2  ;;  %v9226_v2 = vld [vmem:[#allocation171_spill] sm:$0xff] }
 0x52c   : > { %v4374_v9 = vpop.f32.mrf.mxu1 }
 0x52d   : > { %v4371_v5 = vadd.f32 %v4370_v22, %v3826_v53  ;;  %2487 = vmatmul.f32.gmra.mxu2 %v9206_v13  ;;  %3251 = vmatmul.f32.gmra.mxu3 %v9207_v15  ;;  %v3833_v62 = vpop.f32.mrf.mxu0  ;;  %v9227_v53 = vand.u32 4294901760, %v9222_v4 }
 0x52f   : > { %4647 = vst [vmem:[%s7035_s24 + $0x270] sm:$0xff] %v4371_v5  ;;  %4437 = vmatmul.f32.gmra.mxu1 %v9205_v16  ;;  %v9228_v5 = vld [vmem:[#allocation187_spill] sm:$0xff] }
 0x530   : > { %v2408_v51 = vpop.f32.mrf.mxu2  ;;  %v3156_v14 = vpop.f32.mrf.mxu3  ;;  %3896 = vmatmul.f32.gmra.mxu0 %v9209_v12 }
 0x531   : > { %v3157_v58 = vadd.f32 %v3156_v14, %v2404_v54  ;;  %v2409_v38 = vadd.f32 %v2408_v51, %v9212_v30  ;;  %v9233_v30 = vld [vmem:[#allocation174_spill] sm:$0xff] }
 0x533   : > { %v3830_v28 = vadd.f32 %v3829_v50, %v3157_v58  ;;  %v9230_v58 = vld [vmem:[#allocation178_spill] sm:$0xff] }
 0x534   : > { %v4378_v31 = vpop.f32.mrf.mxu1 }
 0x535   : > { %v4375_v10 = vadd.f32 %v4374_v9, %v3830_v28  ;;  %2492 = vmatmul.f32.gmra.mxu2 %v9210_v35  ;;  %3257 = vmatmul.f32.gmra.mxu3 %v9211_v26  ;;  %v3837_v43 = vpop.f32.mrf.mxu0  ;;  %v9231_v28 = vand.u32 4294901760, %v9226_v2 }
 0x537   : > { %4648 = vst [vmem:[%s7035_s24 + $0x278] sm:$0xff] %v4375_v10  ;;  %4441 = vmatmul.f32.gmra.mxu1 %v9209_v12  ;;  %v9232_v10 = vld [vmem:[#allocation194_spill] sm:$0xff] }
 0x538   : > { %v2413_v19 = vpop.f32.mrf.mxu2  ;;  %v3162_v37 = vpop.f32.mrf.mxu3  ;;  %3900 = vmatmul.f32.gmra.mxu0 %v9213_v21 }
 0x539   : > { %v3163_v63 = vadd.f32 %v3162_v37, %v2409_v38  ;;  %v2414_v11 = vadd.f32 %v2413_v19, %v9216_v0  ;;  %v9237_v0 = vld [vmem:[#allocation181_spill] sm:$0xff] }
 0x53b   : > { %v3834_v7 = vadd.f32 %v3833_v62, %v3163_v63  ;;  %v9234_v63 = vld [vmem:[#allocation185_spill] sm:$0xff] }
 0x53c   : > { %v4382_v52 = vpop.f32.mrf.mxu1 }
 0x53d   : > { %v4379_v27 = vadd.f32 %v4378_v31, %v3834_v7  ;;  %2497 = vmatmul.f32.gmra.mxu2 %v9214_v17  ;;  %3263 = vmatmul.f32.gmra.mxu3 %v9215_v39  ;;  %v3841_v25 = vpop.f32.mrf.mxu0  ;;  %v9235_v7 = vand.u32 4294901760, %v9230_v58 }
 0x53f   : > { %4649 = vst [vmem:[%s7035_s24 + $0x280] sm:$0xff] %v4379_v27  ;;  %4445 = vmatmul.f32.gmra.mxu1 %v9213_v21  ;;  %v9236_v27 = vld [vmem:[#allocation201_spill] sm:$0xff] }
 0x540   : > { %v2418_v59 = vpop.f32.mrf.mxu2  ;;  %v3168_v45 = vpop.f32.mrf.mxu3  ;;  %3904 = vmatmul.f32.gmra.mxu0 %v9217_v6 }
 0x541   : > { %v3169_v8 = vadd.f32 %v3168_v45, %v2414_v11  ;;  %v2419_v47 = vadd.f32 %v2418_v59, %v9220_v44  ;;  %v9241_v44 = vld [vmem:[#allocation188_spill] sm:$0xff] }
 0x543   : > { %v3838_v23 = vadd.f32 %v3837_v43, %v3169_v8  ;;  %v9238_v8 = vld [vmem:[#allocation192_spill] sm:$0xff] }
 0x544   : > { %v4386_v40 = vpop.f32.mrf.mxu1 }
 0x545   : > { %v4383_v48 = vadd.f32 %v4382_v52, %v3838_v23  ;;  %2502 = vmatmul.f32.gmra.mxu2 %v9218_v61  ;;  %3269 = vmatmul.f32.gmra.mxu3 %v9219_v49  ;;  %v3845_v20 = vpop.f32.mrf.mxu0  ;;  %v9239_v23 = vand.u32 4294901760, %v9234_v63 }
 0x547   : > { %4650 = vst [vmem:[%s7035_s24 + $0x288] sm:$0xff] %v4383_v48  ;;  %4449 = vmatmul.f32.gmra.mxu1 %v9217_v6  ;;  %v9240_v48 = vld [vmem:[#allocation208_spill] sm:$0xff] }
 0x548   : > { %v2423_v24 = vpop.f32.mrf.mxu2  ;;  %v3174_v34 = vpop.f32.mrf.mxu3  ;;  %3908 = vmatmul.f32.gmra.mxu0 %v9221_v18 }
 0x549   : > { %v3175_v46 = vadd.f32 %v3174_v34, %v2419_v47  ;;  %v2424_v57 = vadd.f32 %v2423_v24, %v9224_v55  ;;  %v9245_v55 = vld [vmem:[#allocation195_spill] sm:$0xff] }
 0x54b   : > { %v3842_v41 = vadd.f32 %v3841_v25, %v3175_v46  ;;  %v9242_v46 = vld [vmem:[#allocation199_spill] sm:$0xff] }
 0x54c   : > { %v4390_v1 = vpop.f32.mrf.mxu1 }
 0x54d   : > { %v4387_v60 = vadd.f32 %v4386_v40, %v3842_v41  ;;  %2507 = vmatmul.f32.gmra.mxu2 %v9222_v4  ;;  %3275 = vmatmul.f32.gmra.mxu3 %v9223_v29  ;;  %v3849_v22 = vpop.f32.mrf.mxu0  ;;  %v9243_v41 = vand.u32 4294901760, %v9238_v8 }
 0x54f   : > { %4651 = vst [vmem:[%s7035_s24 + $0x290] sm:$0xff] %v4387_v60  ;;  %4453 = vmatmul.f32.gmra.mxu1 %v9221_v18  ;;  %v9244_v60 = vld [vmem:[#allocation215_spill] sm:$0xff] }
 0x550   : > { %v2428_v56 = vpop.f32.mrf.mxu2  ;;  %v3180_v50 = vpop.f32.mrf.mxu3  ;;  %3912 = vmatmul.f32.gmra.mxu0 %v9225_v42 }
 0x551   : > { %v3181_v32 = vadd.f32 %v3180_v50, %v2424_v57  ;;  %v2429_v13 = vadd.f32 %v2428_v56, %v9228_v5  ;;  %v9249_v5 = vld [vmem:[#allocation202_spill] sm:$0xff] }
 0x553   : > { %v3846_v33 = vadd.f32 %v3845_v20, %v3181_v32  ;;  %v9246_v32 = vld [vmem:[#allocation206_spill] sm:$0xff] }
 0x554   : > { %v4394_v36 = vpop.f32.mrf.mxu1 }
 0x555   : > { %v4391_v16 = vadd.f32 %v4390_v1, %v3846_v33  ;;  %2512 = vmatmul.f32.gmra.mxu2 %v9226_v2  ;;  %3281 = vmatmul.f32.gmra.mxu3 %v9227_v53  ;;  %v3853_v9 = vpop.f32.mrf.mxu0  ;;  %v9247_v33 = vand.u32 4294901760, %v9242_v46 }
 0x557   : > { %4652 = vst [vmem:[%s7035_s24 + $0x298] sm:$0xff] %v4391_v16  ;;  %4457 = vmatmul.f32.gmra.mxu1 %v9225_v42  ;;  %v9248_v16 = vld [vmem:[#allocation222_spill] sm:$0xff] }
 0x558   : > { %v2433_v15 = vpop.f32.mrf.mxu2  ;;  %v3186_v62 = vpop.f32.mrf.mxu3  ;;  %3916 = vmatmul.f32.gmra.mxu0 %v9229_v3 }
 0x559   : > { %v3187_v54 = vadd.f32 %v3186_v62, %v2429_v13  ;;  %v2434_v35 = vadd.f32 %v2433_v15, %v9232_v10  ;;  %v9253_v10 = vld [vmem:[#allocation209_spill] sm:$0xff] }
 0x55b   : > { %v3850_v51 = vadd.f32 %v3849_v22, %v3187_v54  ;;  %v9250_v54 = vld [vmem:[#allocation213_spill] sm:$0xff] }
 0x55c   : > { %v4398_v14 = vpop.f32.mrf.mxu1 }
 0x55d   : > { %v4395_v12 = vadd.f32 %v4394_v36, %v3850_v51  ;;  %2517 = vmatmul.f32.gmra.mxu2 %v9230_v58  ;;  %3287 = vmatmul.f32.gmra.mxu3 %v9231_v28  ;;  %v3857_v31 = vpop.f32.mrf.mxu0  ;;  %v9251_v51 = vand.u32 4294901760, %v9246_v32 }
 0x55f   : > { %4653 = vst [vmem:[%s7035_s24 + $0x2a0] sm:$0xff] %v4395_v12  ;;  %4461 = vmatmul.f32.gmra.mxu1 %v9229_v3  ;;  %v9252_v12 = vld [vmem:[#allocation229_spill] sm:$0xff] }
 0x560   : > { %v2438_v26 = vpop.f32.mrf.mxu2  ;;  %v3192_v43 = vpop.f32.mrf.mxu3  ;;  %3920 = vmatmul.f32.gmra.mxu0 %v9233_v30 }
 0x561   : > { %v3193_v38 = vadd.f32 %v3192_v43, %v2434_v35  ;;  %v2439_v17 = vadd.f32 %v2438_v26, %v9236_v27  ;;  %v9257_v27 = vld [vmem:[#allocation216_spill] sm:$0xff] }
 0x563   : > { %v3854_v19 = vadd.f32 %v3853_v9, %v3193_v38  ;;  %v9254_v38 = vld [vmem:[#allocation220_spill] sm:$0xff] }
 0x564   : > { %v4402_v37 = vpop.f32.mrf.mxu1 }
 0x565   : > { %v4399_v21 = vadd.f32 %v4398_v14, %v3854_v19  ;;  %2522 = vmatmul.f32.gmra.mxu2 %v9234_v63  ;;  %3293 = vmatmul.f32.gmra.mxu3 %v9235_v7  ;;  %v3861_v52 = vpop.f32.mrf.mxu0  ;;  %v9255_v19 = vand.u32 4294901760, %v9250_v54 }
 0x567   : > { %4654 = vst [vmem:[%s7035_s24 + $0x2a8] sm:$0xff] %v4399_v21  ;;  %4465 = vmatmul.f32.gmra.mxu1 %v9233_v30  ;;  %v9256_v21 = vld [vmem:[#allocation236_spill] sm:$0xff] }
 0x568   : > { %v2443_v39 = vpop.f32.mrf.mxu2  ;;  %v3198_v25 = vpop.f32.mrf.mxu3  ;;  %3924 = vmatmul.f32.gmra.mxu0 %v9237_v0 }
 0x569   : > { %v3199_v11 = vadd.f32 %v3198_v25, %v2439_v17  ;;  %v2444_v61 = vadd.f32 %v2443_v39, %v9240_v48  ;;  %v9261_v48 = vld [vmem:[#allocation223_spill] sm:$0xff] }
 0x56b   : > { %v3858_v59 = vadd.f32 %v3857_v31, %v3199_v11  ;;  %v9258_v11 = vld [vmem:[#allocation227_spill] sm:$0xff] }
 0x56c   : > { %v4406_v45 = vpop.f32.mrf.mxu1 }
 0x56d   : > { %v4403_v6 = vadd.f32 %v4402_v37, %v3858_v59  ;;  %2527 = vmatmul.f32.gmra.mxu2 %v9238_v8  ;;  %3299 = vmatmul.f32.gmra.mxu3 %v9239_v23  ;;  %v3865_v40 = vpop.f32.mrf.mxu0  ;;  %v9259_v59 = vand.u32 4294901760, %v9254_v38 }
 0x56f   : > { %4655 = vst [vmem:[%s7035_s24 + $0x2b0] sm:$0xff] %v4403_v6  ;;  %4469 = vmatmul.f32.gmra.mxu1 %v9237_v0  ;;  %v9260_v6 = vld [vmem:[#allocation243_spill] sm:$0xff] }
 0x570   : > { %v2448_v49 = vpop.f32.mrf.mxu2  ;;  %v3204_v20 = vpop.f32.mrf.mxu3  ;;  %3928 = vmatmul.f32.gmra.mxu0 %v9241_v44 }
 0x571   : > { %v3205_v47 = vadd.f32 %v3204_v20, %v2444_v61  ;;  %v2449_v4 = vadd.f32 %v2448_v49, %v9244_v60  ;;  %v9265_v60 = vld [vmem:[#allocation230_spill] sm:$0xff] }
 0x573   : > { %v3862_v24 = vadd.f32 %v3861_v52, %v3205_v47  ;;  %v9262_v47 = vld [vmem:[#allocation234_spill] sm:$0xff] }
 0x574   : > { %v4410_v34 = vpop.f32.mrf.mxu1 }
 0x575   : > { %v4407_v18 = vadd.f32 %v4406_v45, %v3862_v24  ;;  %2532 = vmatmul.f32.gmra.mxu2 %v9242_v46  ;;  %3305 = vmatmul.f32.gmra.mxu3 %v9243_v41  ;;  %v3869_v1 = vpop.f32.mrf.mxu0  ;;  %v9263_v24 = vand.u32 4294901760, %v9258_v11 }
 0x577   : > { %4656 = vst [vmem:[%s7035_s24 + $0x2b8] sm:$0xff] %v4407_v18  ;;  %4473 = vmatmul.f32.gmra.mxu1 %v9241_v44  ;;  %v9264_v18 = vld [vmem:[#allocation250_spill] sm:$0xff] }
 0x578   : > { %v2453_v29 = vpop.f32.mrf.mxu2  ;;  %v3210_v22 = vpop.f32.mrf.mxu3  ;;  %3932 = vmatmul.f32.gmra.mxu0 %v9245_v55 }
 0x579   : > { %v3211_v57 = vadd.f32 %v3210_v22, %v2449_v4  ;;  %v2454_v2 = vadd.f32 %v2453_v29, %v9248_v16  ;;  %v9269_v16 = vld [vmem:[#allocation237_spill] sm:$0xff] }
 0x57b   : > { %v3866_v56 = vadd.f32 %v3865_v40, %v3211_v57  ;;  %v9266_v57 = vld [vmem:[#allocation241_spill] sm:$0xff] }
 0x57c   : > { %v4414_v50 = vpop.f32.mrf.mxu1 }
 0x57d   : > { %v4411_v42 = vadd.f32 %v4410_v34, %v3866_v56  ;;  %2537 = vmatmul.f32.gmra.mxu2 %v9246_v32  ;;  %3311 = vmatmul.f32.gmra.mxu3 %v9247_v33  ;;  %v3873_v36 = vpop.f32.mrf.mxu0  ;;  %v9267_v56 = vand.u32 4294901760, %v9262_v47 }
 0x57f   : > { %4657 = vst [vmem:[%s7035_s24 + $0x2c0] sm:$0xff] %v4411_v42  ;;  %4477 = vmatmul.f32.gmra.mxu1 %v9245_v55  ;;  %v9268_v42 = vld [vmem:[#allocation257_spill] sm:$0xff] }
 0x580   : > { %v2458_v53 = vpop.f32.mrf.mxu2  ;;  %v3216_v9 = vpop.f32.mrf.mxu3  ;;  %3936 = vmatmul.f32.gmra.mxu0 %v9249_v5 }
 0x581   : > { %v3217_v13 = vadd.f32 %v3216_v9, %v2454_v2  ;;  %v2459_v58 = vadd.f32 %v2458_v53, %v9252_v12  ;;  %v9273_v12 = vld [vmem:[#allocation244_spill] sm:$0xff] }
 0x583   : > { %v3870_v15 = vadd.f32 %v3869_v1, %v3217_v13  ;;  %v9270_v13 = vld [vmem:[#allocation248_spill] sm:$0xff] }
 0x584   : > { %v4418_v62 = vpop.f32.mrf.mxu1 }
 0x585   : > { %v4415_v3 = vadd.f32 %v4414_v50, %v3870_v15  ;;  %2542 = vmatmul.f32.gmra.mxu2 %v9250_v54  ;;  %3317 = vmatmul.f32.gmra.mxu3 %v9251_v51  ;;  %v3877_v14 = vpop.f32.mrf.mxu0  ;;  %v9271_v15 = vand.u32 4294901760, %v9266_v57 }
 0x587   : > { %4658 = vst [vmem:[%s7035_s24 + $0x2c8] sm:$0xff] %v4415_v3  ;;  %4481 = vmatmul.f32.gmra.mxu1 %v9249_v5  ;;  %v9272_v3 = vld [vmem:[#allocation264_spill] sm:$0xff] }
 0x588   : > { %v2463_v28 = vpop.f32.mrf.mxu2  ;;  %v3222_v31 = vpop.f32.mrf.mxu3  ;;  %3940 = vmatmul.f32.gmra.mxu0 %v9253_v10 }
 0x589   : > { %v3223_v35 = vadd.f32 %v3222_v31, %v2459_v58  ;;  %v2464_v63 = vadd.f32 %v2463_v28, %v9256_v21  ;;  %v9277_v21 = vld [vmem:[#allocation251_spill] sm:$0xff] }
 0x58b   : > { %v3874_v26 = vadd.f32 %v3873_v36, %v3223_v35  ;;  %v9274_v35 = vld [vmem:[#allocation255_spill] sm:$0xff] }
 0x58c   : > { %v4422_v43 = vpop.f32.mrf.mxu1 }
 0x58d   : > { %v4419_v30 = vadd.f32 %v4418_v62, %v3874_v26  ;;  %2547 = vmatmul.f32.gmra.mxu2 %v9254_v38  ;;  %3323 = vmatmul.f32.gmra.mxu3 %v9255_v19  ;;  %v3881_v37 = vpop.f32.mrf.mxu0  ;;  %v9275_v26 = vand.u32 4294901760, %v9270_v13 }
 0x58f   : > { %4659 = vst [vmem:[%s7035_s24 + $0x2d0] sm:$0xff] %v4419_v30  ;;  %4485 = vmatmul.f32.gmra.mxu1 %v9253_v10  ;;  %v9276_v30 = vld [vmem:[#allocation271_spill] sm:$0xff] }
 0x590   : > { %v2468_v7 = vpop.f32.mrf.mxu2  ;;  %v3228_v52 = vpop.f32.mrf.mxu3  ;;  %3944 = vmatmul.f32.gmra.mxu0 %v9257_v27 }
 0x591   : > { %v3229_v17 = vadd.f32 %v3228_v52, %v2464_v63  ;;  %v2469_v8 = vadd.f32 %v2468_v7, %v9260_v6  ;;  %v9281_v6 = vld [vmem:[#allocation258_spill] sm:$0xff] }
 0x593   : > { %v3878_v39 = vadd.f32 %v3877_v14, %v3229_v17  ;;  %v9278_v17 = vld [vmem:[#allocation262_spill] sm:$0xff] }
 0x594   : > { %v4426_v25 = vpop.f32.mrf.mxu1 }
 0x595   : > { %v4423_v0 = vadd.f32 %v4422_v43, %v3878_v39  ;;  %2552 = vmatmul.f32.gmra.mxu2 %v9258_v11  ;;  %3329 = vmatmul.f32.gmra.mxu3 %v9259_v59  ;;  %v3885_v45 = vpop.f32.mrf.mxu0  ;;  %v9279_v39 = vand.u32 4294901760, %v9274_v35 }
 0x597   : > { %4660 = vst [vmem:[%s7035_s24 + $0x2d8] sm:$0xff] %v4423_v0  ;;  %4489 = vmatmul.f32.gmra.mxu1 %v9257_v27  ;;  %v9280_v0 = vld [vmem:[#allocation278_spill] sm:$0xff] }
 0x598   : > { %v2473_v23 = vpop.f32.mrf.mxu2  ;;  %v3234_v40 = vpop.f32.mrf.mxu3  ;;  %3948 = vmatmul.f32.gmra.mxu0 %v9261_v48 }
 0x599   : > { %v3235_v61 = vadd.f32 %v3234_v40, %v2469_v8  ;;  %v2474_v46 = vadd.f32 %v2473_v23, %v9264_v18  ;;  %v9285_v18 = vld [vmem:[#allocation265_spill] sm:$0xff] }
 0x59b   : > { %v3882_v49 = vadd.f32 %v3881_v37, %v3235_v61  ;;  %v9282_v61 = vld [vmem:[#allocation269_spill] sm:$0xff] }
 0x59c   : > { %v4430_v20 = vpop.f32.mrf.mxu1 }
 0x59d   : > { %v4427_v44 = vadd.f32 %v4426_v25, %v3882_v49  ;;  %2557 = vmatmul.f32.gmra.mxu2 %v9262_v47  ;;  %3335 = vmatmul.f32.gmra.mxu3 %v9263_v24  ;;  %v3889_v34 = vpop.f32.mrf.mxu0  ;;  %v9283_v49 = vand.u32 4294901760, %v9278_v17 }
 0x59f   : > { %4661 = vst [vmem:[%s7035_s24 + $0x2e0] sm:$0xff] %v4427_v44  ;;  %4493 = vmatmul.f32.gmra.mxu1 %v9261_v48  ;;  %v9284_v44 = vld [vmem:[#allocation285_spill] sm:$0xff] }
 0x5a0   : > { %v2478_v41 = vpop.f32.mrf.mxu2  ;;  %v3240_v1 = vpop.f32.mrf.mxu3  ;;  %3952 = vmatmul.f32.gmra.mxu0 %v9265_v60 }
 0x5a1   : > { %v3241_v4 = vadd.f32 %v3240_v1, %v2474_v46  ;;  %v2479_v32 = vadd.f32 %v2478_v41, %v9268_v42  ;;  %v9289_v42 = vld [vmem:[#allocation272_spill] sm:$0xff] }
 0x5a3   : > { %v3886_v29 = vadd.f32 %v3885_v45, %v3241_v4  ;;  %v9286_v4 = vld [vmem:[#allocation276_spill] sm:$0xff] }
 0x5a4   : > { %v4434_v22 = vpop.f32.mrf.mxu1 }
 0x5a5   : > { %v4431_v55 = vadd.f32 %v4430_v20, %v3886_v29  ;;  %2562 = vmatmul.f32.gmra.mxu2 %v9266_v57  ;;  %3341 = vmatmul.f32.gmra.mxu3 %v9267_v56  ;;  %v3893_v50 = vpop.f32.mrf.mxu0  ;;  %v9287_v29 = vand.u32 4294901760, %v9282_v61 }
 0x5a7   : > { %4662 = vst [vmem:[%s7035_s24 + $0x2e8] sm:$0xff] %v4431_v55  ;;  %4497 = vmatmul.f32.gmra.mxu1 %v9265_v60  ;;  %v9288_v55 = vld [vmem:[#allocation292_spill] sm:$0xff] }
 0x5a8   : > { %v2483_v33 = vpop.f32.mrf.mxu2  ;;  %v3246_v36 = vpop.f32.mrf.mxu3  ;;  %3956 = vmatmul.f32.gmra.mxu0 %v9269_v16 }
 0x5a9   : > { %v3247_v2 = vadd.f32 %v3246_v36, %v2479_v32  ;;  %v2484_v54 = vadd.f32 %v2483_v33, %v9272_v3  ;;  %v9293_v3 = vld [vmem:[#allocation279_spill] sm:$0xff] }
 0x5ab   : > { %v3890_v53 = vadd.f32 %v3889_v34, %v3247_v2  ;;  %v9290_v2 = vld [vmem:[#allocation283_spill] sm:$0xff] }
 0x5ac   : > { %v4438_v9 = vpop.f32.mrf.mxu1 }
 0x5ad   : > { %v4435_v5 = vadd.f32 %v4434_v22, %v3890_v53  ;;  %2567 = vmatmul.f32.gmra.mxu2 %v9270_v13  ;;  %3347 = vmatmul.f32.gmra.mxu3 %v9271_v15  ;;  %v3897_v62 = vpop.f32.mrf.mxu0  ;;  %v9291_v53 = vand.u32 4294901760, %v9286_v4 }
 0x5af   : > { %4663 = vst [vmem:[%s7035_s24 + $0x2f0] sm:$0xff] %v4435_v5  ;;  %4501 = vmatmul.f32.gmra.mxu1 %v9269_v16  ;;  %v9292_v5 = vld [vmem:[#allocation299_spill] sm:$0xff] }
 0x5b0   : > { %v2488_v51 = vpop.f32.mrf.mxu2  ;;  %v3252_v14 = vpop.f32.mrf.mxu3  ;;  %3960 = vmatmul.f32.gmra.mxu0 %v9273_v12 }
 0x5b1   : > { %v3253_v58 = vadd.f32 %v3252_v14, %v2484_v54  ;;  %v2489_v38 = vadd.f32 %v2488_v51, %v9276_v30  ;;  %v9297_v30 = vld [vmem:[#allocation286_spill] sm:$0xff] }
 0x5b3   : > { %v3894_v28 = vadd.f32 %v3893_v50, %v3253_v58  ;;  %v9294_v58 = vld [vmem:[#allocation290_spill] sm:$0xff] }
 0x5b4   : > { %v4442_v31 = vpop.f32.mrf.mxu1 }
 0x5b5   : > { %v4439_v10 = vadd.f32 %v4438_v9, %v3894_v28  ;;  %2572 = vmatmul.f32.gmra.mxu2 %v9274_v35  ;;  %3353 = vmatmul.f32.gmra.mxu3 %v9275_v26  ;;  %v3901_v43 = vpop.f32.mrf.mxu0  ;;  %v9295_v28 = vand.u32 4294901760, %v9290_v2 }
 0x5b7   : > { %4664 = vst [vmem:[%s7035_s24 + $0x2f8] sm:$0xff] %v4439_v10  ;;  %4505 = vmatmul.f32.gmra.mxu1 %v9273_v12  ;;  %v9296_v10 = vld [vmem:[#allocation306_spill] sm:$0xff] }
 0x5b8   : > { %v2493_v19 = vpop.f32.mrf.mxu2  ;;  %v3258_v37 = vpop.f32.mrf.mxu3  ;;  %3964 = vmatmul.f32.gmra.mxu0 %v9277_v21 }
 0x5b9   : > { %v3259_v63 = vadd.f32 %v3258_v37, %v2489_v38  ;;  %v2494_v11 = vadd.f32 %v2493_v19, %v9280_v0  ;;  %v9301_v0 = vld [vmem:[#allocation293_spill] sm:$0xff] }
 0x5bb   : > { %v3898_v7 = vadd.f32 %v3897_v62, %v3259_v63  ;;  %v9298_v63 = vld [vmem:[#allocation297_spill] sm:$0xff] }
 0x5bc   : > { %v4446_v52 = vpop.f32.mrf.mxu1 }
 0x5bd   : > { %v4443_v27 = vadd.f32 %v4442_v31, %v3898_v7  ;;  %2577 = vmatmul.f32.gmra.mxu2 %v9278_v17  ;;  %3359 = vmatmul.f32.gmra.mxu3 %v9279_v39  ;;  %v3905_v25 = vpop.f32.mrf.mxu0  ;;  %v9299_v7 = vand.u32 4294901760, %v9294_v58 }
 0x5bf   : > { %4665 = vst [vmem:[%s7035_s24 + $0x300] sm:$0xff] %v4443_v27  ;;  %4509 = vmatmul.f32.gmra.mxu1 %v9277_v21  ;;  %v9300_v27 = vld [vmem:[#allocation313_spill] sm:$0xff] }
 0x5c0   : > { %v2498_v59 = vpop.f32.mrf.mxu2  ;;  %v3264_v45 = vpop.f32.mrf.mxu3  ;;  %3968 = vmatmul.f32.gmra.mxu0 %v9281_v6 }
 0x5c1   : > { %v3265_v8 = vadd.f32 %v3264_v45, %v2494_v11  ;;  %v2499_v47 = vadd.f32 %v2498_v59, %v9284_v44  ;;  %v9305_v44 = vld [vmem:[#allocation300_spill] sm:$0xff] }
 0x5c3   : > { %v3902_v23 = vadd.f32 %v3901_v43, %v3265_v8  ;;  %v9302_v8 = vld [vmem:[#allocation304_spill] sm:$0xff] }
 0x5c4   : > { %v4450_v40 = vpop.f32.mrf.mxu1 }
 0x5c5   : > { %v4447_v48 = vadd.f32 %v4446_v52, %v3902_v23  ;;  %2582 = vmatmul.f32.gmra.mxu2 %v9282_v61  ;;  %3365 = vmatmul.f32.gmra.mxu3 %v9283_v49  ;;  %v3909_v20 = vpop.f32.mrf.mxu0  ;;  %v9303_v23 = vand.u32 4294901760, %v9298_v63 }
 0x5c7   : > { %4666 = vst [vmem:[%s7035_s24 + $0x308] sm:$0xff] %v4447_v48  ;;  %4513 = vmatmul.f32.gmra.mxu1 %v9281_v6  ;;  %v9304_v48 = vld [vmem:[#allocation320_spill] sm:$0xff] }
 0x5c8   : > { %v2503_v24 = vpop.f32.mrf.mxu2  ;;  %v3270_v34 = vpop.f32.mrf.mxu3  ;;  %3972 = vmatmul.f32.gmra.mxu0 %v9285_v18 }
 0x5c9   : > { %v3271_v46 = vadd.f32 %v3270_v34, %v2499_v47  ;;  %v2504_v57 = vadd.f32 %v2503_v24, %v9288_v55  ;;  %v9309_v55 = vld [vmem:[#allocation307_spill] sm:$0xff] }
 0x5cb   : > { %v3906_v41 = vadd.f32 %v3905_v25, %v3271_v46  ;;  %v9306_v46 = vld [vmem:[#allocation311_spill] sm:$0xff] }
 0x5cc   : > { %v4454_v1 = vpop.f32.mrf.mxu1 }
 0x5cd   : > { %v4451_v60 = vadd.f32 %v4450_v40, %v3906_v41  ;;  %2587 = vmatmul.f32.gmra.mxu2 %v9286_v4  ;;  %3371 = vmatmul.f32.gmra.mxu3 %v9287_v29  ;;  %v3913_v22 = vpop.f32.mrf.mxu0  ;;  %v9307_v41 = vand.u32 4294901760, %v9302_v8 }
 0x5cf   : > { %4667 = vst [vmem:[%s7035_s24 + $0x310] sm:$0xff] %v4451_v60  ;;  %4517 = vmatmul.f32.gmra.mxu1 %v9285_v18  ;;  %v9308_v60 = vld [vmem:[#allocation327_spill] sm:$0xff] }
 0x5d0   : > { %v2508_v56 = vpop.f32.mrf.mxu2  ;;  %v3276_v50 = vpop.f32.mrf.mxu3  ;;  %3976 = vmatmul.f32.gmra.mxu0 %v9289_v42 }
 0x5d1   : > { %v3277_v32 = vadd.f32 %v3276_v50, %v2504_v57  ;;  %v2509_v13 = vadd.f32 %v2508_v56, %v9292_v5  ;;  %v9313_v5 = vld [vmem:[#allocation314_spill] sm:$0xff] }
 0x5d3   : > { %v3910_v33 = vadd.f32 %v3909_v20, %v3277_v32  ;;  %v9310_v32 = vld [vmem:[#allocation318_spill] sm:$0xff] }
 0x5d4   : > { %v4458_v36 = vpop.f32.mrf.mxu1 }
 0x5d5   : > { %v4455_v16 = vadd.f32 %v4454_v1, %v3910_v33  ;;  %2592 = vmatmul.f32.gmra.mxu2 %v9290_v2  ;;  %3377 = vmatmul.f32.gmra.mxu3 %v9291_v53  ;;  %v3917_v9 = vpop.f32.mrf.mxu0  ;;  %v9311_v33 = vand.u32 4294901760, %v9306_v46 }
 0x5d7   : > { %4668 = vst [vmem:[%s7035_s24 + $0x318] sm:$0xff] %v4455_v16  ;;  %4521 = vmatmul.f32.gmra.mxu1 %v9289_v42  ;;  %v9312_v16 = vld [vmem:[#allocation333_spill] sm:$0xff] }
 0x5d8   : > { %v2513_v15 = vpop.f32.mrf.mxu2  ;;  %v3282_v62 = vpop.f32.mrf.mxu3  ;;  %3980 = vmatmul.f32.gmra.mxu0 %v9293_v3 }
 0x5d9   : > { %v3283_v54 = vadd.f32 %v3282_v62, %v2509_v13  ;;  %v2514_v35 = vadd.f32 %v2513_v15, %v9296_v10  ;;  %v9317_v10 = vld [vmem:[#allocation321_spill] sm:$0xff] }
 0x5db   : > { %v3914_v51 = vadd.f32 %v3913_v22, %v3283_v54  ;;  %v9314_v54 = vld [vmem:[#allocation325_spill] sm:$0xff] }
 0x5dc   : > { %v4462_v14 = vpop.f32.mrf.mxu1 }
 0x5dd   : > { %v4459_v12 = vadd.f32 %v4458_v36, %v3914_v51  ;;  %2597 = vmatmul.f32.gmra.mxu2 %v9294_v58  ;;  %3383 = vmatmul.f32.gmra.mxu3 %v9295_v28  ;;  %v3921_v31 = vpop.f32.mrf.mxu0  ;;  %v9315_v51 = vand.u32 4294901760, %v9310_v32 }
 0x5df   : > { %4669 = vst [vmem:[%s7035_s24 + $0x320] sm:$0xff] %v4459_v12  ;;  %4525 = vmatmul.f32.gmra.mxu1 %v9293_v3  ;;  %v9316_v12 = vld [vmem:[#allocation338_spill] sm:$0xff] }
 0x5e0   : > { %v2518_v26 = vpop.f32.mrf.mxu2  ;;  %v3288_v43 = vpop.f32.mrf.mxu3  ;;  %3984 = vmatmul.f32.gmra.mxu0 %v9297_v30 }
 0x5e1   : > { %v3289_v38 = vadd.f32 %v3288_v43, %v2514_v35  ;;  %v2519_v17 = vadd.f32 %v2518_v26, %v9300_v27  ;;  %v9321_v27 = vld [vmem:[#allocation328_spill] sm:$0xff] }
 0x5e3   : > { %v3918_v19 = vadd.f32 %v3917_v9, %v3289_v38  ;;  %v9318_v38 = vld [vmem:[#allocation331_spill] sm:$0xff] }
 0x5e4   : > { %v4466_v37 = vpop.f32.mrf.mxu1 }
 0x5e5   : > { %v4463_v21 = vadd.f32 %v4462_v14, %v3918_v19  ;;  %2602 = vmatmul.f32.gmra.mxu2 %v9298_v63  ;;  %3389 = vmatmul.f32.gmra.mxu3 %v9299_v7  ;;  %v3925_v52 = vpop.f32.mrf.mxu0  ;;  %v9319_v19 = vand.u32 4294901760, %v9314_v54 }
 0x5e7   : > { %4670 = vst [vmem:[%s7035_s24 + $0x328] sm:$0xff] %v4463_v21  ;;  %4529 = vmatmul.f32.gmra.mxu1 %v9297_v30  ;;  %v9320_v21 = vld [vmem:[#allocation343_spill] sm:$0xff] }
 0x5e8   : > { %v2523_v39 = vpop.f32.mrf.mxu2  ;;  %v3294_v25 = vpop.f32.mrf.mxu3  ;;  %3988 = vmatmul.f32.gmra.mxu0 %v9301_v0 }
 0x5e9   : > { %v3295_v11 = vadd.f32 %v3294_v25, %v2519_v17  ;;  %v2524_v61 = vadd.f32 %v2523_v39, %v9304_v48  ;;  %v9325_v48 = vld [vmem:[#allocation334_spill] sm:$0xff] }
 0x5eb   : > { %v3922_v59 = vadd.f32 %v3921_v31, %v3295_v11  ;;  %v9322_v11 = vld [vmem:[#allocation337_spill] sm:$0xff] }
 0x5ec   : > { %v4470_v45 = vpop.f32.mrf.mxu1 }
 0x5ed   : > { %v4467_v6 = vadd.f32 %v4466_v37, %v3922_v59  ;;  %2607 = vmatmul.f32.gmra.mxu2 %v9302_v8  ;;  %3395 = vmatmul.f32.gmra.mxu3 %v9303_v23  ;;  %v3929_v40 = vpop.f32.mrf.mxu0  ;;  %v9323_v59 = vand.u32 4294901760, %v9318_v38 }
 0x5ef   : > { %4671 = vst [vmem:[%s7035_s24 + $0x330] sm:$0xff] %v4467_v6  ;;  %4533 = vmatmul.f32.gmra.mxu1 %v9301_v0  ;;  %v9324_v6 = vld [vmem:[#allocation347_spill] sm:$0xff] }
 0x5f0   : > { %v2528_v49 = vpop.f32.mrf.mxu2  ;;  %v3300_v20 = vpop.f32.mrf.mxu3  ;;  %3992 = vmatmul.f32.gmra.mxu0 %v9305_v44 }
 0x5f1   : > { %v3301_v47 = vadd.f32 %v3300_v20, %v2524_v61  ;;  %v2529_v4 = vadd.f32 %v2528_v49, %v9308_v60  ;;  %v9329_v60 = vld [vmem:[#allocation339_spill] sm:$0xff] }
 0x5f3   : > { %v3926_v24 = vadd.f32 %v3925_v52, %v3301_v47  ;;  %v9326_v47 = vld [vmem:[#allocation342_spill] sm:$0xff] }
 0x5f4   : > { %v4474_v34 = vpop.f32.mrf.mxu1 }
 0x5f5   : > { %v4471_v18 = vadd.f32 %v4470_v45, %v3926_v24  ;;  %2612 = vmatmul.f32.gmra.mxu2 %v9306_v46  ;;  %3401 = vmatmul.f32.gmra.mxu3 %v9307_v41  ;;  %v3933_v1 = vpop.f32.mrf.mxu0  ;;  %v9327_v24 = vand.u32 4294901760, %v9322_v11 }
 0x5f7   : > { %4672 = vst [vmem:[%s7035_s24 + $0x338] sm:$0xff] %v4471_v18  ;;  %4537 = vmatmul.f32.gmra.mxu1 %v9305_v44  ;;  %v9328_v18 = vld [vmem:[#allocation349_spill] sm:$0xff] }
 0x5f8   : > { %v2533_v29 = vpop.f32.mrf.mxu2  ;;  %v3306_v22 = vpop.f32.mrf.mxu3  ;;  %3996 = vmatmul.f32.gmra.mxu0 %v9309_v55 }
 0x5f9   : > { %v3307_v57 = vadd.f32 %v3306_v22, %v2529_v4  ;;  %v2534_v2 = vadd.f32 %v2533_v29, %v9312_v16  ;;  %v9333_v16 = vld [vmem:[#allocation344_spill] sm:$0xff] }
 0x5fb   : > { %v3930_v56 = vadd.f32 %v3929_v40, %v3307_v57  ;;  %v9330_v57 = vld [vmem:[#allocation346_spill] sm:$0xff] }
 0x5fc   : > { %v4478_v50 = vpop.f32.mrf.mxu1 }
 0x5fd   : > { %v4475_v42 = vadd.f32 %v4474_v34, %v3930_v56  ;;  %2617 = vmatmul.f32.gmra.mxu2 %v9310_v32  ;;  %3407 = vmatmul.f32.gmra.mxu3 %v9311_v33  ;;  %v3937_v36 = vpop.f32.mrf.mxu0  ;;  %v9331_v56 = vand.u32 4294901760, %v9326_v47 }
 0x5ff   : > { %4673 = vst [vmem:[%s7035_s24 + $0x340] sm:$0xff] %v4475_v42  ;;  %4541 = vmatmul.f32.gmra.mxu1 %v9309_v55  ;;  %v9332_v42 = vld [vmem:[#allocation350_spill] sm:$0xff] }
 0x600   : > { %v2538_v53 = vpop.f32.mrf.mxu2  ;;  %v3312_v9 = vpop.f32.mrf.mxu3  ;;  %4000 = vmatmul.f32.gmra.mxu0 %v9313_v5 }
 0x601   : > { %v3313_v13 = vadd.f32 %v3312_v9, %v2534_v2  ;;  %v2539_v58 = vadd.f32 %v2538_v53, %v9316_v12 }
 0x603   : > { %v3934_v15 = vadd.f32 %v3933_v1, %v3313_v13  ;;  %v9334_v13 = vand.u32 4294901760, %v9330_v57 }
 0x604   : > { %v4482_v62 = vpop.f32.mrf.mxu1 }
 0x605   : > { %v4479_v3 = vadd.f32 %v4478_v50, %v3934_v15  ;;  %2622 = vmatmul.f32.gmra.mxu2 %v9314_v54  ;;  %3413 = vmatmul.f32.gmra.mxu3 %v9315_v51  ;;  %v3941_v14 = vpop.f32.mrf.mxu0 }
 0x607   : > { %4674 = vst [vmem:[%s7035_s24 + $0x348] sm:$0xff] %v4479_v3  ;;  %4545 = vmatmul.f32.gmra.mxu1 %v9313_v5 }
 0x608   : > { %v2543_v28 = vpop.f32.mrf.mxu2  ;;  %v3318_v31 = vpop.f32.mrf.mxu3  ;;  %4004 = vmatmul.f32.gmra.mxu0 %v9317_v10 }
 0x609   : > { %v3319_v35 = vadd.f32 %v3318_v31, %v2539_v58  ;;  %v2544_v63 = vadd.f32 %v2543_v28, %v9320_v21 }
 0x60b   : > { %v3938_v26 = vadd.f32 %v3937_v36, %v3319_v35 }
 0x60c   : > { %v4486_v43 = vpop.f32.mrf.mxu1 }
 0x60d   : > { %v4483_v30 = vadd.f32 %v4482_v62, %v3938_v26  ;;  %2627 = vmatmul.f32.gmra.mxu2 %v9318_v38  ;;  %3419 = vmatmul.f32.gmra.mxu3 %v9319_v19  ;;  %v3945_v37 = vpop.f32.mrf.mxu0  ;;  %v9335_v62 = vld [vmem:[#allocation351_spill] sm:$0xff] }
 0x60f   : > { %4675 = vst [vmem:[%s7035_s24 + $0x350] sm:$0xff] %v4483_v30  ;;  %4549 = vmatmul.f32.gmra.mxu1 %v9317_v10  ;;  %v9336_v10 = vld [vmem:[#allocation352_spill] sm:$0xff] }
 0x610   : > { %v2548_v7 = vpop.f32.mrf.mxu2  ;;  %v3324_v52 = vpop.f32.mrf.mxu3  ;;  %4008 = vmatmul.f32.gmra.mxu0 %v9321_v27 }
 0x611   : > { %v3325_v17 = vadd.f32 %v3324_v52, %v2544_v63  ;;  %v2549_v8 = vadd.f32 %v2548_v7, %v9324_v6  ;;  %v9337_v63 = vld [vmem:[#allocation353_spill] sm:$0xff] }
 0x613   : > { %v3942_v39 = vadd.f32 %v3941_v14, %v3325_v17 }
 0x614   : > { %v4490_v25 = vpop.f32.mrf.mxu1 }
 0x615   : > { %v4487_v0 = vadd.f32 %v4486_v43, %v3942_v39  ;;  %2632 = vmatmul.f32.gmra.mxu2 %v9322_v11  ;;  %3425 = vmatmul.f32.gmra.mxu3 %v9323_v59  ;;  %v3949_v45 = vpop.f32.mrf.mxu0  ;;  %v9338_v59 = vld [vmem:[#allocation354_spill] sm:$0xff] }
 0x617   : > { %4676 = vst [vmem:[%s7035_s24 + $0x358] sm:$0xff] %v4487_v0  ;;  %4553 = vmatmul.f32.gmra.mxu1 %v9321_v27 }
 0x618   : > { %v2553_v23 = vpop.f32.mrf.mxu2  ;;  %v3330_v40 = vpop.f32.mrf.mxu3  ;;  %4012 = vmatmul.f32.gmra.mxu0 %v9325_v48 }
 0x619   : > { %v3331_v61 = vadd.f32 %v3330_v40, %v2549_v8  ;;  %v2554_v46 = vadd.f32 %v2553_v23, %v9328_v18 }
 0x61b   : > { %v3946_v49 = vadd.f32 %v3945_v37, %v3331_v61 }
 0x61c   : > { %v4494_v20 = vpop.f32.mrf.mxu1 }
 0x61d   : > { %v4491_v44 = vadd.f32 %v4490_v25, %v3946_v49  ;;  %2637 = vmatmul.f32.gmra.mxu2 %v9326_v47  ;;  %3431 = vmatmul.f32.gmra.mxu3 %v9327_v24  ;;  %v3953_v34 = vpop.f32.mrf.mxu0 }
 0x61f   : > { %4677 = vst [vmem:[%s7035_s24 + $0x360] sm:$0xff] %v4491_v44  ;;  %4557 = vmatmul.f32.gmra.mxu1 %v9325_v48 }
 0x620   : > { %v2558_v41 = vpop.f32.mrf.mxu2  ;;  %v3336_v1 = vpop.f32.mrf.mxu3  ;;  %4016 = vmatmul.f32.gmra.mxu0 %v9329_v60 }
 0x621   : > { %v3337_v4 = vadd.f32 %v3336_v1, %v2554_v46  ;;  %v2559_v32 = vadd.f32 %v2558_v41, %v9332_v42 }
 0x623   : > { %v3950_v29 = vadd.f32 %v3949_v45, %v3337_v4 }
 0x624   : > { %v4498_v22 = vpop.f32.mrf.mxu1 }
 0x625   : > { %v4495_v55 = vadd.f32 %v4494_v20, %v3950_v29  ;;  %2642 = vmatmul.f32.gmra.mxu2 %v9330_v57  ;;  %3437 = vmatmul.f32.gmra.mxu3 %v9331_v56  ;;  %v3957_v50 = vpop.f32.mrf.mxu0  ;;  %v9339_v20 = vld [vmem:[#allocation355_spill] sm:$0xff] }
 0x627   : > { %4678 = vst [vmem:[%s7035_s24 + $0x368] sm:$0xff] %v4495_v55  ;;  %4561 = vmatmul.f32.gmra.mxu1 %v9329_v60  ;;  %v9340_v60 = vld [vmem:[#allocation356_spill] sm:$0xff] }
 0x628   : > { %v2563_v33 = vpop.f32.mrf.mxu2  ;;  %v3342_v36 = vpop.f32.mrf.mxu3  ;;  %4020 = vmatmul.f32.gmra.mxu0 %v9333_v16 }
 0x629   : > { %v3343_v2 = vadd.f32 %v3342_v36, %v2559_v32  ;;  %v2564_v3 = vadd.f32 %v2563_v33, %v9335_v62  ;;  %v9341_v32 = vld [vmem:[#allocation357_spill] sm:$0xff] }
 0x62b   : > { %v3954_v53 = vadd.f32 %v3953_v34, %v3343_v2 }
 0x62c   : > { %v4502_v9 = vpop.f32.mrf.mxu1 }
 0x62d   : > { %v4499_v5 = vadd.f32 %v4498_v22, %v3954_v53  ;;  %3443 = vmatmul.f32.gmra.mxu3 %v9334_v13  ;;  %v3961_v15 = vpop.f32.mrf.mxu0 }
 0x62f   : > { %4679 = vst [vmem:[%s7035_s24 + $0x370] sm:$0xff] %v4499_v5  ;;  %4565 = vmatmul.f32.gmra.mxu1 %v9333_v16 }
 0x630   : > { %v2568_v54 = vpop.f32.mrf.mxu2  ;;  %v3348_v51 = vpop.f32.mrf.mxu3 }
 0x631   : > { %v3349_v14 = vadd.f32 %v3348_v51, %v2564_v3  ;;  %v2569_v35 = vadd.f32 %v2568_v54, %v9336_v10 }
 0x633   : > { %v3958_v12 = vadd.f32 %v3957_v50, %v3349_v14 }
 0x634   : > { %v4506_v58 = vpop.f32.mrf.mxu1 }
 0x635   : > { %v4503_v28 = vadd.f32 %v4502_v9, %v3958_v12  ;;  %v3965_v31 = vpop.f32.mrf.mxu0 }
 0x637   : > { %4680 = vst [vmem:[%s7035_s24 + $0x378] sm:$0xff] %v4503_v28 }
 0x638   : > { %v2573_v26 = vpop.f32.mrf.mxu2  ;;  %v3354_v43 = vpop.f32.mrf.mxu3 }
 0x639   : > { %v3355_v30 = vadd.f32 %v3354_v43, %v2569_v35  ;;  %v2574_v7 = vadd.f32 %v2573_v26, %v9337_v63 }
 0x63b   : > { %v3962_v38 = vadd.f32 %v3961_v15, %v3355_v30  ;;  %v9342_v15 = vld [vmem:[#allocation358_spill] sm:$0xff] }
 0x63c   : > { %v4510_v19 = vpop.f32.mrf.mxu1 }
 0x63d   : > { %v4507_v37 = vadd.f32 %v4506_v58, %v3962_v38  ;;  %v3969_v21 = vpop.f32.mrf.mxu0 }
 0x63f   : > { %4681 = vst [vmem:[%s7035_s24 + $0x380] sm:$0xff] %v4507_v37 }
 0x640   : > { %v2578_v52 = vpop.f32.mrf.mxu2  ;;  %v3360_v27 = vpop.f32.mrf.mxu3 }
 0x641   : > { %v3361_v17 = vadd.f32 %v3360_v27, %v2574_v7  ;;  %v2579_v45 = vadd.f32 %v2578_v52, %v9338_v59 }
 0x643   : > { %v3966_v39 = vadd.f32 %v3965_v31, %v3361_v17  ;;  %v9343_v31 = vld [vmem:[#allocation359_spill] sm:$0xff] }
 0x644   : > { %v4514_v25 = vpop.f32.mrf.mxu1 }
 0x645   : > { %v4511_v0 = vadd.f32 %v4510_v19, %v3966_v39  ;;  %v3973_v11 = vpop.f32.mrf.mxu0 }
 0x647   : > { %4682 = vst [vmem:[%s7035_s24 + $0x388] sm:$0xff] %v4511_v0 }
 0x648   : > { %v2583_v6 = vpop.f32.mrf.mxu2  ;;  %v3366_v8 = vpop.f32.mrf.mxu3 }
 0x649   : > { %v3367_v23 = vadd.f32 %v3366_v8, %v2579_v45  ;;  %v2584_v44 = vadd.f32 %v2583_v6, %v9339_v20 }
 0x64b   : > { %v3970_v40 = vadd.f32 %v3969_v21, %v3367_v23  ;;  %v9344_v21 = vld [vmem:[#allocation360_spill] sm:$0xff] }
 0x64c   : > { %v4518_v48 = vpop.f32.mrf.mxu1 }
 0x64d   : > { %v4515_v61 = vadd.f32 %v4514_v25, %v3970_v40  ;;  %v3977_v49 = vpop.f32.mrf.mxu0 }
 0x64f   : > { %4683 = vst [vmem:[%s7035_s24 + $0x390] sm:$0xff] %v4515_v61  ;;  %v9346_v61 = vld [vmem:[#allocation362_spill] sm:$0xff] }
 0x650   : > { %v2588_v47 = vpop.f32.mrf.mxu2  ;;  %v3372_v24 = vpop.f32.mrf.mxu3 }
 0x651   : > { %v3373_v34 = vadd.f32 %v3372_v24, %v2584_v44  ;;  %v2589_v4 = vadd.f32 %v2588_v47, %v9340_v60 }
 0x653   : > { %v3974_v18 = vadd.f32 %v3973_v11, %v3373_v34  ;;  %v9345_v11 = vld [vmem:[#allocation361_spill] sm:$0xff] }
 0x654   : > { %v4522_v46 = vpop.f32.mrf.mxu1 }
 0x655   : > { %v4519_v41 = vadd.f32 %v4518_v48, %v3974_v18  ;;  %v3981_v1 = vpop.f32.mrf.mxu0 }
 0x657   : > { %4684 = vst [vmem:[%s7035_s24 + $0x398] sm:$0xff] %v4519_v41  ;;  %v9347_v41 = vld [vmem:[#allocation363_spill] sm:$0xff] }
 0x658   : > { %v2593_v29 = vpop.f32.mrf.mxu2  ;;  %v3378_v22 = vpop.f32.mrf.mxu3 }
 0x659   : > { %v3379_v55 = vadd.f32 %v3378_v22, %v2589_v4  ;;  %v2594_v33 = vadd.f32 %v2593_v29, %v9341_v32 }
 0x65b   : > { %v3978_v57 = vadd.f32 %v3977_v49, %v3379_v55 }
 0x65c   : > { %v4526_v56 = vpop.f32.mrf.mxu1 }
 0x65d   : > { %v4523_v50 = vadd.f32 %v4522_v46, %v3978_v57  ;;  %v3985_v42 = vpop.f32.mrf.mxu0 }
 0x65f   : > { %4685 = vst [vmem:[%s7035_s24 + $0x3a0] sm:$0xff] %v4523_v50  ;;  %v9348_v50 = vld [vmem:[#allocation364_spill] sm:$0xff] }
 0x660   : > { %v2598_v36 = vpop.f32.mrf.mxu2  ;;  %v3384_v16 = vpop.f32.mrf.mxu3 }
 0x661   : > { %v3385_v2 = vadd.f32 %v3384_v16, %v2594_v33  ;;  %v2599_v62 = vadd.f32 %v2598_v36, %v9342_v15 }
 0x663   : > { %v3982_v53 = vadd.f32 %v3981_v1, %v3385_v2 }
 0x664   : > { %v4530_v9 = vpop.f32.mrf.mxu1 }
 0x665   : > { %v4527_v5 = vadd.f32 %v4526_v56, %v3982_v53  ;;  %v3989_v13 = vpop.f32.mrf.mxu0 }
 0x667   : > { %4686 = vst [vmem:[%s7035_s24 + $0x3a8] sm:$0xff] %v4527_v5  ;;  %v9349_v5 = vld [vmem:[#allocation365_spill] sm:$0xff] }
 0x668   : > { %v2603_v3 = vpop.f32.mrf.mxu2  ;;  %v3390_v54 = vpop.f32.mrf.mxu3 }
 0x669   : > { %v3391_v51 = vadd.f32 %v3390_v54, %v2599_v62  ;;  %v2604_v10 = vadd.f32 %v2603_v3, %v9343_v31 }
 0x66b   : > { %v3986_v14 = vadd.f32 %v3985_v42, %v3391_v51 }
 0x66c   : > { %v4534_v12 = vpop.f32.mrf.mxu1 }
 0x66d   : > { %v4531_v58 = vadd.f32 %v4530_v9, %v3986_v14  ;;  %v3993_v28 = vpop.f32.mrf.mxu0 }
 0x66f   : > { %4687 = vst [vmem:[%s7035_s24 + $0x3b0] sm:$0xff] %v4531_v58 }
 0x670   : > { %v2608_v35 = vpop.f32.mrf.mxu2  ;;  %v3396_v26 = vpop.f32.mrf.mxu3 }
 0x671   : > { %v3397_v43 = vadd.f32 %v3396_v26, %v2604_v10  ;;  %v2609_v63 = vadd.f32 %v2608_v35, %v9344_v21 }
 0x673   : > { %v3990_v30 = vadd.f32 %v3989_v13, %v3397_v43 }
 0x674   : > { %v4538_v38 = vpop.f32.mrf.mxu1 }
 0x675   : > { %v4535_v19 = vadd.f32 %v4534_v12, %v3990_v30  ;;  %v3997_v37 = vpop.f32.mrf.mxu0  ;;  %v9350_v12 = vld [vmem:[#allocation367_spill] sm:$0xff]  ;;  %v9351_v30 = vld [vmem:[#allocation369_spill] sm:$0xff] }
 0x677   : > { %4688 = vst [vmem:[%s7035_s24 + $0x3b8] sm:$0xff] %v4535_v19 }
 0x678   : > { %v2613_v7 = vpop.f32.mrf.mxu2  ;;  %v3402_v52 = vpop.f32.mrf.mxu3 }
 0x679   : > { %v3403_v27 = vadd.f32 %v3402_v52, %v2609_v63  ;;  %v2614_v59 = vadd.f32 %v2613_v7, %v9345_v11 }
 0x67b   : > { %v3994_v17 = vadd.f32 %v3993_v28, %v3403_v27 }
 0x67c   : > { %v4542_v39 = vpop.f32.mrf.mxu1 }
 0x67d   : > { %v4539_v25 = vadd.f32 %v4538_v38, %v3994_v17  ;;  %v4001_v0 = vpop.f32.mrf.mxu0 }
 0x67f   : > { %4689 = vst [vmem:[%s7035_s24 + $0x3c0] sm:$0xff] %v4539_v25 }
 0x680   : > { %v2618_v45 = vpop.f32.mrf.mxu2  ;;  %v3408_v6 = vpop.f32.mrf.mxu3 }
 0x681   : > { %v3409_v8 = vadd.f32 %v3408_v6, %v2614_v59  ;;  %v2619_v49 = vadd.f32 %v2618_v45, %v9346_v61 }
 0x683   : > { %v3998_v23 = vadd.f32 %v3997_v37, %v3409_v8 }
 0x684   : > { %v4546_v40 = vpop.f32.mrf.mxu1 }
 0x685   : > { %v4543_v48 = vadd.f32 %v4542_v39, %v3998_v23  ;;  %v4005_v20 = vpop.f32.mrf.mxu0 }
 0x687   : > { %4690 = vst [vmem:[%s7035_s24 + $0x3c8] sm:$0xff] %v4543_v48 }
 0x688   : > { %v2623_v44 = vpop.f32.mrf.mxu2  ;;  %v3414_v47 = vpop.f32.mrf.mxu3 }
 0x689   : > { %v3415_v24 = vadd.f32 %v3414_v47, %v2619_v49  ;;  %v2624_v1 = vadd.f32 %v2623_v44, %v9347_v41 }
 0x68b   : > { %v4002_v34 = vadd.f32 %v4001_v0, %v3415_v24 }
 0x68c   : > { %v4550_v18 = vpop.f32.mrf.mxu1 }
 0x68d   : > { %v4547_v46 = vadd.f32 %v4546_v40, %v4002_v34  ;;  %v4009_v22 = vpop.f32.mrf.mxu0 }
 0x68f   : > { %4691 = vst [vmem:[%s7035_s24 + $0x3d0] sm:$0xff] %v4547_v46 }
 0x690   : > { %v2628_v60 = vpop.f32.mrf.mxu2  ;;  %v3420_v4 = vpop.f32.mrf.mxu3 }
 0x691   : > { %v3421_v29 = vadd.f32 %v3420_v4, %v2624_v1  ;;  %v2629_v42 = vadd.f32 %v2628_v60, %v9348_v50 }
 0x693   : > { %v4006_v55 = vadd.f32 %v4005_v20, %v3421_v29 }
 0x694   : > { %v4554_v57 = vpop.f32.mrf.mxu1 }
 0x695   : > { %v4551_v56 = vadd.f32 %v4550_v18, %v4006_v55  ;;  %v4013_v2 = vpop.f32.mrf.mxu0 }
 0x697   : > { %4692 = vst [vmem:[%s7035_s24 + $0x3d8] sm:$0xff] %v4551_v56 }
 0x698   : > { %v2633_v32 = vpop.f32.mrf.mxu2  ;;  %v3426_v33 = vpop.f32.mrf.mxu3 }
 0x699   : > { %v3427_v36 = vadd.f32 %v3426_v33, %v2629_v42  ;;  %v2634_v13 = vadd.f32 %v2633_v32, %v9349_v5 }
 0x69b   : > { %v4010_v16 = vadd.f32 %v4009_v22, %v3427_v36 }
 0x69c   : > { %v4558_v9 = vpop.f32.mrf.mxu1 }
 0x69d   : > { %v4555_v53 = vadd.f32 %v4554_v57, %v4010_v16  ;;  %v4017_v14 = vpop.f32.mrf.mxu0 }
 0x69f   : > { %4693 = vst [vmem:[%s7035_s24 + $0x3e0] sm:$0xff] %v4555_v53 }
 0x6a0   : > { %v3432_v15 = vpop.f32.mrf.mxu3  ;;  %v2638_v3 = vpop.f32.mrf.mxu2 }
 0x6a1   : > { %v3433_v62 = vadd.f32 %v3432_v15, %v2634_v13  ;;  %v2639_v58 = vadd.f32 %v2638_v3, %v9350_v12 }
 0x6a3   : > { %v4014_v54 = vadd.f32 %v4013_v2, %v3433_v62 }
 0x6a4   : > { %v4562_v31 = vpop.f32.mrf.mxu1 }
 0x6a5   : > { %v4559_v51 = vadd.f32 %v4558_v9, %v4014_v54  ;;  %v4021_v37 = vpop.f32.mrf.mxu0 }
 0x6a7   : > { %4694 = vst [vmem:[%s7035_s24 + $0x3e8] sm:$0xff] %v4559_v51 }
 0x6a8   : > { %v3438_v28 = vpop.f32.mrf.mxu3  ;;  %v2643_v26 = vpop.f32.mrf.mxu2 }
 0x6a9   : > { %v3439_v10 = vadd.f32 %v3438_v28, %v2639_v58  ;;  %v2644_v38 = vadd.f32 %v2643_v26, %v9351_v30 }
 0x6ab   : > { %v4018_v35 = vadd.f32 %v4017_v14, %v3439_v10 }
 0x6ac   : > { %v4566_v63 = vpop.f32.mrf.mxu1 }
 0x6ad   : > { %v4563_v43 = vadd.f32 %v4562_v31, %v4018_v35 }
 0x6af   : > { %4695 = vst [vmem:[%s7035_s24 + $0x3f0] sm:$0xff] %v4563_v43 }
 0x6b0   : > { %v3444_v19 = vpop.f32.mrf.mxu3 }
 0x6b1   : > { %v3445_v21 = vadd.f32 %v3444_v19, %v2644_v38 }
 0x6b3   : > { %v4022_v7 = vadd.f32 %v4021_v37, %v3445_v21 }
 0x6b5   : > { %v4567_v52 = vadd.f32 %v4566_v63, %v4022_v7 }
 0x6b7   : > { %4696 = vst [vmem:[%s7035_s24 + $0x3f8] sm:$0xff] %v4567_v52 }
 0x6b8 PF: > { %s12_s9 = sadd.s32 1, %s4810_s9  }
 0x6b9   : > { %p9_p4 = scmp.ge.s32.totalorder %s12_s9, 4  }
 0x6bb   :  { %11 = sbr.rel (!%p9_p4) target bundleno = 1 (0x1), region = 58 }

</bundles_post_ra>
